<compile_context>
chip_gen: v7x
topology: tpu7x:2x2x1
jax: 0.10.0
libtpu: 0.0.40
codegen_flags: <defaults>
</compile_context>

<pallas_src>
import jax
import jax.numpy as jnp
from jax.experimental import pallas as pl
from jax.experimental.pallas import tpu as pltpu


_ROWS = 49        # 7 x 7 input pixels per image
_ROWS_PAD = 56    # pad rows 49 -> 56 so the matmul M dim is sublane-aligned (8)


# ----------------------------- Pallas kernel ------------------------------ #
def _decoder_fused_kernel(x_ref, w1, b1, w2, b2, w3, b3, w4, b4, o_ref):
    # x_ref: (G, 56, 256) f32   rows = 7x7 pixels (+7 pad rows), cols = input channels
    # w1: (256,256)  w2: (256,512)  w3: (256,512)  w4: (256,256)   all bf16
    # b*: (1, N) f32
    # o_ref: (G, 4, 56, 256) f32  axis 1 = (p1,q1) sub-pixel quadrant,
    #        columns = nested (p2,q2,p3,q3,p4,q4,c) layout (+64 zero pad cols)
    G, R, _ = x_ref.shape
    m = G * R
    h0 = x_ref[...].reshape(m, 256)            # free sublane-only merge (56 % 8 == 0)

    def leaky(y):                               # LeakyReLU(0.01), kept in f32
        return jnp.maximum(y, 0.01 * y)

    def dot_bf16(h, w_ref, b_ref):              # bf16 operands, f32 accumulate
        return jnp.dot(h.astype(jnp.bfloat16), w_ref[...],
                       preferred_element_type=jnp.float32) + b_ref[...]

    h1 = leaky(dot_bf16(h0, w1, b1))            # (m, 256) cols (p1,q1,c1)
    h2 = leaky(dot_bf16(h1, w2, b2))            # (m, 512) cols (p1,q1,p2,q2,c2)

    # Peel (p1, q1) off the column layout with tile-aligned slices; K stays 256.
    for p1 in range(2):
        h3 = leaky(dot_bf16(h2[:, p1 * 256:(p1 + 1) * 256], w3, b3))   # (m,512) (q1,p2,q2,p3,q3,c3)
        for q1 in range(2):
            h4 = leaky(dot_bf16(h3[:, q1 * 256:(q1 + 1) * 256], w4, b4))  # (m,256)
            o_ref[:, p1 * 2 + q1] = h4.reshape(G, R, 256)


# ------------------------------ forward pass ------------------------------- #
def _decoder_forward(x, fused):
    """x: (B, 256*7*7) PyTorch-flattened NCHW latent. Returns NCHW (B,3,112,112)."""
    B = x.shape[0]
    G = max(1, min(8, B // 2))           # >=2 grid steps when B>=2 (v7x has 2 TCs)
    Bp = ((B + G - 1) // G) * G          # pad batch to a multiple of G

    # Unflatten -> NCHW -> NHWC rows (B,49,256); pad rows 49->56 and batch B->Bp.
    xr = jnp.transpose(x.reshape(B, 256, 7, 7), (0, 2, 3, 1)).reshape(B, _ROWS, 256)
    xr = jnp.pad(xr, ((0, Bp - B), (0, _ROWS_PAD - _ROWS), (0, 0)))

    (w1, b1), (w2, b2), (w3, b3), (w4, b4) = fused

    out = pl.pallas_call(
        _decoder_fused_kernel,
        out_shape=jax.ShapeDtypeStruct((Bp, 4, _ROWS_PAD, 256), jnp.float32),
        grid_spec=pltpu.PrefetchScalarGridSpec(
            num_scalar_prefetch=0,
            grid=(Bp // G,),
            in_specs=[
                pl.BlockSpec((G, _ROWS_PAD, 256), lambda b: (b, 0, 0)),
                # Weights / biases: whole arrays resident in VMEM, no blocking.
                *[pl.BlockSpec(memory_space=pltpu.MemorySpace.VMEM) for _ in range(8)],
            ],
            out_specs=pl.BlockSpec((G, 4, _ROWS_PAD, 256), lambda b: (b, 0, 0, 0)),
        ),
        compiler_params=pltpu.CompilerParams(
            dimension_semantics=("parallel",),      # batch axis feeds both TCs on v7x
            vmem_limit_bytes=32 * 1024 * 1024,
        ),
    )(xr, w1, b1, w2, b2, w3, b3, w4, b4)

    # (Bp,4,56,256) -> NCHW (B,3,112,112): drop pads, then ONE reshape,
    # ONE transpose (combined depth-to-space x4 + NHWC->NCHW), ONE reshape.
    out = out[:B, :, :_ROWS, :192]
    out = out.reshape(B, 2, 2, 7, 7, 2, 2, 2, 2, 2, 2, 3)  # b p1 q1 h w p2 q2 p3 q3 p4 q4 c
    img = jnp.transpose(out, (0, 11, 3, 1, 5, 7, 9, 4, 2, 6, 8, 10))
    return img.reshape(B, 3, 112, 112)


# ------------------------ weight preparation helpers ----------------------- #
def _block_diag(w, reps):
    """diag(w, w, ..., w) with `reps` copies along the diagonal."""
    if reps == 1:
        return w
    ci, cn = w.shape
    eye = jnp.eye(reps, dtype=w.dtype)
    g = jnp.einsum('rs,ij->risj', eye, w)          # (reps, ci, reps, cn)
    return g.reshape(reps * ci, reps * cn)


class DecoderPallas:
    """Pallas port of genconvit_vae.Decoder (forward pass only)."""

    _CHANS = [(256, 64), (64, 32), (32, 16), (16, 3)]
    _REPS = [1, 4, 8, 16]     # block-diag copies kept in the N (column) direction
    _PAD_N = [0, 0, 0, 64]    # zero cols so every layer's N is a multiple of 128

    def __init__(self, key, latent_dims=4):
        self.latent_dims = latent_dims

        # Deterministic synthetic init (mimics PyTorch ConvTranspose2d default).
        self.params = []
        for idx, (ci, co) in enumerate(self._CHANS):
            kw, kb = jax.random.split(jax.random.fold_in(key, idx))
            bound = 1.0 / float(jnp.sqrt(float(ci * 4)))
            w = jax.random.uniform(kw, (ci, co, 2, 2), jnp.float32, -bound, bound)
            b = jax.random.uniform(kb, (co,), jnp.float32, -bound, bound)
            self.params.append((w, b))

        # Fused weights: (Ci,Co,2,2) -> (Ci,4*Co) with columns (p,q,co), then
        # block-diag expanded so layer l consumes layer l-1's nested column
        # layout.  Layers 3/4 keep only 8/16 reps (K = 256 everywhere); the
        # remaining (p1,q1) factor is handled by column slices in the kernel.
        fused = []
        for (w, b), reps, pad_n in zip(self.params, self._REPS, self._PAD_N):
            ci, co = w.shape[0], w.shape[1]
            wf = jnp.transpose(w, (0, 2, 3, 1)).reshape(ci, 4 * co)
            wf = _block_diag(wf, reps)                         # (reps*ci, reps*4*co)
            bf = jnp.tile(b, 4 * reps)
            if pad_n:
                wf = jnp.pad(wf, ((0, 0), (0, pad_n)))
                bf = jnp.pad(bf, (0, pad_n))
            fused.append((jnp.asarray(wf, jnp.bfloat16),       # bf16 MXU operands
                          jnp.asarray(bf, jnp.float32).reshape(1, -1)))
        self.fused = tuple(fused)

        self._forward = jax.jit(_decoder_forward)

    def __call__(self, x):
        return self._forward(x, self.fused)


# ----------------------------- pure-JAX reference -------------------------- #
def _ref_decoder(x, params):
    B = x.shape[0]
    h = jnp.transpose(x.reshape(B, 256, 7, 7), (0, 2, 3, 1))
    for w, b in params:
        y = jnp.einsum('bhwi,iopq->bhpwqo', h, w,
                       precision=jax.lax.Precision.HIGHEST)
        Bh, H, _, W, _, Co = y.shape
        y = y.reshape(Bh, 2 * H, 2 * W, Co) + b
        h = jnp.maximum(y, 0.01 * y)
    return jnp.transpose(h, (0, 3, 1, 2))


if __name__ == "__main__":
    key = jax.random.PRNGKey(0)
    k_param, k_in = jax.random.split(key)

    decoder = DecoderPallas(k_param, latent_dims=4)

    B = 2
    x = jax.random.normal(k_in, (B, 256 * 7 * 7), dtype=jnp.float32)

    out = jax.block_until_ready(decoder(x))
    assert out.shape == (B, 3, 112, 112), out.shape
    assert out.dtype == jnp.float32

    ref = jax.block_until_ready(_ref_decoder(x, decoder.params))
    max_err = float(jnp.max(jnp.abs(out - ref)))
    # bf16 matmul operands (f32 accumulation) vs f32 reference -> loosened tol.
    assert jnp.allclose(out, ref, atol=2e-2, rtol=2e-2), max_err

    print("KERNEL_OK")
</pallas_src>

<mosaic_0001>
module attributes {stable_mosaic.version = 11 : i64} {
  func.func @_decoder_fused_kernel(%arg0: i32, %arg1: memref<1x56x256xf32, #tpu.memory_space<vmem>>, %arg2: memref<256x256xbf16, #tpu.memory_space<vmem>>, %arg3: memref<1x256xf32, #tpu.memory_space<vmem>>, %arg4: memref<256x512xbf16, #tpu.memory_space<vmem>>, %arg5: memref<1x512xf32, #tpu.memory_space<vmem>>, %arg6: memref<256x512xbf16, #tpu.memory_space<vmem>>, %arg7: memref<1x512xf32, #tpu.memory_space<vmem>>, %arg8: memref<256x256xbf16, #tpu.memory_space<vmem>>, %arg9: memref<1x256xf32, #tpu.memory_space<vmem>>, %arg10: memref<1x4x56x256xf32, #tpu.memory_space<vmem>>) attributes {dimension_semantics = [#tpu.dimension_semantics<parallel>], iteration_bounds = array<i64: 2>, scalar_prefetch = 0 : i64, scratch_operands = 0 : i64, tpu.core_type = #tpu.core_type<tc>, window_params = [{transform_indices = @transform_0, window_bounds = array<i64: 1, 56, 256>}, {pipeline_mode = #tpu.pipeline_mode<synchronous>, transform_indices = @transform_1, window_bounds = array<i64: 256, 256>}, {pipeline_mode = #tpu.pipeline_mode<synchronous>, transform_indices = @transform_2, window_bounds = array<i64: 1, 256>}, {pipeline_mode = #tpu.pipeline_mode<synchronous>, transform_indices = @transform_3, window_bounds = array<i64: 256, 512>}, {pipeline_mode = #tpu.pipeline_mode<synchronous>, transform_indices = @transform_4, window_bounds = array<i64: 1, 512>}, {pipeline_mode = #tpu.pipeline_mode<synchronous>, transform_indices = @transform_5, window_bounds = array<i64: 256, 512>}, {pipeline_mode = #tpu.pipeline_mode<synchronous>, transform_indices = @transform_6, window_bounds = array<i64: 1, 512>}, {pipeline_mode = #tpu.pipeline_mode<synchronous>, transform_indices = @transform_7, window_bounds = array<i64: 256, 256>}, {pipeline_mode = #tpu.pipeline_mode<synchronous>, transform_indices = @transform_8, window_bounds = array<i64: 1, 256>}, {transform_indices = @transform_9, window_bounds = array<i64: 1, 4, 56, 256>}]} {
    %c0 = arith.constant 0 : index
    %c0_0 = arith.constant 0 : index
    %c0_1 = arith.constant 0 : index
    %0 = vector.load %arg1[%c0, %c0_0, %c0_1] : memref<1x56x256xf32, #tpu.memory_space<vmem>>, vector<1x56x256xf32>
    %1 = vector.shape_cast %0 : vector<1x56x256xf32> to vector<56x256xf32>
    %2 = arith.truncf %1 : vector<56x256xf32> to vector<56x256xbf16>
    %c0_2 = arith.constant 0 : index
    %c0_3 = arith.constant 0 : index
    %3 = vector.load %arg2[%c0_2, %c0_3] : memref<256x256xbf16, #tpu.memory_space<vmem>>, vector<256x256xbf16>
    %cst = arith.constant dense<0.000000e+00> : vector<56x256xf32>
    %4 = tpu.matmul %2, %3, %cst {dimension_numbers = #tpu.dot_dimension_numbers<[1], [0], [0], [1], [0, 0, 1, 1], [], []>} : vector<56x256xbf16>, vector<256x256xbf16>, vector<56x256xf32> -> vector<56x256xf32>
    %c0_4 = arith.constant 0 : index
    %c0_5 = arith.constant 0 : index
    %5 = vector.load %arg3[%c0_4, %c0_5] : memref<1x256xf32, #tpu.memory_space<vmem>>, vector<1x256xf32>
    %6 = vector.broadcast %5 : vector<1x256xf32> to vector<56x256xf32>
    %7 = arith.addf %4, %6 : vector<56x256xf32>
    %cst_6 = arith.constant 0.00999999977 : f32
    %8 = vector.broadcast %cst_6 : f32 to vector<56x256xf32>
    %9 = arith.mulf %8, %7 : vector<56x256xf32>
    %10 = arith.maximumf %7, %9 : vector<56x256xf32>
    %11 = arith.truncf %10 : vector<56x256xf32> to vector<56x256xbf16>
    %c0_7 = arith.constant 0 : index
    %c0_8 = arith.constant 0 : index
    %12 = vector.load %arg4[%c0_7, %c0_8] : memref<256x512xbf16, #tpu.memory_space<vmem>>, vector<256x512xbf16>
    %cst_9 = arith.constant dense<0.000000e+00> : vector<56x512xf32>
    %13 = tpu.matmul %11, %12, %cst_9 {dimension_numbers = #tpu.dot_dimension_numbers<[1], [0], [0], [1], [0, 0, 1, 1], [], []>} : vector<56x256xbf16>, vector<256x512xbf16>, vector<56x512xf32> -> vector<56x512xf32>
    %c0_10 = arith.constant 0 : index
    %c0_11 = arith.constant 0 : index
    %14 = vector.load %arg5[%c0_10, %c0_11] : memref<1x512xf32, #tpu.memory_space<vmem>>, vector<1x512xf32>
    %15 = vector.broadcast %14 : vector<1x512xf32> to vector<56x512xf32>
    %16 = arith.addf %13, %15 : vector<56x512xf32>
    %cst_12 = arith.constant 0.00999999977 : f32
    %17 = vector.broadcast %cst_12 : f32 to vector<56x512xf32>
    %18 = arith.mulf %17, %16 : vector<56x512xf32>
    %19 = arith.maximumf %16, %18 : vector<56x512xf32>
    %20 = vector.extract_strided_slice %19 {offsets = [0, 0], sizes = [56, 256], strides = [1, 1]} : vector<56x512xf32> to vector<56x256xf32>
    %21 = arith.truncf %20 : vector<56x256xf32> to vector<56x256xbf16>
    %c0_13 = arith.constant 0 : index
    %c0_14 = arith.constant 0 : index
    %22 = vector.load %arg6[%c0_13, %c0_14] : memref<256x512xbf16, #tpu.memory_space<vmem>>, vector<256x512xbf16>
    %cst_15 = arith.constant dense<0.000000e+00> : vector<56x512xf32>
    %23 = tpu.matmul %21, %22, %cst_15 {dimension_numbers = #tpu.dot_dimension_numbers<[1], [0], [0], [1], [0, 0, 1, 1], [], []>} : vector<56x256xbf16>, vector<256x512xbf16>, vector<56x512xf32> -> vector<56x512xf32>
    %c0_16 = arith.constant 0 : index
    %c0_17 = arith.constant 0 : index
    %24 = vector.load %arg7[%c0_16, %c0_17] : memref<1x512xf32, #tpu.memory_space<vmem>>, vector<1x512xf32>
    %25 = vector.broadcast %24 : vector<1x512xf32> to vector<56x512xf32>
    %26 = arith.addf %23, %25 : vector<56x512xf32>
    %cst_18 = arith.constant 0.00999999977 : f32
    %27 = vector.broadcast %cst_18 : f32 to vector<56x512xf32>
    %28 = arith.mulf %27, %26 : vector<56x512xf32>
    %29 = arith.maximumf %26, %28 : vector<56x512xf32>
    %30 = vector.extract_strided_slice %29 {offsets = [0, 0], sizes = [56, 256], strides = [1, 1]} : vector<56x512xf32> to vector<56x256xf32>
    %31 = arith.truncf %30 : vector<56x256xf32> to vector<56x256xbf16>
    %c0_19 = arith.constant 0 : index
    %c0_20 = arith.constant 0 : index
    %32 = vector.load %arg8[%c0_19, %c0_20] : memref<256x256xbf16, #tpu.memory_space<vmem>>, vector<256x256xbf16>
    %cst_21 = arith.constant dense<0.000000e+00> : vector<56x256xf32>
    %33 = tpu.matmul %31, %32, %cst_21 {dimension_numbers = #tpu.dot_dimension_numbers<[1], [0], [0], [1], [0, 0, 1, 1], [], []>} : vector<56x256xbf16>, vector<256x256xbf16>, vector<56x256xf32> -> vector<56x256xf32>
    %c0_22 = arith.constant 0 : index
    %c0_23 = arith.constant 0 : index
    %34 = vector.load %arg9[%c0_22, %c0_23] : memref<1x256xf32, #tpu.memory_space<vmem>>, vector<1x256xf32>
    %35 = vector.broadcast %34 : vector<1x256xf32> to vector<56x256xf32>
    %36 = arith.addf %33, %35 : vector<56x256xf32>
    %cst_24 = arith.constant 0.00999999977 : f32
    %37 = vector.broadcast %cst_24 : f32 to vector<56x256xf32>
    %38 = arith.mulf %37, %36 : vector<56x256xf32>
    %39 = arith.maximumf %36, %38 : vector<56x256xf32>
    %40 = vector.shape_cast %39 : vector<56x256xf32> to vector<1x56x256xf32>
    %c0_25 = arith.constant 0 : index
    %c0_26 = arith.constant 0 : index
    %c0_27 = arith.constant 0 : index
    %c0_28 = arith.constant 0 : index
    %41 = vector.load %arg10[%c0_25, %c0_26, %c0_27, %c0_28] : memref<1x4x56x256xf32, #tpu.memory_space<vmem>>, vector<1x1x56x256xf32>
    %42 = vector.shape_cast %41 : vector<1x1x56x256xf32> to vector<1x56x256xf32>
    %43 = vector.shape_cast %40 : vector<1x56x256xf32> to vector<1x1x56x256xf32>
    tpu.vector_store %arg10[%c0_25, %c0_26, %c0_27, %c0_28], %43 {strides = array<i32>} : memref<1x4x56x256xf32, #tpu.memory_space<vmem>>, vector<1x1x56x256xf32>,
    %44 = vector.extract_strided_slice %29 {offsets = [0, 256], sizes = [56, 256], strides = [1, 1]} : vector<56x512xf32> to vector<56x256xf32>
    %45 = arith.truncf %44 : vector<56x256xf32> to vector<56x256xbf16>
    %c0_29 = arith.constant 0 : index
    %c0_30 = arith.constant 0 : index
    %46 = vector.load %arg8[%c0_29, %c0_30] : memref<256x256xbf16, #tpu.memory_space<vmem>>, vector<256x256xbf16>
    %cst_31 = arith.constant dense<0.000000e+00> : vector<56x256xf32>
    %47 = tpu.matmul %45, %46, %cst_31 {dimension_numbers = #tpu.dot_dimension_numbers<[1], [0], [0], [1], [0, 0, 1, 1], [], []>} : vector<56x256xbf16>, vector<256x256xbf16>, vector<56x256xf32> -> vector<56x256xf32>
    %c0_32 = arith.constant 0 : index
    %c0_33 = arith.constant 0 : index
    %48 = vector.load %arg9[%c0_32, %c0_33] : memref<1x256xf32, #tpu.memory_space<vmem>>, vector<1x256xf32>
    %49 = vector.broadcast %48 : vector<1x256xf32> to vector<56x256xf32>
    %50 = arith.addf %47, %49 : vector<56x256xf32>
    %cst_34 = arith.constant 0.00999999977 : f32
    %51 = vector.broadcast %cst_34 : f32 to vector<56x256xf32>
    %52 = arith.mulf %51, %50 : vector<56x256xf32>
    %53 = arith.maximumf %50, %52 : vector<56x256xf32>
    %54 = vector.shape_cast %53 : vector<56x256xf32> to vector<1x56x256xf32>
    %c0_35 = arith.constant 0 : index
    %c1 = arith.constant 1 : index
    %c0_36 = arith.constant 0 : index
    %c0_37 = arith.constant 0 : index
    %55 = vector.load %arg10[%c0_35, %c1, %c0_36, %c0_37] : memref<1x4x56x256xf32, #tpu.memory_space<vmem>>, vector<1x1x56x256xf32>
    %56 = vector.shape_cast %55 : vector<1x1x56x256xf32> to vector<1x56x256xf32>
    %57 = vector.shape_cast %54 : vector<1x56x256xf32> to vector<1x1x56x256xf32>
    tpu.vector_store %arg10[%c0_35, %c1, %c0_36, %c0_37], %57 {strides = array<i32>} : memref<1x4x56x256xf32, #tpu.memory_space<vmem>>, vector<1x1x56x256xf32>,
    %58 = vector.extract_strided_slice %19 {offsets = [0, 256], sizes = [56, 256], strides = [1, 1]} : vector<56x512xf32> to vector<56x256xf32>
    %59 = arith.truncf %58 : vector<56x256xf32> to vector<56x256xbf16>
    %c0_38 = arith.constant 0 : index
    %c0_39 = arith.constant 0 : index
    %60 = vector.load %arg6[%c0_38, %c0_39] : memref<256x512xbf16, #tpu.memory_space<vmem>>, vector<256x512xbf16>
    %cst_40 = arith.constant dense<0.000000e+00> : vector<56x512xf32>
    %61 = tpu.matmul %59, %60, %cst_40 {dimension_numbers = #tpu.dot_dimension_numbers<[1], [0], [0], [1], [0, 0, 1, 1], [], []>} : vector<56x256xbf16>, vector<256x512xbf16>, vector<56x512xf32> -> vector<56x512xf32>
    %c0_41 = arith.constant 0 : index
    %c0_42 = arith.constant 0 : index
    %62 = vector.load %arg7[%c0_41, %c0_42] : memref<1x512xf32, #tpu.memory_space<vmem>>, vector<1x512xf32>
    %63 = vector.broadcast %62 : vector<1x512xf32> to vector<56x512xf32>
    %64 = arith.addf %61, %63 : vector<56x512xf32>
    %cst_43 = arith.constant 0.00999999977 : f32
    %65 = vector.broadcast %cst_43 : f32 to vector<56x512xf32>
    %66 = arith.mulf %65, %64 : vector<56x512xf32>
    %67 = arith.maximumf %64, %66 : vector<56x512xf32>
    %68 = vector.extract_strided_slice %67 {offsets = [0, 0], sizes = [56, 256], strides = [1, 1]} : vector<56x512xf32> to vector<56x256xf32>
    %69 = arith.truncf %68 : vector<56x256xf32> to vector<56x256xbf16>
    %c0_44 = arith.constant 0 : index
    %c0_45 = arith.constant 0 : index
    %70 = vector.load %arg8[%c0_44, %c0_45] : memref<256x256xbf16, #tpu.memory_space<vmem>>, vector<256x256xbf16>
    %cst_46 = arith.constant dense<0.000000e+00> : vector<56x256xf32>
    %71 = tpu.matmul %69, %70, %cst_46 {dimension_numbers = #tpu.dot_dimension_numbers<[1], [0], [0], [1], [0, 0, 1, 1], [], []>} : vector<56x256xbf16>, vector<256x256xbf16>, vector<56x256xf32> -> vector<56x256xf32>
    %c0_47 = arith.constant 0 : index
    %c0_48 = arith.constant 0 : index
    %72 = vector.load %arg9[%c0_47, %c0_48] : memref<1x256xf32, #tpu.memory_space<vmem>>, vector<1x256xf32>
    %73 = vector.broadcast %72 : vector<1x256xf32> to vector<56x256xf32>
    %74 = arith.addf %71, %73 : vector<56x256xf32>
    %cst_49 = arith.constant 0.00999999977 : f32
    %75 = vector.broadcast %cst_49 : f32 to vector<56x256xf32>
    %76 = arith.mulf %75, %74 : vector<56x256xf32>
    %77 = arith.maximumf %74, %76 : vector<56x256xf32>
    %78 = vector.shape_cast %77 : vector<56x256xf32> to vector<1x56x256xf32>
    %c0_50 = arith.constant 0 : index
    %c2 = arith.constant 2 : index
    %c0_51 = arith.constant 0 : index
    %c0_52 = arith.constant 0 : index
    %79 = vector.load %arg10[%c0_50, %c2, %c0_51, %c0_52] : memref<1x4x56x256xf32, #tpu.memory_space<vmem>>, vector<1x1x56x256xf32>
    %80 = vector.shape_cast %79 : vector<1x1x56x256xf32> to vector<1x56x256xf32>
    %81 = vector.shape_cast %78 : vector<1x56x256xf32> to vector<1x1x56x256xf32>
    tpu.vector_store %arg10[%c0_50, %c2, %c0_51, %c0_52], %81 {strides = array<i32>} : memref<1x4x56x256xf32, #tpu.memory_space<vmem>>, vector<1x1x56x256xf32>,
    %82 = vector.extract_strided_slice %67 {offsets = [0, 256], sizes = [56, 256], strides = [1, 1]} : vector<56x512xf32> to vector<56x256xf32>
    %83 = arith.truncf %82 : vector<56x256xf32> to vector<56x256xbf16>
    %c0_53 = arith.constant 0 : index
    %c0_54 = arith.constant 0 : index
    %84 = vector.load %arg8[%c0_53, %c0_54] : memref<256x256xbf16, #tpu.memory_space<vmem>>, vector<256x256xbf16>
    %cst_55 = arith.constant dense<0.000000e+00> : vector<56x256xf32>
    %85 = tpu.matmul %83, %84, %cst_55 {dimension_numbers = #tpu.dot_dimension_numbers<[1], [0], [0], [1], [0, 0, 1, 1], [], []>} : vector<56x256xbf16>, vector<256x256xbf16>, vector<56x256xf32> -> vector<56x256xf32>
    %c0_56 = arith.constant 0 : index
    %c0_57 = arith.constant 0 : index
    %86 = vector.load %arg9[%c0_56, %c0_57] : memref<1x256xf32, #tpu.memory_space<vmem>>, vector<1x256xf32>
    %87 = vector.broadcast %86 : vector<1x256xf32> to vector<56x256xf32>
    %88 = arith.addf %85, %87 : vector<56x256xf32>
    %cst_58 = arith.constant 0.00999999977 : f32
    %89 = vector.broadcast %cst_58 : f32 to vector<56x256xf32>
    %90 = arith.mulf %89, %88 : vector<56x256xf32>
    %91 = arith.maximumf %88, %90 : vector<56x256xf32>
    %92 = vector.shape_cast %91 : vector<56x256xf32> to vector<1x56x256xf32>
    %c0_59 = arith.constant 0 : index
    %c3 = arith.constant 3 : index
    %c0_60 = arith.constant 0 : index
    %c0_61 = arith.constant 0 : index
    %93 = vector.load %arg10[%c0_59, %c3, %c0_60, %c0_61] : memref<1x4x56x256xf32, #tpu.memory_space<vmem>>, vector<1x1x56x256xf32>
    %94 = vector.shape_cast %93 : vector<1x1x56x256xf32> to vector<1x56x256xf32>
    %95 = vector.shape_cast %92 : vector<1x56x256xf32> to vector<1x1x56x256xf32>
    tpu.vector_store %arg10[%c0_59, %c3, %c0_60, %c0_61], %95 {strides = array<i32>} : memref<1x4x56x256xf32, #tpu.memory_space<vmem>>, vector<1x1x56x256xf32>,
    return
  }
  func.func @transform_0(%arg0: i32) -> (i32, i32, i32) {
    %c0_i32 = arith.constant 0 : i32
    %c0_i32_0 = arith.constant 0 : i32
    %c0_i32_1 = arith.constant 0 : i32
    return %arg0, %c0_i32, %c0_i32_0 : i32, i32, i32
  }
  func.func @transform_1(%arg0: i32) -> (i32, i32) {
    %c0_i32 = arith.constant 0 : i32
    %c0_i32_0 = arith.constant 0 : i32
    %c0_i32_1 = arith.constant 0 : i32
    return %c0_i32, %c0_i32_0 : i32, i32
  }
  func.func @transform_2(%arg0: i32) -> (i32, i32) {
    %c0_i32 = arith.constant 0 : i32
    %c0_i32_0 = arith.constant 0 : i32
    %c0_i32_1 = arith.constant 0 : i32
    return %c0_i32, %c0_i32_0 : i32, i32
  }
  func.func @transform_3(%arg0: i32) -> (i32, i32) {
    %c0_i32 = arith.constant 0 : i32
    %c0_i32_0 = arith.constant 0 : i32
    %c0_i32_1 = arith.constant 0 : i32
    return %c0_i32, %c0_i32_0 : i32, i32
  }
  func.func @transform_4(%arg0: i32) -> (i32, i32) {
    %c0_i32 = arith.constant 0 : i32
    %c0_i32_0 = arith.constant 0 : i32
    %c0_i32_1 = arith.constant 0 : i32
    return %c0_i32, %c0_i32_0 : i32, i32
  }
  func.func @transform_5(%arg0: i32) -> (i32, i32) {
    %c0_i32 = arith.constant 0 : i32
    %c0_i32_0 = arith.constant 0 : i32
    %c0_i32_1 = arith.constant 0 : i32
    return %c0_i32, %c0_i32_0 : i32, i32
  }
  func.func @transform_6(%arg0: i32) -> (i32, i32) {
    %c0_i32 = arith.constant 0 : i32
    %c0_i32_0 = arith.constant 0 : i32
    %c0_i32_1 = arith.constant 0 : i32
    return %c0_i32, %c0_i32_0 : i32, i32
  }
  func.func @transform_7(%arg0: i32) -> (i32, i32) {
    %c0_i32 = arith.constant 0 : i32
    %c0_i32_0 = arith.constant 0 : i32
    %c0_i32_1 = arith.constant 0 : i32
    return %c0_i32, %c0_i32_0 : i32, i32
  }
  func.func @transform_8(%arg0: i32) -> (i32, i32) {
    %c0_i32 = arith.constant 0 : i32
    %c0_i32_0 = arith.constant 0 : i32
    %c0_i32_1 = arith.constant 0 : i32
    return %c0_i32, %c0_i32_0 : i32, i32
  }
  func.func @transform_9(%arg0: i32) -> (i32, i32, i32, i32) {
    %c0_i32 = arith.constant 0 : i32
    %c0_i32_0 = arith.constant 0 : i32
    %c0_i32_1 = arith.constant 0 : i32
    %c0_i32_2 = arith.constant 0 : i32
    return %arg0, %c0_i32, %c0_i32_0, %c0_i32_1 : i32, i32, i32, i32
  }
}

</mosaic_0001>

<bundles_post_ra>
// kernel: _decoder_forward.1
= control target key start
LH: loop header
LB: loop body
LE: loop exit
PB: predicated region body
PF: predicated region fallthrough
CT: control target
= control target key end

     0   :  { %14 = vsyncpa [#allocation3], 0  ;;  %s6107_s0 = inlined_call_operand.vmem [shape: f32[2,56,256], index: 0, kind: input, shape index: {}]   ;;  %s6108_s1 = inlined_call_operand.hbm [shape: bf16[256,256], index: 1, kind: input, shape index: {}]   ;;  %s6109_s2 = inlined_call_operand.hbm [shape: f32[1,256], index: 2, kind: input, shape index: {}]   ;;  %s6110_s3 = inlined_call_operand.hbm [shape: bf16[256,512], index: 3, kind: input, shape index: {}]   ;;  %s6111_s4 = inlined_call_operand.hbm [shape: f32[1,512], index: 4, kind: input, shape index: {}]   ;;  %s6112_s5 = inlined_call_operand.hbm [shape: bf16[256,512], index: 5, kind: input, shape index: {}]   ;;  %s6113_s6 = inlined_call_operand.hbm [shape: f32[1,512], index: 6, kind: input, shape index: {}]   ;;  %s6114_s7 = inlined_call_operand.hbm [shape: bf16[256,256], index: 7, kind: input, shape index: {}]   ;;  %s6115_s8 = inlined_call_operand.hbm [shape: f32[1,256], index: 8, kind: input, shape index: {}]   ;;  %s6116_s9 = inlined_call_operand.vmem [shape: f32[2,4,56,256], index: 9, kind: output, shape index: {}]  }
   0x1   :  { %15 = vsyncpa [#allocation5], 0 }
   0x2   :  { %16 = vsyncpa [#allocation8], 0 }
   0x3   :  { %17 = vsyncpa [#allocation11], 0 }
   0x4   :  { %18 = vsyncpa [#allocation14], 0  ;;  %s5332_s30 = smov 0  }
   0x5 LB: > { %s5270_s10 = smov [#allocation4]   ;;  %s5338_s12 = sadd.s32 4294967295, %s5268_s30   ;;  %s5268_s30 = sphi %s5332_s30, %s24_s30  }
   0x6   : > { %s275_s11 = sshll.u32 %s5270_s10, 4  ;;  %p4042_p0 = scmp.ge.s32.totalorder %s5268_s30, 1  ;;  %s5343_s11 = int_to_ptr.vmem [resolvable:$true] %s275_s11 }
   0x7   : > { %p249_p1 = scmp.lt.s32.totalorder %s5268_s30, 3  ;;  %p6117_p2 = scmp.eq.s32.totalorder %s5338_s12, 0 }
   0x8   : > { %s5271_s14 = smov [#allocation7]   ;;  %s5272_s16 = smov [#allocation10]  }
   0x9   : > { %p5345_p3 = pnand %p4042_p0, %p249_p1  ;;  %s299_s15 = sshll.u32 %s5271_s14, 4  ;;  %s5351_s15 = int_to_ptr.vmem [resolvable:$true] %s299_s15 }
   0xa   : > { %s323_s17 = sshll.u32 %s5272_s16, 4  ;;  %s5273_s19 = smov [#allocation2]   ;;  %s5359_s17 = int_to_ptr.vmem [resolvable:$true] %s323_s17 }
   0xb   : > { %s6126_s13 = scalar_select %p5345_p3, 1, 0 }
   0xc   : > { %p4525_p4 = pneg %p5345_p3  ;;  %s261_s20 = sshll.u32 %s5273_s19, 4  ;;  %s5361_s20 = int_to_ptr.vmem [resolvable:$true] %s261_s20 }
   0xd   : > { %s5018_s23 = scalar_lea.hbm %s6109_s2, 32 }
   0xe   : > { %p5355_p5 = pnand %p6117_p2, %p4525_p4  ;;  %p5019_p6 = scmp.ne.s32.totalorder %s6109_s2, %s5018_s23 }
   0xf   : > { %p5025_p10 = scmp.lt.u32.totalorder %s5018_s23, %s6109_s2 }
  0x10   : > { %p5371_p7 = pneg %p5355_p5 }
  0x12   : > { %p5021_p8 = pnand %p5371_p7, %p5019_p6 }
  0x14   : > { %p5022_p9 = pneg %p5021_p8 }
  0x16   : > { %p5027_p11 = pnand %p5025_p10, %p5022_p9 }
  0x18   : > { %5030 = shalt.err (!%p5027_p11)
}
  0x19   : > { %s5031_s29 = scalar_lea.vmem %s5343_s11, 32  ;;  %p5039_p1 = scmp.lt.s32.totalorder %s5343_s11, %s5343_s11 }
  0x1a   : > { %p5032_p12 = scmp.ne.s32.totalorder %s5343_s11, %s5031_s29  ;;  %p5040_p4 = scmp.lt.s32.totalorder %s5031_s29, %s5031_s29 }
  0x1c   : > { %p5034_p13 = pnand %p5032_p12, %p5371_p7  ;;  %p5041_p6 = por %p5040_p4, %p5039_p1 }
  0x1e   : > { %p5035_p0 = pneg %p5034_p13 }
  0x20   : > { %p5042_p8 = pnand %p5041_p6, %p5035_p0 }
  0x22   : > { %5045 = shalt.err (!%p5042_p8)
}
  0x23   : > { %4531 = dma.hbm_to_vmem [thread:$0]  (!%p5355_p5), %s6109_s2, 32, %s5343_s11, [#allocation5]  }
  0x24   : > { %s5046_s21 = scalar_lea.hbm %s6111_s4, 64 }
  0x25   : > { %p5047_p9 = scmp.ne.s32.totalorder %s6111_s4, %s5046_s21  ;;  %p5053_p12 = scmp.lt.u32.totalorder %s5046_s21, %s6111_s4 }
  0x27   : > { %p5049_p10 = pnand %p5047_p9, %p5371_p7 }
  0x29   : > { %p5050_p11 = pneg %p5049_p10 }
  0x2b   : > { %p5055_p13 = pnand %p5053_p12, %p5050_p11 }
  0x2d   : > { %5058 = shalt.err (!%p5055_p13)
}
  0x2e   : > { %s5059_s11 = scalar_lea.vmem %s5351_s15, 64  ;;  %p5067_p6 = scmp.lt.s32.totalorder %s5351_s15, %s5351_s15 }
  0x2f   : > { %p5060_p0 = scmp.ne.s32.totalorder %s5351_s15, %s5059_s11  ;;  %p5068_p8 = scmp.lt.s32.totalorder %s5059_s11, %s5059_s11 }
  0x31   : > { %p5062_p1 = pnand %p5060_p0, %p5371_p7  ;;  %p5069_p9 = por %p5068_p8, %p5067_p6 }
  0x33   : > { %p5063_p4 = pneg %p5062_p1 }
  0x35   : > { %p5070_p10 = pnand %p5069_p9, %p5063_p4 }
  0x37   : > { %5073 = shalt.err (!%p5070_p10)
}
  0x38   : > { %4537 = dma.hbm_to_vmem [thread:$0]  (!%p5355_p5), %s6111_s4, 64, %s5351_s15, [#allocation8]  }
  0x39   : > { %s5074_s14 = scalar_lea.hbm %s6113_s6, 64 }
  0x3a   : > { %p5075_p11 = scmp.ne.s32.totalorder %s6113_s6, %s5074_s14  ;;  %p5081_p0 = scmp.lt.u32.totalorder %s5074_s14, %s6113_s6 }
  0x3c   : > { %p5077_p12 = pnand %p5075_p11, %p5371_p7 }
  0x3e   : > { %p5078_p13 = pneg %p5077_p12 }
  0x40   : > { %p5083_p1 = pnand %p5081_p0, %p5078_p13 }
  0x42   : > { %5086 = shalt.err (!%p5083_p1)
}
  0x43   : > { %s5087_s15 = scalar_lea.vmem %s5359_s17, 64  ;;  %p5095_p9 = scmp.lt.s32.totalorder %s5359_s17, %s5359_s17 }
  0x44   : > { %p5088_p4 = scmp.ne.s32.totalorder %s5359_s17, %s5087_s15  ;;  %p5096_p10 = scmp.lt.s32.totalorder %s5087_s15, %s5087_s15 }
  0x46   : > { %p5090_p6 = pnand %p5088_p4, %p5371_p7  ;;  %p5097_p11 = por %p5096_p10, %p5095_p9 }
  0x48   : > { %p5091_p8 = pneg %p5090_p6 }
  0x4a   : > { %p5098_p12 = pnand %p5097_p11, %p5091_p8 }
  0x4c   : > { %5101 = shalt.err (!%p5098_p12)
}
  0x4d   : > { %4543 = dma.hbm_to_vmem [thread:$0]  (!%p5355_p5), %s6113_s6, 64, %s5359_s17, [#allocation11]  }
  0x4e   : > { %s5102_s27 = scalar_lea.hbm %s6108_s1, 4096 }
  0x4f   : > { %p5103_p13 = scmp.ne.s32.totalorder %s6108_s1, %s5102_s27  ;;  %p5109_p4 = scmp.lt.u32.totalorder %s5102_s27, %s6108_s1 }
  0x51   : > { %p5105_p0 = pnand %p5103_p13, %p5371_p7 }
  0x53   : > { %p5106_p1 = pneg %p5105_p0 }
  0x55   : > { %p5111_p6 = pnand %p5109_p4, %p5106_p1 }
  0x57   : > { %5114 = shalt.err (!%p5111_p6)
}
  0x58   : > { %s5115_s17 = scalar_lea.vmem %s5361_s20, 4096  ;;  %p5123_p11 = scmp.lt.s32.totalorder %s5361_s20, %s5361_s20 }
  0x59   : > { %p5116_p8 = scmp.ne.s32.totalorder %s5361_s20, %s5115_s17  ;;  %p5124_p12 = scmp.lt.s32.totalorder %s5115_s17, %s5115_s17 }
  0x5b   : > { %p5118_p9 = pnand %p5116_p8, %p5371_p7  ;;  %p5125_p13 = por %p5124_p12, %p5123_p11 }
  0x5d   : > { %p5119_p10 = pneg %p5118_p9 }
  0x5f   : > { %p5126_p0 = pnand %p5125_p13, %p5119_p10 }
  0x61   : > { %5129 = shalt.err (!%p5126_p0)
}
  0x62   : > { %s5274_s16 = smov 128   ;;  %s5275_s19 = smov 8  }
  0x63   : > { %4528 = dma.hbm_to_vmem [thread:$0]  (!%p5355_p5), %s6108_s1, 4096, %s5361_s20, [#allocation3], %s5274_s16, %s5274_s16, %s5275_s19  }
  0x64   : > { %s5276_s15 = smov [#allocation6]   ;;  %s5130_s11 = scalar_lea.hbm %s6110_s3, 8192 }
  0x65   : > { %s285_s23 = sshll.u32 %s5276_s15, 4  ;;  %p5131_p1 = scmp.ne.s32.totalorder %s6110_s3, %s5130_s11  ;;  %s286_s23 = int_to_ptr.vmem [resolvable:$true] %s285_s23 }
  0x66   : > { %p5137_p8 = scmp.lt.u32.totalorder %s5130_s11, %s6110_s3 }
  0x67   : > { %p5133_p4 = pnand %p5131_p1, %p5371_p7 }
  0x69   : > { %p5134_p6 = pneg %p5133_p4 }
  0x6b   : > { %p5139_p9 = pnand %p5137_p8, %p5134_p6 }
  0x6d   : > { %5142 = shalt.err (!%p5139_p9)
}
  0x6e   : > { %s5143_s20 = scalar_lea.vmem %s286_s23, 8192  ;;  %p5151_p13 = scmp.lt.s32.totalorder %s286_s23, %s286_s23 }
  0x6f   : > { %p5144_p10 = scmp.ne.s32.totalorder %s286_s23, %s5143_s20  ;;  %p5152_p0 = scmp.lt.s32.totalorder %s5143_s20, %s5143_s20 }
  0x71   : > { %p5146_p11 = pnand %p5144_p10, %p5371_p7  ;;  %p5153_p2 = por %p5152_p0, %p5151_p13 }
  0x73   : > { %p5147_p12 = pneg %p5146_p11 }
  0x75   : > { %p5154_p3 = pnand %p5153_p2, %p5147_p12 }
  0x77   : > { %5157 = shalt.err (!%p5154_p3)
}
  0x78   : > { %s5277_s14 = smov 256   ;;  %s5278_s17 = smov 16  }
  0x79   : > { %4534 = dma.hbm_to_vmem [thread:$0]  (!%p5355_p5), %s6110_s3, 8192, %s286_s23, [#allocation5], %s5277_s14, %s5277_s14, %s5278_s17  }
  0x7a   : > { %s5279_s15 = smov [#allocation9]   ;;  %s5280_s25 = smov [#allocation12]  }
  0x7b   : > { %s309_s24 = sshll.u32 %s5279_s15, 4  ;;  %s333_s11 = sshll.u32 %s5280_s25, 4  ;;  %s310_s24 = int_to_ptr.vmem [resolvable:$true] %s309_s24  ;;  %s5482_s11 = int_to_ptr.vmem [resolvable:$true] %s333_s11 }
  0x7c   : > { %s5158_s29 = scalar_lea.hbm %s6112_s5, 8192 }
  0x7d   : > { %p5159_p2 = scmp.ne.s32.totalorder %s6112_s5, %s5158_s29  ;;  %p5165_p4 = scmp.lt.u32.totalorder %s5158_s29, %s6112_s5 }
  0x7f   : > { %p5161_p3 = pnand %p5159_p2, %p5371_p7 }
  0x81   : > { %p5162_p1 = pneg %p5161_p3 }
  0x83   : > { %p5167_p6 = pnand %p5165_p4, %p5162_p1 }
  0x85   : > { %5170 = shalt.err (!%p5167_p6)
}
  0x86   : > { %s5171_s22 = scalar_lea.vmem %s310_s24, 8192  ;;  %p5179_p11 = scmp.lt.s32.totalorder %s310_s24, %s310_s24 }
  0x87   : > { %p5172_p8 = scmp.ne.s32.totalorder %s310_s24, %s5171_s22  ;;  %p5180_p12 = scmp.lt.s32.totalorder %s5171_s22, %s5171_s22 }
  0x89   : > { %p5174_p9 = pnand %p5172_p8, %p5371_p7  ;;  %p5181_p13 = por %p5180_p12, %p5179_p11 }
  0x8b   : > { %p5175_p10 = pneg %p5174_p9 }
  0x8d   : > { %p5182_p0 = pnand %p5181_p13, %p5175_p10 }
  0x8f   : > { %5185 = shalt.err (!%p5182_p0)
}
  0x90   : > { %4540 = dma.hbm_to_vmem [thread:$0]  (!%p5355_p5), %s6112_s5, 8192, %s310_s24, [#allocation8], %s5277_s14, %s5277_s14, %s5278_s17  }
  0x91   : > { %s5186_s29 = scalar_lea.hbm %s6114_s7, 4096 }
  0x92   : > { %p5187_p2 = scmp.ne.s32.totalorder %s6114_s7, %s5186_s29  ;;  %p5193_p4 = scmp.lt.u32.totalorder %s5186_s29, %s6114_s7 }
  0x94   : > { %p5189_p3 = pnand %p5187_p2, %p5371_p7 }
  0x96   : > { %p5190_p1 = pneg %p5189_p3 }
  0x98   : > { %p5195_p6 = pnand %p5193_p4, %p5190_p1 }
  0x9a   : > { %5198 = shalt.err (!%p5195_p6)
}
  0x9b   : > { %s5199_s14 = scalar_lea.vmem %s5482_s11, 4096  ;;  %p5207_p11 = scmp.lt.s32.totalorder %s5482_s11, %s5482_s11 }
  0x9c   : > { %p5200_p8 = scmp.ne.s32.totalorder %s5482_s11, %s5199_s14  ;;  %p5208_p12 = scmp.lt.s32.totalorder %s5199_s14, %s5199_s14 }
  0x9e   : > { %p5202_p9 = pnand %p5200_p8, %p5371_p7  ;;  %p5209_p13 = por %p5208_p12, %p5207_p11 }
  0xa0   : > { %p5203_p10 = pneg %p5202_p9 }
  0xa2   : > { %p5210_p0 = pnand %p5209_p13, %p5203_p10 }
  0xa4   : > { %5213 = shalt.err (!%p5210_p0)
}
  0xa5   : > { %4546 = dma.hbm_to_vmem [thread:$0]  (!%p5355_p5), %s6114_s7, 4096, %s5482_s11, [#allocation11], %s5274_s16, %s5274_s16, %s5275_s19  }
  0xa6   : > { %s5281_s22 = smov [#allocation13]   ;;  %s5214_s28 = scalar_lea.hbm %s6115_s8, 32 }
  0xa7   : > { %s347_s15 = sshll.u32 %s5281_s22, 4  ;;  %p5215_p2 = scmp.ne.s32.totalorder %s6115_s8, %s5214_s28  ;;  %s348_s15 = int_to_ptr.vmem [resolvable:$true] %s347_s15 }
  0xa8   : > { %p5221_p4 = scmp.lt.u32.totalorder %s5214_s28, %s6115_s8 }
  0xa9   : > { %p5217_p3 = pnand %p5215_p2, %p5371_p7 }
  0xab   : > { %p5218_p1 = pneg %p5217_p3 }
  0xad   : > { %p5223_p6 = pnand %p5221_p4, %p5218_p1 }
  0xaf   : > { %5226 = shalt.err (!%p5223_p6)
}
  0xb0   : > { %s5227_s16 = scalar_lea.vmem %s348_s15, 32  ;;  %p5235_p11 = scmp.lt.s32.totalorder %s348_s15, %s348_s15 }
  0xb1   : > { %p5228_p8 = scmp.ne.s32.totalorder %s348_s15, %s5227_s16  ;;  %p5236_p12 = scmp.lt.s32.totalorder %s5227_s16, %s5227_s16 }
  0xb3   : > { %p5230_p9 = pnand %p5228_p8, %p5371_p7  ;;  %p5237_p13 = por %p5236_p12, %p5235_p11 }
  0xb5   : > { %p5231_p10 = pneg %p5230_p9 }
  0xb7   : > { %p5238_p0 = pnand %p5237_p13, %p5231_p10 }
  0xb9   : > { %5241 = shalt.err (!%p5238_p0)
}
  0xba   : > { %4549 = dma.hbm_to_vmem [thread:$0]  (!%p5355_p5), %s6115_s8, 32, %s348_s15, [#allocation14]  }
  0xbb   : > { %p6129_p2 = scmp.ne.s32.totalorder %s6126_s13, 0 }
  0xbd   : > { %368 = sbr.rel (%p6129_p2) target bundleno = 1528 (0x5f8), region = 56 }
  0xc4   : > { %p6130_p3 = scmp.eq.s32.totalorder %s5338_s12, 0 }
  0xc6   : > { %5247 = dma.done.wait (%p6130_p3), [#allocation3], 4096   ;;  %p6131_p7 = pmov %p6130_p3 }
  0xc7   : > { %p6132_p1 = pmov %p6130_p3 }
  0xc8   : > { %5249 = vsyncadd (%p6131_p7), [#allocation3], 4294963200 }
  0xc9   : > { %5251 = dma.done.wait (%p6132_p1), [#allocation5], 8224   ;;  %p6133_p4 = pmov %p6132_p1 }
  0xca   : > { %p6134_p6 = pmov %p6132_p1 }
  0xcb   : > { %5253 = vsyncadd (%p6133_p4), [#allocation5], 4294959072 }
  0xcc   : > { %5255 = dma.done.wait (%p6134_p6), [#allocation8], 8256   ;;  %p6135_p5 = pmov %p6132_p1 }
  0xcd   : > { %p6136_p8 = pmov %p6132_p1 }
  0xce   : > { %5257 = vsyncadd (%p6135_p5), [#allocation8], 4294959040 }
  0xcf   : > { %5259 = dma.done.wait (%p6136_p8), [#allocation11], 4160   ;;  %p6137_p9 = pmov %p6132_p1 }
  0xd0   : > { %p6138_p10 = pmov %p6132_p1 }
  0xd1   : > { %5261 = vsyncadd (%p6137_p9), [#allocation11], 4294963136 }
  0xd2   : > { %5263 = dma.done.wait (%p6138_p10), [#allocation14], 32   ;;  %p6139_p11 = pmov %p6132_p1 }
  0xd3   : > { %v4586_v0 = vld [vmem:[#allocation2 + $0x4] ss:$8 sps:$4 sm:$0xff]   ;;  %v4588_v1 = vld [vmem:[#allocation2] ss:$8 sps:$4 sm:$0xff]   ;;  %v4589_v2 = vld [vmem:[#allocation2 + $0x14] ss:$8 sps:$4 sm:$0xff]  }
  0xd4   : > { %5265 = vsyncadd (%p6139_p11), [#allocation14], 4294967264  ;;  %668 = vmatprep.subr.bf16.mxu0 %v4586_v0  ;;  %v4591_v3 = vld [vmem:[#allocation2 + $0x10] ss:$8 sps:$4 sm:$0xff]   ;;  %v4592_v4 = vld [vmem:[#allocation2 + $0x24] ss:$8 sps:$4 sm:$0xff]  }
  0xd5   : > { %669 = vmatpush1.bf16.msra.mxu0 %v4588_v1  ;;  %p432_p12 = scmp.lt.s32.totalorder %s5338_s12, 1  ;;  %v4594_v5 = vld [vmem:[#allocation2 + $0x20] ss:$8 sps:$4 sm:$0xff]   ;;  %v4595_v6 = vld [vmem:[#allocation2 + $0x34] ss:$8 sps:$4 sm:$0xff]  }
  0xd6   : > { %670 = vmatprep.subr.bf16.mxu0 %v4589_v2  ;;  %v4597_v7 = vld [vmem:[#allocation2 + $0x30] ss:$8 sps:$4 sm:$0xff]   ;;  %v4598_v8 = vld [vmem:[#allocation2 + $0x44] ss:$8 sps:$4 sm:$0xff]   ;;  %v4600_v9 = vld [vmem:[#allocation2 + $0x40] ss:$8 sps:$4 sm:$0xff]  }
  0xd7   : > { %s6151_s12 = smov (!%p432_p12, %s5338_s12), 1  ;;  %v4601_v10 = vld [vmem:[#allocation2 + $0x54] ss:$8 sps:$4 sm:$0xff]   ;;  %v4603_v11 = vld [vmem:[#allocation2 + $0x50] ss:$8 sps:$4 sm:$0xff]  }
  0xd8   : > { %s4491_s13 = smul.u32 112, %s6151_s12  ;;  %v4604_v12 = vld [vmem:[#allocation2 + $0x64] ss:$8 sps:$4 sm:$0xff]   ;;  %v4606_v16 = vld [vmem:[#allocation2 + $0x60] ss:$8 sps:$4 sm:$0xff]  }
  0xd9   : > { %671 = vmatpush1.bf16.msra.mxu0 %v4591_v3  ;;  %v4607_v17 = vld [vmem:[#allocation2 + $0x74] ss:$8 sps:$4 sm:$0xff]   ;;  %v4609_v19 = vld [vmem:[#allocation2 + $0x70] ss:$8 sps:$4 sm:$0xff]   ;;  %v4610_v20 = vld [vmem:[#allocation2 + $0x84] ss:$8 sps:$4 sm:$0xff]  }
  0xda   : > { %672 = vmatprep.subr.bf16.mxu0 %v4592_v4  ;;  %s5576_s23 = scalar_lea.vmem %s6107_s0, %s4491_s13  ;;  %v4634_v18 = vld [vmem:[#allocation6 + $0x4] ss:$16 sps:$4 sm:$0xff]   ;;  %v4639_v21 = vld [vmem:[#allocation6] ss:$16 sps:$4 sm:$0xff]   ;;  %v4638_v58 = vld [vmem:[#allocation6 + $0xc] ss:$16 sps:$4 sm:$0xff]  }
  0xdb   : > { %v443_v13 = vld [vmem:[%s5576_s23 + $0x8] sm:$0xff]  ;;  %v445_v14 = vld [vmem:[%s5576_s23 + $0x18] sm:$0xff]  ;;  %1181 = vmatprep.subr.bf16.mxu1 %v4634_v18  ;;  %v4645_v25 = vld [vmem:[#allocation6 + $0x20] ss:$16 sps:$4 sm:$0xff]   ;;  %s4492_s14 = smul.u32 448, %s6151_s12 }
  0xdc   : > { %v457_v15 = vpack.c.bf16 %v445_v14, %v443_v13  ;;  %v4640_v22 = vld [vmem:[#allocation6 + $0x24] ss:$16 sps:$4 sm:$0xff]   ;;  %1182 = vmatpush1.bf16.msra.mxu1 %v4639_v21  ;;  %v4651_v28 = vld [vmem:[#allocation6 + $0x40] ss:$16 sps:$4 sm:$0xff]   ;;  %v4636_v60 = vld [vmem:[#allocation6 + $0x8] ss:$16 sps:$4 sm:$0xff]  }
  0xdd   : > { %673 = vmatpush1.bf16.msra.mxu0 %v4594_v5  ;;  %v4612_v23 = vld [vmem:[#allocation2 + $0x80] ss:$8 sps:$4 sm:$0xff]   ;;  %v4613_v24 = vld [vmem:[#allocation2 + $0x94] ss:$8 sps:$4 sm:$0xff]   ;;  %1183 = vmatprep.subr.bf16.mxu1 %v4640_v22  ;;  %v4615_v27 = vld [vmem:[#allocation2 + $0x90] ss:$8 sps:$4 sm:$0xff]   ;;  %s5913_s24 = scalar_lea.vmem %s6116_s9, %s4492_s14 }
  0xde   : > { %674 = vmatprep.subr.bf16.mxu0 %v4595_v6  ;;  %700 = vmatprep.mubr.bf16.mxu0 %v457_v15  ;;  %v4646_v26 = vld [vmem:[#allocation6 + $0x44] ss:$16 sps:$4 sm:$0xff]   ;;  %v4657_v32 = vld [vmem:[#allocation6 + $0x60] ss:$16 sps:$4 sm:$0xff]   ;;  %v4644_v62 = vld [vmem:[#allocation6 + $0x2c] ss:$16 sps:$4 sm:$0xff]  }
  0xdf   : > { %v4652_v29 = vld [vmem:[#allocation6 + $0x64] ss:$16 sps:$4 sm:$0xff]   ;;  %v4663_v36 = vld [vmem:[#allocation6 + $0x80] ss:$16 sps:$4 sm:$0xff]   ;;  %v4642_v4 = vld [vmem:[#allocation6 + $0x28] ss:$16 sps:$4 sm:$0xff]  }
  0xe0   : > { %1184 = vmatpush1.bf16.msra.mxu1 %v4645_v25  ;;  %v4616_v30 = vld [vmem:[#allocation2 + $0xa4] ss:$8 sps:$4 sm:$0xff]   ;;  %v4618_v31 = vld [vmem:[#allocation2 + $0xa0] ss:$8 sps:$4 sm:$0xff]   ;;  %v4619_v34 = vld [vmem:[#allocation2 + $0xb4] ss:$8 sps:$4 sm:$0xff]  }
  0xe1   : > { %675 = vmatpush1.bf16.msra.mxu0 %v4597_v7  ;;  %1185 = vmatprep.subr.bf16.mxu1 %v4646_v26  ;;  %v4658_v33 = vld [vmem:[#allocation6 + $0x84] ss:$16 sps:$4 sm:$0xff]   ;;  %v4669_v40 = vld [vmem:[#allocation6 + $0xa0] ss:$16 sps:$4 sm:$0xff]   ;;  %v4654_v18 = vld [vmem:[#allocation6 + $0x68] ss:$16 sps:$4 sm:$0xff]  }
  0xe2   : > { %676 = vmatprep.subr.bf16.mxu0 %v4598_v8  ;;  %v4621_v35 = vld [vmem:[#allocation2 + $0xb0] ss:$8 sps:$4 sm:$0xff]   ;;  %v4622_v38 = vld [vmem:[#allocation2 + $0xc4] ss:$8 sps:$4 sm:$0xff]   ;;  %v4624_v39 = vld [vmem:[#allocation2 + $0xc0] ss:$8 sps:$4 sm:$0xff]  }
  0xe3   : > { %v4664_v37 = vld [vmem:[#allocation6 + $0xa4] ss:$16 sps:$4 sm:$0xff]   ;;  %v4675_v44 = vld [vmem:[#allocation6 + $0xc0] ss:$16 sps:$4 sm:$0xff]   ;;  %v4650_v8 = vld [vmem:[#allocation6 + $0x4c] ss:$16 sps:$4 sm:$0xff]  }
  0xe4   : > { %1186 = vmatpush1.bf16.msra.mxu1 %v4651_v28  ;;  %v4670_v41 = vld [vmem:[#allocation6 + $0xc4] ss:$16 sps:$4 sm:$0xff]   ;;  %v4681_v48 = vld [vmem:[#allocation6 + $0xe0] ss:$16 sps:$4 sm:$0xff]   ;;  %v4660_v21 = vld [vmem:[#allocation6 + $0x88] ss:$16 sps:$4 sm:$0xff]  }
  0xe5   : > { %677 = vmatpush1.bf16.msra.mxu0 %v4600_v9  ;;  %1187 = vmatprep.subr.bf16.mxu1 %v4652_v29  ;;  %v4625_v42 = vld [vmem:[#allocation2 + $0xd4] ss:$8 sps:$4 sm:$0xff]   ;;  %v4627_v43 = vld [vmem:[#allocation2 + $0xd0] ss:$8 sps:$4 sm:$0xff]   ;;  %v4628_v46 = vld [vmem:[#allocation2 + $0xe4] ss:$8 sps:$4 sm:$0xff]  }
  0xe6   : > { %678 = vmatprep.subr.bf16.mxu0 %v4601_v10  ;;  %v4676_v45 = vld [vmem:[#allocation6 + $0xe4] ss:$16 sps:$4 sm:$0xff]   ;;  %v4687_v55 = vld [vmem:[#allocation6 + $0x100] ss:$16 sps:$4 sm:$0xff]   ;;  %v4648_v10 = vld [vmem:[#allocation6 + $0x48] ss:$16 sps:$4 sm:$0xff]  }
  0xe7   : > { %v4630_v47 = vld [vmem:[#allocation2 + $0xe0] ss:$8 sps:$4 sm:$0xff]   ;;  %v4631_v50 = vld [vmem:[#allocation2 + $0xf4] ss:$8 sps:$4 sm:$0xff]   ;;  %v4633_v51 = vld [vmem:[#allocation2 + $0xf0] ss:$8 sps:$4 sm:$0xff]  }
  0xe8   : > { %1188 = vmatpush1.bf16.msra.mxu1 %v4657_v32  ;;  %v4682_v49 = vld [vmem:[#allocation6 + $0x104] ss:$16 sps:$4 sm:$0xff]   ;;  %v4693_v59 = vld [vmem:[#allocation6 + $0x120] ss:$16 sps:$4 sm:$0xff]   ;;  %v4666_v26 = vld [vmem:[#allocation6 + $0xa8] ss:$16 sps:$4 sm:$0xff]  }
  0xe9   : > { %679 = vmatpush1.bf16.msra.mxu0 %v4603_v11  ;;  %1189 = vmatprep.subr.bf16.mxu1 %v4658_v33  ;;  %v442_v52 = vld [vmem:[%s5576_s23] sm:$0xff]  ;;  %v444_v53 = vld [vmem:[%s5576_s23 + $0x10] sm:$0xff]  ;;  %v447_v54 = vld [vmem:[%s5576_s23 + $0x28] sm:$0xff] }
  0xea   : > { %680 = vmatprep.subr.bf16.mxu0 %v4604_v12  ;;  %v4688_v56 = vld [vmem:[#allocation6 + $0x124] ss:$16 sps:$4 sm:$0xff]   ;;  %v456_v61 = vpack.c.bf16 %v444_v53, %v442_v52  ;;  %v4699_v1 = vld [vmem:[#allocation6 + $0x140] ss:$16 sps:$4 sm:$0xff]   ;;  %v4656_v12 = vld [vmem:[#allocation6 + $0x6c] ss:$16 sps:$4 sm:$0xff]  }
  0xeb   : > { %v449_v57 = vld [vmem:[%s5576_s23 + $0x38] sm:$0xff]  ;;  %v446_v2 = vld [vmem:[%s5576_s23 + $0x20] sm:$0xff]  ;;  %v448_v3 = vld [vmem:[%s5576_s23 + $0x30] sm:$0xff] }
  0xec   : > { %1190 = vmatpush1.bf16.msra.mxu1 %v4663_v36  ;;  %v4694_v63 = vld [vmem:[#allocation6 + $0x144] ss:$16 sps:$4 sm:$0xff]   ;;  %v459_v0 = vpack.c.bf16 %v449_v57, %v447_v54  ;;  %v4705_v9 = vld [vmem:[#allocation6 + $0x160] ss:$16 sps:$4 sm:$0xff]   ;;  %v458_v11 = vpack.c.bf16 %v448_v3, %v446_v2  ;;  %v4672_v28 = vld [vmem:[#allocation6 + $0xc8] ss:$16 sps:$4 sm:$0xff]  }
  0xed   : > { %681 = vmatpush1.bf16.msra.mxu0 %v4606_v16  ;;  %1191 = vmatprep.subr.bf16.mxu1 %v4664_v37  ;;  %v4700_v5 = vld [vmem:[#allocation6 + $0x164] ss:$16 sps:$4 sm:$0xff]   ;;  %v4711_v15 = vld [vmem:[#allocation6 + $0x180] ss:$16 sps:$4 sm:$0xff]   ;;  %v4686_v32 = vld [vmem:[#allocation6 + $0x10c] ss:$16 sps:$4 sm:$0xff]  }
  0xee   : > { %682 = vmatprep.subr.bf16.mxu0 %v4607_v17  ;;  %v451_v6 = vld [vmem:[%s5576_s23 + $0x48] sm:$0xff]  ;;  %v453_v7 = vld [vmem:[%s5576_s23 + $0x58] sm:$0xff]  ;;  %v450_v16 = vld [vmem:[%s5576_s23 + $0x40] sm:$0xff] }
  0xef   : > { %v4706_v13 = vld [vmem:[#allocation6 + $0x184] ss:$16 sps:$4 sm:$0xff]   ;;  %v461_v14 = vpack.c.bf16 %v453_v7, %v451_v6  ;;  %v4684_v33 = vld [vmem:[#allocation6 + $0x108] ss:$16 sps:$4 sm:$0xff]   ;;  %v4698_v36 = vld [vmem:[#allocation6 + $0x14c] ss:$16 sps:$4 sm:$0xff]  }
  0xf0   : > { %1192 = vmatpush1.bf16.msra.mxu1 %v4669_v40  ;;  %v452_v17 = vld [vmem:[%s5576_s23 + $0x50] sm:$0xff]  ;;  %v454_v25 = vld [vmem:[%s5576_s23 + $0x60] sm:$0xff]  ;;  %v4696_v37 = vld [vmem:[#allocation6 + $0x148] ss:$16 sps:$4 sm:$0xff]  }
  0xf1   : > { %683 = vmatpush1.bf16.msra.mxu0 %v4609_v19  ;;  %1193 = vmatprep.subr.bf16.mxu1 %v4670_v41  ;;  %v455_v19 = vld [vmem:[%s5576_s23 + $0x68] sm:$0xff]  ;;  %v460_v22 = vpack.c.bf16 %v452_v17, %v450_v16  ;;  %v462_v29 = vpack.c.bf16 %v454_v25, %v454_v25  ;;  %v4729_v53 = vld [vmem:[#allocation6 + $0x1e0] ss:$16 sps:$4 sm:$0xff]  }
  0xf2   : > { %684 = vmatprep.subr.bf16.mxu0 %v4610_v20  ;;  %v4662_v20 = vld [vmem:[#allocation6 + $0x8c] ss:$16 sps:$4 sm:$0xff]   ;;  %v4708_v41 = vld [vmem:[#allocation6 + $0x188] ss:$16 sps:$4 sm:$0xff]  }
  0xf3   : > { %v4710_v40 = vld [vmem:[#allocation6 + $0x18c] ss:$16 sps:$4 sm:$0xff]   ;;  %v4726_v52 = vld [vmem:[#allocation6 + $0x1e8] ss:$16 sps:$4 sm:$0xff]  }
  0xf4   : > { %1194 = vmatpush1.bf16.msra.mxu1 %v4675_v44  ;;  %v4714_v44 = vld [vmem:[#allocation6 + $0x1a8] ss:$16 sps:$4 sm:$0xff]  }
  0xf5   : > { %685 = vmatpush1.bf16.msra.mxu0 %v4612_v23  ;;  %1195 = vmatprep.subr.bf16.mxu1 %v4676_v45  ;;  %v4668_v23 = vld [vmem:[#allocation6 + $0xac] ss:$16 sps:$4 sm:$0xff]   ;;  %v4717_v45 = vld [vmem:[#allocation6 + $0x1a0] ss:$16 sps:$4 sm:$0xff]   ;;  %v4732_v54 = vld [vmem:[#allocation9 + $0x4] ss:$16 sps:$4 sm:$0xff]  }
  0xf6   : > { %686 = vmatprep.subr.bf16.mxu0 %v4613_v24  ;;  %v463_v24 = vpack.c.bf16 %v455_v19, %v455_v19  ;;  %v4730_v19 = vld [vmem:[#allocation9] ss:$16 sps:$4 sm:$0xff]  }
  0xf8   : > { %1196 = vmatpush1.bf16.msra.mxu1 %v4681_v48  ;;  %v4720_v48 = vld [vmem:[#allocation6 + $0x1c8] ss:$16 sps:$4 sm:$0xff]  }
  0xf9   : > { %687 = vmatpush1.bf16.msra.mxu0 %v4615_v27  ;;  %1197 = vmatprep.subr.bf16.mxu1 %v4682_v49  ;;  %v4674_v27 = vld [vmem:[#allocation6 + $0xcc] ss:$16 sps:$4 sm:$0xff]   ;;  %v4723_v49 = vld [vmem:[#allocation6 + $0x1c0] ss:$16 sps:$4 sm:$0xff]  }
  0xfa   : > { %688 = vmatprep.subr.bf16.mxu0 %v4616_v30  ;;  %v4680_v30 = vld [vmem:[#allocation6 + $0xec] ss:$16 sps:$4 sm:$0xff]  }
  0xfc   : > { %1198 = vmatpush1.bf16.msra.mxu1 %v4687_v55  ;;  %v4735_v55 = vld [vmem:[#allocation9 + $0xc] ss:$16 sps:$4 sm:$0xff]  }
  0xfd   : > { %689 = vmatpush1.bf16.msra.mxu0 %v4618_v31  ;;  %1199 = vmatprep.subr.bf16.mxu1 %v4688_v56  ;;  %v4678_v31 = vld [vmem:[#allocation6 + $0xe8] ss:$16 sps:$4 sm:$0xff]   ;;  %v498_v56 = vlaneseq }
  0xfe   : > { %690 = vmatprep.subr.bf16.mxu0 %v4619_v34  ;;  %v4692_v34 = vld [vmem:[#allocation6 + $0x12c] ss:$16 sps:$4 sm:$0xff]  }
  0xff   : > { %v5592_v57 = vshrl.u32 %v498_v56, 7 }
 0x100   : > { %1200 = vmatpush1.bf16.msra.mxu1 %v4693_v59  ;;  %v496_v59 = vld [vmem:[#allocation4] sm:$0x3] }
 0x101   : > { %691 = vmatpush1.bf16.msra.mxu0 %v4621_v35  ;;  %1201 = vmatprep.subr.bf16.mxu1 %v4694_v63  ;;  %v4690_v35 = vld [vmem:[#allocation6 + $0x128] ss:$16 sps:$4 sm:$0xff]  }
 0x102   : > { %692 = vmatprep.subr.bf16.mxu0 %v4622_v38  ;;  %v4704_v38 = vld [vmem:[#allocation6 + $0x16c] ss:$16 sps:$4 sm:$0xff]  }
 0x104   : > { %1202 = vmatpush1.bf16.msra.mxu1 %v4699_v1 }
 0x105   : > { %693 = vmatpush1.bf16.msra.mxu0 %v4624_v39  ;;  %1203 = vmatprep.subr.bf16.mxu1 %v4700_v5  ;;  %v4702_v39 = vld [vmem:[#allocation6 + $0x168] ss:$16 sps:$4 sm:$0xff]  }
 0x106   : > { %694 = vmatprep.subr.bf16.mxu0 %v4625_v42  ;;  %v4712_v42 = vld [vmem:[#allocation6 + $0x1a4] ss:$16 sps:$4 sm:$0xff]  }
 0x108   : > { %1204 = vmatpush1.bf16.msra.mxu1 %v4705_v9 }
 0x109   : > { %695 = vmatpush1.bf16.msra.mxu0 %v4627_v43  ;;  %1205 = vmatprep.subr.bf16.mxu1 %v4706_v13  ;;  %v4716_v43 = vld [vmem:[#allocation6 + $0x1ac] ss:$16 sps:$4 sm:$0xff]  }
 0x10a   : > { %696 = vmatprep.subr.bf16.mxu0 %v4628_v46  ;;  %v4718_v46 = vld [vmem:[#allocation6 + $0x1c4] ss:$16 sps:$4 sm:$0xff]  }
 0x10c   : > { %1206 = vmatpush1.bf16.msra.mxu1 %v4711_v15 }
 0x10d   : > { %697 = vmatpush1.bf16.msra.mxu0 %v4630_v47  ;;  %1207 = vmatprep.subr.bf16.mxu1 %v4712_v42  ;;  %v4722_v47 = vld [vmem:[#allocation6 + $0x1cc] ss:$16 sps:$4 sm:$0xff]  }
 0x10e   : > { %698 = vmatprep.subr.bf16.mxu0 %v4631_v50  ;;  %v4724_v50 = vld [vmem:[#allocation6 + $0x1e4] ss:$16 sps:$4 sm:$0xff]  }
 0x110   : > { %1208 = vmatpush1.bf16.msra.mxu1 %v4717_v45  ;;  %v4742_v45 = vld [vmem:[#allocation9 + $0x40] ss:$16 sps:$4 sm:$0xff]  }
 0x111   : > { %699 = vmatpush1.bf16.msra.mxu0 %v4633_v51  ;;  %1209 = vmatprep.subr.bf16.mxu1 %v4718_v46  ;;  %v4728_v51 = vld [vmem:[#allocation6 + $0x1ec] ss:$16 sps:$4 sm:$0xff]  }
 0x112   : > { %1252 = vmatprep.subr.bf16.mxu0 %v4638_v58  ;;  %v5595_v58 = vsub.s32 0, %v5592_v57 }
 0x114   : > { %701 = vmatmul.mubr.bf16.vlgmr.msra.gmra.mrb[0].mxu0 %v456_v61  ;;  %1210 = vmatpush1.bf16.msra.mxu1 %v4723_v49  ;;  %6140 = vst [vmem:[#allocation20_spill] sm:$0xff] %v5595_v58  ;;  %v5601_v61 = vrot.slane %v496_v59, %v5595_v58  ;;  %v4745_v49 = vld [vmem:[#allocation9 + $0x48] ss:$16 sps:$4 sm:$0xff]  }
 0x115   : > { %710 = vmatprep.mubr.bf16.mxu0 %v459_v0  ;;  %1253 = vmatpush1.bf16.msra.mxu0 %v4636_v60  ;;  %v5598_v60 = vsub.s32 1, %v5592_v57 }
 0x116   : > { %1254 = vmatprep.subr.bf16.mxu0 %v4644_v62  ;;  %1211 = vmatprep.subr.bf16.mxu1 %v4724_v50  ;;  %v4750_v50 = vld [vmem:[#allocation9 + $0x64] ss:$16 sps:$4 sm:$0xff]  }
 0x117   : > { %6141 = vst [vmem:[#allocation21_spill] sm:$0xff] %v5598_v60  ;;  %v5604_v62 = vrot.slane %v496_v59, %v5598_v60 }
 0x118   : > { %1212 = vmatpush1.bf16.msra.mxu1 %v4729_v53 }
 0x119   : > { %1255 = vmatpush1.bf16.msra.mxu0 %v4642_v4  ;;  %1793 = vmatprep.subr.bf16.mxu1 %v4732_v54  ;;  %v4753_v54 = vld [vmem:[#allocation9 + $0x6c] ss:$16 sps:$4 sm:$0xff]  }
 0x11a   : > { %1256 = vmatprep.subr.bf16.mxu0 %v4650_v8 }
 0x11c   : > { %711 = vmatmul.mubr.bf16.gmra.mrb[4].mxu0 %v458_v11 }
 0x11d   : > { %720 = vmatprep.mubr.bf16.mxu0 %v461_v14  ;;  %1257 = vmatpush1.bf16.msra.mxu0 %v4648_v10 }
 0x11e   : > { %1258 = vmatprep.subr.bf16.mxu0 %v4656_v12 }
 0x121   : > { %1259 = vmatpush1.bf16.msra.mxu0 %v4654_v18 }
 0x122   : > { %1260 = vmatprep.subr.bf16.mxu0 %v4662_v20 }
 0x124   : > { %721 = vmatmul.mubr.bf16.gmra.mrb[8].mxu0 %v460_v22 }
 0x125   : > { %730 = vmatprep.mubr.bf16.mxu0 %v463_v24  ;;  %1261 = vmatpush1.bf16.msra.mxu0 %v4660_v21  ;;  %v4738_v24 = vld [vmem:[#allocation9 + $0x24] ss:$16 sps:$4 sm:$0xff]  }
 0x126   : > { %1262 = vmatprep.subr.bf16.mxu0 %v4668_v23  ;;  %v4733_v23 = vld [vmem:[#allocation9 + $0x8] ss:$16 sps:$4 sm:$0xff]  }
 0x129   : > { %1263 = vmatpush1.bf16.msra.mxu0 %v4666_v26 }
 0x12a   : > { %1264 = vmatprep.subr.bf16.mxu0 %v4674_v27 }
 0x12c   : > { %731 = vmatmul.mubr.bf16.gmra.mrb[12].mxu0 %v462_v29 }
 0x12d   : > { %1265 = vmatpush1.bf16.msra.mxu0 %v4672_v28  ;;  %v4741_v28 = vld [vmem:[#allocation9 + $0x2c] ss:$16 sps:$4 sm:$0xff]  }
 0x12e   : > { %1266 = vmatprep.subr.bf16.mxu0 %v4680_v30 }
 0x131   : > { %1267 = vmatpush1.bf16.msra.mxu0 %v4678_v31 }
 0x132   : > { %1268 = vmatprep.subr.bf16.mxu0 %v4686_v32 }
 0x135   : > { %1269 = vmatpush1.bf16.msra.mxu0 %v4684_v33 }
 0x136   : > { %1270 = vmatprep.subr.bf16.mxu0 %v4692_v34 }
 0x139   : > { %1271 = vmatpush1.bf16.msra.mxu0 %v4690_v35  ;;  %v4736_v35 = vld [vmem:[#allocation9 + $0x20] ss:$16 sps:$4 sm:$0xff]  }
 0x13a   : > { %1272 = vmatprep.subr.bf16.mxu0 %v4698_v36  ;;  %v4739_v36 = vld [vmem:[#allocation9 + $0x28] ss:$16 sps:$4 sm:$0xff]  }
 0x13d   : > { %1273 = vmatpush1.bf16.msra.mxu0 %v4696_v37 }
 0x13e   : > { %1274 = vmatprep.subr.bf16.mxu0 %v4704_v38  ;;  %v4744_v38 = vld [vmem:[#allocation9 + $0x44] ss:$16 sps:$4 sm:$0xff]  }
 0x141   : > { %1275 = vmatpush1.bf16.msra.mxu0 %v4702_v39  ;;  %v4747_v39 = vld [vmem:[#allocation9 + $0x4c] ss:$16 sps:$4 sm:$0xff]  }
 0x142   : > { %1276 = vmatprep.subr.bf16.mxu0 %v4710_v40 }
 0x145   : > { %1277 = vmatpush1.bf16.msra.mxu0 %v4708_v41 }
 0x146   : > { %1278 = vmatprep.subr.bf16.mxu0 %v4716_v43 }
 0x149   : > { %1279 = vmatpush1.bf16.msra.mxu0 %v4714_v44 }
 0x14a   : > { %1280 = vmatprep.subr.bf16.mxu0 %v4722_v47 }
 0x14d   : > { %1281 = vmatpush1.bf16.msra.mxu0 %v4720_v48 }
 0x14e   : > { %1282 = vmatprep.subr.bf16.mxu0 %v4728_v51 }
 0x151   : > { %1283 = vmatpush1.bf16.msra.mxu0 %v4726_v52 }
 0x152   : > { %1864 = vmatprep.subr.bf16.mxu0 %v4735_v55 }
 0x1e7   : > { %v702_v63 = vpop.f32.mrb[0].mxu0 }
 0x1e8   : > { %v703_v0 = vadd.f32 %v702_v63, %v5601_v61  ;;  %v704_v1 = vpop.f32.mrb[1].mxu0 }
 0x1e9   : > { %v705_v2 = vadd.f32 %v704_v1, %v5604_v62  ;;  %v706_v3 = vpop.f32.mrb[2].mxu0 }
 0x1ea   : > { %v739_v4 = vmul.f32 0.01, %v703_v0  ;;  %v707_v5 = vadd.f32 %v706_v3, %v5601_v61  ;;  %v708_v6 = vpop.f32.mrb[3].mxu0  ;;  %v4751_v3 = vld [vmem:[#allocation9 + $0x68] ss:$16 sps:$4 sm:$0xff]  }
 0x1eb   : > { %v740_v7 = vmul.f32 0.01, %v705_v2  ;;  %v709_v8 = vadd.f32 %v708_v6, %v5604_v62  ;;  %v4759_v6 = vld [vmem:[#allocation9 + $0x8c] ss:$16 sps:$4 sm:$0xff]  }
 0x1ec   : > { %v741_v9 = vmul.f32 0.01, %v707_v5  ;;  %v753_v11 = vmax.f32 %v703_v0, %v739_v4 }
 0x1ed   : > { %v742_v10 = vmul.f32 0.01, %v709_v8  ;;  %v754_v13 = vmax.f32 %v705_v2, %v740_v7  ;;  %v4748_v2 = vld [vmem:[#allocation9 + $0x60] ss:$16 sps:$4 sm:$0xff]  }
 0x1ee   : > { %v755_v12 = vmax.f32 %v707_v5, %v741_v9  ;;  %v4756_v5 = vld [vmem:[#allocation9 + $0x84] ss:$16 sps:$4 sm:$0xff]  }
 0x1ef   : > { %v756_v14 = vmax.f32 %v709_v8, %v742_v10  ;;  %v712_v15 = vpop.f32.mrb[4].mxu0 }
 0x1f0   : > { %v713_v16 = vadd.f32 %v712_v15, %v5601_v61  ;;  %v714_v17 = vpop.f32.mrb[5].mxu0  ;;  %v767_v18 = vpack.c.bf16 %v755_v12, %v753_v11  ;;  %v4754_v12 = vld [vmem:[#allocation9 + $0x80] ss:$16 sps:$4 sm:$0xff]  }
 0x1f1   : > { %v715_v20 = vadd.f32 %v714_v17, %v5604_v62  ;;  %v716_v21 = vpop.f32.mrb[6].mxu0  ;;  %v768_v22 = vpack.c.bf16 %v756_v14, %v754_v13  ;;  %v4762_v17 = vld [vmem:[#allocation9 + $0xa4] ss:$16 sps:$4 sm:$0xff]  }
 0x1f2   : > { %v743_v25 = vmul.f32 0.01, %v713_v16  ;;  %v717_v26 = vadd.f32 %v716_v21, %v5601_v61  ;;  %v718_v27 = vpop.f32.mrb[7].mxu0 }
 0x1f3   : > { %v744_v29 = vmul.f32 0.01, %v715_v20  ;;  %v719_v30 = vadd.f32 %v718_v27, %v5604_v62  ;;  %1213 = vmatprep.mubr.bf16.mxu1 %v768_v22  ;;  %1284 = vmatprep.mubr.bf16.mxu0 %v768_v22 }
 0x1f4   : > { %v757_v31 = vmax.f32 %v713_v16, %v743_v25  ;;  %v745_v32 = vmul.f32 0.01, %v717_v26  ;;  %1214 = vmatmul.mubr.bf16.vlgmr.msra.gmra.mrb[0].mxu1 %v767_v18  ;;  %1285 = vmatmul.mubr.bf16.vlgmr.msra.gmra.mrb[16].mxu0 %v767_v18  ;;  %v4757_v16 = vld [vmem:[#allocation9 + $0x88] ss:$16 sps:$4 sm:$0xff]   ;;  %v4768_v25 = vld [vmem:[#allocation9 + $0xc4] ss:$16 sps:$4 sm:$0xff]  }
 0x1f5   : > { %v758_v33 = vmax.f32 %v715_v20, %v744_v29  ;;  %v746_v34 = vmul.f32 0.01, %v719_v30  ;;  %1794 = vmatpush1.bf16.msra.mxu1 %v4730_v19  ;;  %1865 = vmatpush1.bf16.msra.mxu0 %v4733_v23  ;;  %v4765_v20 = vld [vmem:[#allocation9 + $0xac] ss:$16 sps:$4 sm:$0xff]   ;;  %v4763_v23 = vld [vmem:[#allocation9 + $0xa8] ss:$16 sps:$4 sm:$0xff]  }
 0x1f6   : > { %v759_v37 = vmax.f32 %v717_v26, %v745_v32  ;;  %1795 = vmatprep.subr.bf16.mxu1 %v4738_v24  ;;  %1866 = vmatprep.subr.bf16.mxu0 %v4741_v28  ;;  %v4771_v26 = vld [vmem:[#allocation9 + $0xcc] ss:$16 sps:$4 sm:$0xff]   ;;  %v4766_v28 = vld [vmem:[#allocation9 + $0xc0] ss:$16 sps:$4 sm:$0xff]   ;;  %v4769_v29 = vld [vmem:[#allocation9 + $0xc8] ss:$16 sps:$4 sm:$0xff]  }
 0x1f7   : > { %v760_v40 = vmax.f32 %v719_v30, %v746_v34  ;;  %v722_v41 = vpop.f32.mrb[8].mxu0  ;;  %v4774_v30 = vld [vmem:[#allocation9 + $0xe4] ss:$16 sps:$4 sm:$0xff]   ;;  %v4772_v32 = vld [vmem:[#allocation9 + $0xe0] ss:$16 sps:$4 sm:$0xff]  }
 0x1f8   : > { %v723_v42 = vadd.f32 %v722_v41, %v5601_v61  ;;  %v724_v43 = vpop.f32.mrb[9].mxu0  ;;  %v769_v44 = vpack.c.bf16 %v759_v37, %v757_v31  ;;  %v4777_v31 = vld [vmem:[#allocation9 + $0xec] ss:$16 sps:$4 sm:$0xff]   ;;  %v4780_v34 = vld [vmem:[#allocation9 + $0x104] ss:$16 sps:$4 sm:$0xff]  }
 0x1f9   : > { %v725_v46 = vadd.f32 %v724_v43, %v5604_v62  ;;  %v726_v47 = vpop.f32.mrb[10].mxu0  ;;  %v770_v48 = vpack.c.bf16 %v760_v40, %v758_v33  ;;  %1796 = vmatpush1.bf16.msra.mxu1 %v4736_v35  ;;  %1867 = vmatpush1.bf16.msra.mxu0 %v4739_v36  ;;  %v4775_v33 = vld [vmem:[#allocation9 + $0xe8] ss:$16 sps:$4 sm:$0xff]   ;;  %v4783_v35 = vld [vmem:[#allocation9 + $0x10c] ss:$16 sps:$4 sm:$0xff]  }
 0x1fa   : > { %v747_v51 = vmul.f32 0.01, %v723_v42  ;;  %v727_v52 = vadd.f32 %v726_v47, %v5601_v61  ;;  %v728_v53 = vpop.f32.mrb[11].mxu0  ;;  %1797 = vmatprep.subr.bf16.mxu1 %v4744_v38  ;;  %1868 = vmatprep.subr.bf16.mxu0 %v4747_v39  ;;  %v4778_v36 = vld [vmem:[#allocation9 + $0x100] ss:$16 sps:$4 sm:$0xff]  }
 0x1fb   : > { %v748_v55 = vmul.f32 0.01, %v725_v46  ;;  %v729_v56 = vadd.f32 %v728_v53, %v5604_v62  ;;  %1223 = vmatprep.mubr.bf16.mxu1 %v770_v48  ;;  %1294 = vmatprep.mubr.bf16.mxu0 %v770_v48  ;;  %v4781_v37 = vld [vmem:[#allocation9 + $0x108] ss:$16 sps:$4 sm:$0xff]   ;;  %v4786_v38 = vld [vmem:[#allocation9 + $0x124] ss:$16 sps:$4 sm:$0xff]  }
 0x1fc   : > { %v761_v59 = vmax.f32 %v723_v42, %v747_v51  ;;  %v749_v63 = vmul.f32 0.01, %v727_v52  ;;  %1224 = vmatmul.mubr.bf16.gmra.mrb[4].mxu1 %v769_v44  ;;  %1295 = vmatmul.mubr.bf16.gmra.mrb[20].mxu0 %v769_v44  ;;  %v4789_v39 = vld [vmem:[#allocation9 + $0x12c] ss:$16 sps:$4 sm:$0xff]   ;;  %v4784_v40 = vld [vmem:[#allocation9 + $0x120] ss:$16 sps:$4 sm:$0xff]  }
 0x1fd   : > { %v762_v0 = vmax.f32 %v725_v46, %v748_v55  ;;  %v750_v1 = vmul.f32 0.01, %v729_v56  ;;  %1798 = vmatpush1.bf16.msra.mxu1 %v4742_v45  ;;  %1869 = vmatpush1.bf16.msra.mxu0 %v4745_v49  ;;  %v4787_v41 = vld [vmem:[#allocation9 + $0x128] ss:$16 sps:$4 sm:$0xff]   ;;  %v4792_v42 = vld [vmem:[#allocation9 + $0x144] ss:$16 sps:$4 sm:$0xff]  }
 0x1fe   : > { %v763_v4 = vmax.f32 %v727_v52, %v749_v63  ;;  %1799 = vmatprep.subr.bf16.mxu1 %v4750_v50  ;;  %1870 = vmatprep.subr.bf16.mxu0 %v4753_v54  ;;  %v4795_v43 = vld [vmem:[#allocation9 + $0x14c] ss:$16 sps:$4 sm:$0xff]   ;;  %v4790_v44 = vld [vmem:[#allocation9 + $0x140] ss:$16 sps:$4 sm:$0xff]   ;;  %v4793_v45 = vld [vmem:[#allocation9 + $0x148] ss:$16 sps:$4 sm:$0xff]  }
 0x1ff   : > { %v764_v7 = vmax.f32 %v729_v56, %v750_v1  ;;  %v732_v8 = vpop.f32.mrb[12].mxu0  ;;  %v4798_v46 = vld [vmem:[#allocation9 + $0x164] ss:$16 sps:$4 sm:$0xff]   ;;  %v4801_v47 = vld [vmem:[#allocation9 + $0x16c] ss:$16 sps:$4 sm:$0xff]  }
 0x200   : > { %v771_v9 = vpack.c.bf16 %v763_v4, %v761_v59  ;;  %v733_v10 = vadd.f32 %v732_v8, %v5601_v61  ;;  %v734_v11 = vpop.f32.mrb[13].mxu0  ;;  %v4796_v48 = vld [vmem:[#allocation9 + $0x160] ss:$16 sps:$4 sm:$0xff]   ;;  %v4799_v49 = vld [vmem:[#allocation9 + $0x168] ss:$16 sps:$4 sm:$0xff]   ;;  %v5621_v8 = vsub.s32 2, %v5592_v57 }
 0x201   : > { %v772_v13 = vpack.c.bf16 %v764_v7, %v762_v0  ;;  %v735_v14 = vadd.f32 %v734_v11, %v5604_v62  ;;  %v736_v15 = vpop.f32.mrb[14].mxu0  ;;  %1800 = vmatpush1.bf16.msra.mxu1 %v4748_v2  ;;  %1871 = vmatpush1.bf16.msra.mxu0 %v4751_v3  ;;  %v4760_v62 = vld [vmem:[#allocation9 + $0xa0] ss:$16 sps:$4 sm:$0xff]   ;;  %v4804_v50 = vld [vmem:[#allocation9 + $0x184] ss:$16 sps:$4 sm:$0xff]  }
 0x202   : > { %v751_v18 = vmul.f32 0.01, %v733_v10  ;;  %v737_v19 = vpop.f32.mrb[15].mxu0  ;;  %1801 = vmatprep.subr.bf16.mxu1 %v4756_v5  ;;  %1872 = vmatprep.subr.bf16.mxu0 %v4759_v6  ;;  %v4807_v51 = vld [vmem:[#allocation9 + $0x18c] ss:$16 sps:$4 sm:$0xff]  }
 0x203   : > { %1233 = vmatprep.mubr.bf16.mxu1 %v772_v13  ;;  %v752_v21 = vmul.f32 0.01, %v735_v14  ;;  %1304 = vmatprep.mubr.bf16.mxu0 %v772_v13  ;;  %v4802_v52 = vld [vmem:[#allocation9 + $0x180] ss:$16 sps:$4 sm:$0xff]   ;;  %v4805_v53 = vld [vmem:[#allocation9 + $0x188] ss:$16 sps:$4 sm:$0xff]  }
 0x204   : > { %1234 = vmatmul.mubr.bf16.gmra.mrb[8].mxu1 %v771_v9  ;;  %v765_v61 = vmax.f32 %v733_v10, %v751_v18  ;;  %1305 = vmatmul.mubr.bf16.gmra.mrb[24].mxu0 %v771_v9  ;;  %v4810_v54 = vld [vmem:[#allocation9 + $0x1a4] ss:$16 sps:$4 sm:$0xff]   ;;  %v4813_v55 = vld [vmem:[#allocation9 + $0x1ac] ss:$16 sps:$4 sm:$0xff]   ;;  %v4808_v56 = vld [vmem:[#allocation9 + $0x1a0] ss:$16 sps:$4 sm:$0xff]  }
 0x205   : > { %v766_v22 = vmax.f32 %v735_v14, %v752_v21  ;;  %1802 = vmatpush1.bf16.msra.mxu1 %v4754_v12  ;;  %1873 = vmatpush1.bf16.msra.mxu0 %v4757_v16  ;;  %v4811_v59 = vld [vmem:[#allocation9 + $0x1a8] ss:$16 sps:$4 sm:$0xff]   ;;  %v4816_v63 = vld [vmem:[#allocation9 + $0x1c4] ss:$16 sps:$4 sm:$0xff]   ;;  %v4819_v0 = vld [vmem:[#allocation9 + $0x1cc] ss:$16 sps:$4 sm:$0xff]  }
 0x206   : > { %1803 = vmatprep.subr.bf16.mxu1 %v4762_v17  ;;  %1874 = vmatprep.subr.bf16.mxu0 %v4765_v20  ;;  %v773_v27 = vpack.c.bf16 %v765_v61, %v765_v61  ;;  %v4814_v1 = vld [vmem:[#allocation9 + $0x1c0] ss:$16 sps:$4 sm:$0xff]   ;;  %v4817_v2 = vld [vmem:[#allocation9 + $0x1c8] ss:$16 sps:$4 sm:$0xff]   ;;  %v4822_v3 = vld [vmem:[#allocation9 + $0x1e4] ss:$16 sps:$4 sm:$0xff]  }
 0x207   : > { %v774_v24 = vpack.c.bf16 %v766_v22, %v766_v22  ;;  %v4825_v4 = vld [vmem:[#allocation9 + $0x1ec] ss:$16 sps:$4 sm:$0xff]   ;;  %v4820_v5 = vld [vmem:[#allocation9 + $0x1e0] ss:$16 sps:$4 sm:$0xff]   ;;  %v4823_v6 = vld [vmem:[#allocation9 + $0x1e8] ss:$16 sps:$4 sm:$0xff]  }
 0x208   : > { %v4828_v7 = vld [vmem:[#allocation12 + $0x4] ss:$8 sps:$4 sm:$0xff]   ;;  %v839_v9 = vld [vmem:[#allocation7] sm:$0xf]  ;;  %v5624_v10 = vsub.s32 3, %v5592_v57 }
 0x209   : > { %1243 = vmatprep.mubr.bf16.mxu1 %v774_v24  ;;  %1314 = vmatprep.mubr.bf16.mxu0 %v774_v24  ;;  %v5627_v11 = vrot.slane %v839_v9, %v5595_v58  ;;  %v5630_v12 = vrot.slane %v839_v9, %v5621_v8  ;;  %v5633_v13 = vrot.slane %v839_v9, %v5598_v60 }
 0x20a   : > { %1804 = vmatpush1.bf16.msra.mxu1 %v4760_v62  ;;  %1875 = vmatpush1.bf16.msra.mxu0 %v4763_v23  ;;  %v5636_v14 = vrot.slane %v839_v9, %v5624_v10 }
 0x20b   : > { %1805 = vmatprep.subr.bf16.mxu1 %v4768_v25  ;;  %1876 = vmatprep.subr.bf16.mxu0 %v4771_v26 }
 0x20c   : > { %1244 = vmatmul.mubr.bf16.gmra.mrb[12].mxu1 %v773_v27  ;;  %1315 = vmatmul.mubr.bf16.gmra.mrb[28].mxu0 %v773_v27 }
 0x20e   : > { %1806 = vmatpush1.bf16.msra.mxu1 %v4766_v28  ;;  %1877 = vmatpush1.bf16.msra.mxu0 %v4769_v29 }
 0x20f   : > { %1807 = vmatprep.subr.bf16.mxu1 %v4774_v30  ;;  %1878 = vmatprep.subr.bf16.mxu0 %v4777_v31 }
 0x212   : > { %1808 = vmatpush1.bf16.msra.mxu1 %v4772_v32  ;;  %1879 = vmatpush1.bf16.msra.mxu0 %v4775_v33 }
 0x213   : > { %1809 = vmatprep.subr.bf16.mxu1 %v4780_v34  ;;  %1880 = vmatprep.subr.bf16.mxu0 %v4783_v35 }
 0x216   : > { %1810 = vmatpush1.bf16.msra.mxu1 %v4778_v36  ;;  %1881 = vmatpush1.bf16.msra.mxu0 %v4781_v37 }
 0x217   : > { %1811 = vmatprep.subr.bf16.mxu1 %v4786_v38  ;;  %1882 = vmatprep.subr.bf16.mxu0 %v4789_v39 }
 0x21a   : > { %1812 = vmatpush1.bf16.msra.mxu1 %v4784_v40  ;;  %1883 = vmatpush1.bf16.msra.mxu0 %v4787_v41 }
 0x21b   : > { %1813 = vmatprep.subr.bf16.mxu1 %v4792_v42  ;;  %1884 = vmatprep.subr.bf16.mxu0 %v4795_v43 }
 0x21e   : > { %1814 = vmatpush1.bf16.msra.mxu1 %v4790_v44  ;;  %1885 = vmatpush1.bf16.msra.mxu0 %v4793_v45 }
 0x21f   : > { %1815 = vmatprep.subr.bf16.mxu1 %v4798_v46  ;;  %1886 = vmatprep.subr.bf16.mxu0 %v4801_v47 }
 0x222   : > { %1816 = vmatpush1.bf16.msra.mxu1 %v4796_v48  ;;  %1887 = vmatpush1.bf16.msra.mxu0 %v4799_v49 }
 0x223   : > { %1817 = vmatprep.subr.bf16.mxu1 %v4804_v50  ;;  %1888 = vmatprep.subr.bf16.mxu0 %v4807_v51 }
 0x226   : > { %1818 = vmatpush1.bf16.msra.mxu1 %v4802_v52  ;;  %1889 = vmatpush1.bf16.msra.mxu0 %v4805_v53 }
 0x227   : > { %1819 = vmatprep.subr.bf16.mxu1 %v4810_v54  ;;  %1890 = vmatprep.subr.bf16.mxu0 %v4813_v55 }
 0x22a   : > { %1820 = vmatpush1.bf16.msra.mxu1 %v4808_v56  ;;  %1891 = vmatpush1.bf16.msra.mxu0 %v4811_v59  ;;  %v4826_v59 = vld [vmem:[#allocation12] ss:$8 sps:$4 sm:$0xff]  }
 0x22b   : > { %1821 = vmatprep.subr.bf16.mxu1 %v4816_v63  ;;  %1892 = vmatprep.subr.bf16.mxu0 %v4819_v0  ;;  %v4831_v63 = vld [vmem:[#allocation12 + $0x14] ss:$8 sps:$4 sm:$0xff]  }
 0x22e   : > { %1822 = vmatpush1.bf16.msra.mxu1 %v4814_v1  ;;  %1893 = vmatpush1.bf16.msra.mxu0 %v4817_v2 }
 0x22f   : > { %1823 = vmatprep.subr.bf16.mxu1 %v4822_v3  ;;  %1894 = vmatprep.subr.bf16.mxu0 %v4825_v4 }
 0x232   : > { %1824 = vmatpush1.bf16.msra.mxu1 %v4820_v5  ;;  %1895 = vmatpush1.bf16.msra.mxu0 %v4823_v6 }
 0x233   : > { %2203 = vmatprep.subr.bf16.mxu1 %v4828_v7  ;;  %2528 = vmatprep.subr.bf16.mxu0 %v4828_v7 }
 0x2c7   : > { %v1215_v15 = vpop.f32.mrb[0].mxu1  ;;  %v1286_v16 = vpop.f32.mrb[16].mxu0 }
 0x2c8   : > { %v1216_v17 = vadd.f32 %v1215_v15, %v5627_v11  ;;  %v1287_v18 = vadd.f32 %v1286_v16, %v5630_v12  ;;  %v1217_v57 = vpop.f32.mrb[1].mxu1  ;;  %v1288_v19 = vpop.f32.mrb[17].mxu0 }
 0x2c9   : > { %v1218_v20 = vadd.f32 %v1217_v57, %v5633_v13  ;;  %v1289_v21 = vadd.f32 %v1288_v19, %v5636_v14  ;;  %v1219_v61 = vpop.f32.mrb[2].mxu1  ;;  %v1290_v22 = vpop.f32.mrb[18].mxu0 }
 0x2ca   : > { %v1323_v62 = vmul.f32 0.01, %v1216_v17  ;;  %v1325_v23 = vmul.f32 0.01, %v1287_v18  ;;  %v1220_v24 = vadd.f32 %v1219_v61, %v5627_v11  ;;  %v1291_v25 = vadd.f32 %v1290_v22, %v5630_v12  ;;  %v1221_v26 = vpop.f32.mrb[3].mxu1  ;;  %v1292_v27 = vpop.f32.mrb[19].mxu0 }
 0x2cb   : > { %v1324_v28 = vmul.f32 0.01, %v1218_v20  ;;  %v1326_v29 = vmul.f32 0.01, %v1289_v21  ;;  %v1222_v30 = vadd.f32 %v1221_v26, %v5633_v13  ;;  %v1293_v31 = vadd.f32 %v1292_v27, %v5636_v14  ;;  %v4829_v22 = vld [vmem:[#allocation12 + $0x10] ss:$8 sps:$4 sm:$0xff]  }
 0x2cc   : > { %v1327_v32 = vmul.f32 0.01, %v1220_v24  ;;  %v1329_v33 = vmul.f32 0.01, %v1291_v25  ;;  %v1351_v36 = vmax.f32 %v1216_v17, %v1323_v62  ;;  %v1353_v37 = vmax.f32 %v1287_v18, %v1325_v23 }
 0x2cd   : > { %v1328_v34 = vmul.f32 0.01, %v1222_v30  ;;  %v1330_v35 = vmul.f32 0.01, %v1293_v31  ;;  %v1352_v40 = vmax.f32 %v1218_v20, %v1324_v28  ;;  %v1354_v41 = vmax.f32 %v1289_v21, %v1326_v29 }
 0x2ce   : > { %v1355_v38 = vmax.f32 %v1220_v24, %v1327_v32  ;;  %v1357_v39 = vmax.f32 %v1291_v25, %v1329_v33  ;;  %v4834_v24 = vld [vmem:[#allocation12 + $0x24] ss:$8 sps:$4 sm:$0xff]  }
 0x2cf   : > { %v1356_v42 = vmax.f32 %v1222_v30, %v1328_v34  ;;  %v1358_v43 = vmax.f32 %v1293_v31, %v1330_v35  ;;  %v1225_v44 = vpop.f32.mrb[4].mxu1  ;;  %v1296_v45 = vpop.f32.mrb[20].mxu0 }
 0x2d0   : > { %v1379_v46 = vpack.c.bf16 %v1355_v38, %v1351_v36  ;;  %v5646_v47 = vpack.c.bf16 %v1357_v39, %v1353_v37  ;;  %v1226_v48 = vadd.f32 %v1225_v44, %v5627_v11  ;;  %v1227_v49 = vpop.f32.mrb[5].mxu1  ;;  %v1297_v50 = vadd.f32 %v1296_v45, %v5630_v12  ;;  %v1298_v51 = vpop.f32.mrb[21].mxu0 }
 0x2d1   : > { %v1228_v52 = vadd.f32 %v1227_v49, %v5633_v13  ;;  %v1229_v53 = vpop.f32.mrb[6].mxu1  ;;  %v1380_v54 = vpack.c.bf16 %v1356_v42, %v1352_v40  ;;  %v5652_v55 = vadd.f32 %v1298_v51, %v5636_v14  ;;  %v1300_v56 = vpop.f32.mrb[22].mxu0  ;;  %v5654_v0 = vpack.c.bf16 %v1358_v43, %v1354_v41  ;;  %v4832_v41 = vld [vmem:[#allocation12 + $0x20] ss:$8 sps:$4 sm:$0xff]   ;;  %v4837_v42 = vld [vmem:[#allocation12 + $0x34] ss:$8 sps:$4 sm:$0xff]  }
 0x2d2   : > { %v1331_v1 = vmul.f32 0.01, %v1226_v48  ;;  %v1230_v2 = vadd.f32 %v1229_v53, %v5627_v11  ;;  %v1231_v3 = vpop.f32.mrb[7].mxu1  ;;  %v1333_v4 = vmul.f32 0.01, %v1297_v50  ;;  %v1301_v5 = vadd.f32 %v1300_v56, %v5630_v12  ;;  %v1302_v6 = vpop.f32.mrb[23].mxu0 }
 0x2d3   : > { %v1332_v7 = vmul.f32 0.01, %v1228_v52  ;;  %v1232_v9 = vadd.f32 %v1231_v3, %v5633_v13  ;;  %1825 = vmatprep.mubr.bf16.mxu1 %v1380_v54  ;;  %1896 = vmatprep.mubr.bf16.mxu0 %v1380_v54  ;;  %v5660_v15 = vmul.f32 0.01, %v5652_v55  ;;  %v5663_v16 = vadd.f32 %v1302_v6, %v5636_v14 }
 0x2d4   : > { %v1359_v17 = vmax.f32 %v1226_v48, %v1331_v1  ;;  %v1335_v18 = vmul.f32 0.01, %v1230_v2  ;;  %1826 = vmatmul.mubr.bf16.vlgmr.msra.gmra.mrb[16].mxu1 %v1379_v46  ;;  %1897 = vmatmul.mubr.bf16.vlgmr.msra.gmra.mrb[32].mxu0 %v1379_v46  ;;  %v1361_v57 = vmax.f32 %v1297_v50, %v1333_v4  ;;  %v1337_v19 = vmul.f32 0.01, %v1301_v5  ;;  %v4835_v4 = vld [vmem:[#allocation12 + $0x30] ss:$8 sps:$4 sm:$0xff]  }
 0x2d5   : > { %v1360_v20 = vmax.f32 %v1228_v52, %v1332_v7  ;;  %v1336_v21 = vmul.f32 0.01, %v1232_v9  ;;  %v1338_v61 = vmul.f32 0.01, %v5663_v16  ;;  %2204 = vmatpush1.bf16.msra.mxu1 %v4826_v59  ;;  %2529 = vmatpush1.bf16.msra.mxu0 %v4826_v59  ;;  %v1362_v27 = vmax.f32 %v5652_v55, %v5660_v15  ;;  %v4840_v7 = vld [vmem:[#allocation12 + $0x44] ss:$8 sps:$4 sm:$0xff]  }
 0x2d6   : > { %v1363_v62 = vmax.f32 %v1230_v2, %v1335_v18  ;;  %v1365_v23 = vmax.f32 %v1301_v5, %v1337_v19  ;;  %2205 = vmatprep.subr.bf16.mxu1 %v4831_v63  ;;  %2530 = vmatprep.subr.bf16.mxu0 %v4831_v63 }
 0x2d7   : > { %v1364_v25 = vmax.f32 %v1232_v9, %v1336_v21  ;;  %v1235_v26 = vpop.f32.mrb[8].mxu1  ;;  %v1366_v28 = vmax.f32 %v5663_v16, %v1338_v61  ;;  %v1306_v29 = vpop.f32.mrb[24].mxu0 }
 0x2d8   : > { %v1236_v30 = vadd.f32 %v1235_v26, %v5627_v11  ;;  %v1237_v31 = vpop.f32.mrb[9].mxu1  ;;  %v1381_v32 = vpack.c.bf16 %v1363_v62, %v1359_v17  ;;  %v1307_v33 = vadd.f32 %v1306_v29, %v5630_v12  ;;  %v1308_v34 = vpop.f32.mrb[25].mxu0  ;;  %v5671_v35 = vpack.c.bf16 %v1365_v23, %v1361_v57 }
 0x2d9   : > { %v1238_v36 = vadd.f32 %v1237_v31, %v5633_v13  ;;  %v1239_v37 = vpop.f32.mrb[10].mxu1  ;;  %v1382_v38 = vpack.c.bf16 %v1364_v25, %v1360_v20  ;;  %v1309_v39 = vadd.f32 %v1308_v34, %v5636_v14  ;;  %v1310_v40 = vpop.f32.mrb[26].mxu0  ;;  %2206 = vmatpush1.bf16.msra.mxu1 %v4829_v22  ;;  %2531 = vmatpush1.bf16.msra.mxu0 %v4829_v22  ;;  %v4838_v25 = vld [vmem:[#allocation12 + $0x40] ss:$8 sps:$4 sm:$0xff]   ;;  %v4846_v34 = vld [vmem:[#allocation12 + $0x64] ss:$8 sps:$4 sm:$0xff]  }
 0x2da   : > { %v1339_v43 = vmul.f32 0.01, %v1236_v30  ;;  %v1240_v44 = vadd.f32 %v1239_v37, %v5627_v11  ;;  %v1241_v45 = vpop.f32.mrb[11].mxu1  ;;  %v1341_v46 = vmul.f32 0.01, %v1307_v33  ;;  %v1311_v48 = vadd.f32 %v1310_v40, %v5630_v12  ;;  %v1312_v49 = vpop.f32.mrb[27].mxu0  ;;  %2207 = vmatprep.subr.bf16.mxu1 %v4834_v24  ;;  %2532 = vmatprep.subr.bf16.mxu0 %v4834_v24 }
 0x2db   : > { %v1340_v50 = vmul.f32 0.01, %v1238_v36  ;;  %v1242_v51 = vadd.f32 %v1241_v45, %v5633_v13  ;;  %1835 = vmatprep.mubr.bf16.mxu1 %v1382_v38  ;;  %1906 = vmatprep.mubr.bf16.mxu0 %v1382_v38  ;;  %v1342_v52 = vmul.f32 0.01, %v1309_v39  ;;  %v1313_v53 = vadd.f32 %v1312_v49, %v5636_v14  ;;  %v4844_v37 = vld [vmem:[#allocation12 + $0x60] ss:$8 sps:$4 sm:$0xff]  }
 0x2dc   : > { %v1367_v54 = vmax.f32 %v1236_v30, %v1339_v43  ;;  %v1343_v55 = vmul.f32 0.01, %v1240_v44  ;;  %1836 = vmatmul.mubr.bf16.gmra.mrb[20].mxu1 %v1381_v32  ;;  %1907 = vmatmul.mubr.bf16.gmra.mrb[36].mxu0 %v1381_v32  ;;  %v1369_v56 = vmax.f32 %v1307_v33, %v1341_v46  ;;  %v1345_v59 = vmul.f32 0.01, %v1311_v48  ;;  %v4841_v32 = vld [vmem:[#allocation12 + $0x50] ss:$8 sps:$4 sm:$0xff]  }
 0x2dd   : > { %v1368_v63 = vmax.f32 %v1238_v36, %v1340_v50  ;;  %v1344_v1 = vmul.f32 0.01, %v1242_v51  ;;  %v1370_v2 = vmax.f32 %v1309_v39, %v1342_v52  ;;  %v1346_v3 = vmul.f32 0.01, %v1313_v53  ;;  %2208 = vmatpush1.bf16.msra.mxu1 %v4832_v41  ;;  %2533 = vmatpush1.bf16.msra.mxu0 %v4832_v41  ;;  %v4849_v38 = vld [vmem:[#allocation12 + $0x74] ss:$8 sps:$4 sm:$0xff]  }
 0x2de   : > { %v1371_v5 = vmax.f32 %v1240_v44, %v1343_v55  ;;  %v1373_v6 = vmax.f32 %v1311_v48, %v1345_v59  ;;  %2209 = vmatprep.subr.bf16.mxu1 %v4837_v42  ;;  %2534 = vmatprep.subr.bf16.mxu0 %v4837_v42  ;;  %v5679_v9 = vpack.c.bf16 %v1366_v28, %v1362_v27  ;;  %v4847_v39 = vld [vmem:[#allocation12 + $0x70] ss:$8 sps:$4 sm:$0xff]   ;;  %v4852_v40 = vld [vmem:[#allocation12 + $0x84] ss:$8 sps:$4 sm:$0xff]   ;;  %v4850_v41 = vld [vmem:[#allocation12 + $0x80] ss:$8 sps:$4 sm:$0xff]  }
 0x2df   : > { %v1372_v15 = vmax.f32 %v1242_v51, %v1344_v1  ;;  %v1245_v16 = vpop.f32.mrb[12].mxu1  ;;  %v1374_v17 = vmax.f32 %v1313_v53, %v1346_v3  ;;  %v5681_v18 = vpop.f32.mrb[28].mxu0  ;;  %v4855_v42 = vld [vmem:[#allocation12 + $0x94] ss:$8 sps:$4 sm:$0xff]   ;;  %v4853_v43 = vld [vmem:[#allocation12 + $0x90] ss:$8 sps:$4 sm:$0xff]  }
 0x2e0   : > { %v1246_v57 = vadd.f32 %v1245_v16, %v5627_v11  ;;  %v1247_v19 = vpop.f32.mrb[13].mxu1  ;;  %v1383_v20 = vpack.c.bf16 %v1371_v5, %v1367_v54  ;;  %v5684_v21 = vpop.f32.mrb[29].mxu0  ;;  %v5686_v61 = vpack.c.bf16 %v1373_v6, %v1369_v56  ;;  %v4843_v11 = vld [vmem:[#allocation12 + $0x54] ss:$8 sps:$4 sm:$0xff]   ;;  %v4858_v44 = vld [vmem:[#allocation12 + $0xa4] ss:$8 sps:$4 sm:$0xff]  }
 0x2e1   : > { %v1384_v22 = vpack.c.bf16 %v1372_v15, %v1368_v63  ;;  %v1248_v62 = vadd.f32 %v1247_v19, %v5633_v13  ;;  %v1249_v23 = vpop.f32.mrb[14].mxu1  ;;  %v1320_v24 = vpop.f32.mrb[30].mxu0  ;;  %2210 = vmatpush1.bf16.msra.mxu1 %v4835_v4  ;;  %2535 = vmatpush1.bf16.msra.mxu0 %v4835_v4  ;;  %v5689_v29 = vpack.c.bf16 %v1374_v17, %v1370_v2  ;;  %v4856_v45 = vld [vmem:[#allocation12 + $0xa0] ss:$8 sps:$4 sm:$0xff]   ;;  %v4861_v46 = vld [vmem:[#allocation12 + $0xb4] ss:$8 sps:$4 sm:$0xff]  }
 0x2e2   : > { %v1347_v26 = vmul.f32 0.01, %v1246_v57  ;;  %v1250_v27 = vpop.f32.mrb[15].mxu1  ;;  %v1321_v28 = vpop.f32.mrb[31].mxu0  ;;  %2211 = vmatprep.subr.bf16.mxu1 %v4840_v7  ;;  %2536 = vmatprep.subr.bf16.mxu0 %v4840_v7  ;;  %v4859_v48 = vld [vmem:[#allocation12 + $0xb0] ss:$8 sps:$4 sm:$0xff]  }
 0x2e3   : > { %1845 = vmatprep.mubr.bf16.mxu1 %v1384_v22  ;;  %1916 = vmatprep.mubr.bf16.mxu0 %v1384_v22  ;;  %v1348_v30 = vmul.f32 0.01, %v1248_v62  ;;  %v4864_v49 = vld [vmem:[#allocation12 + $0xc4] ss:$8 sps:$4 sm:$0xff]   ;;  %v4862_v50 = vld [vmem:[#allocation12 + $0xc0] ss:$8 sps:$4 sm:$0xff]  }
 0x2e4   : > { %v1375_v31 = vmax.f32 %v1246_v57, %v1347_v26  ;;  %1846 = vmatmul.mubr.bf16.gmra.mrb[24].mxu1 %v1383_v20  ;;  %1917 = vmatmul.mubr.bf16.gmra.mrb[40].mxu0 %v1383_v20  ;;  %v4867_v51 = vld [vmem:[#allocation12 + $0xd4] ss:$8 sps:$4 sm:$0xff]   ;;  %v4865_v52 = vld [vmem:[#allocation12 + $0xd0] ss:$8 sps:$4 sm:$0xff]   ;;  %v4870_v53 = vld [vmem:[#allocation12 + $0xe4] ss:$8 sps:$4 sm:$0xff]  }
 0x2e5   : > { %v1376_v13 = vmax.f32 %v1248_v62, %v1348_v30  ;;  %2212 = vmatpush1.bf16.msra.mxu1 %v4838_v25  ;;  %2537 = vmatpush1.bf16.msra.mxu0 %v4838_v25  ;;  %v4868_v54 = vld [vmem:[#allocation12 + $0xe0] ss:$8 sps:$4 sm:$0xff]   ;;  %v4873_v55 = vld [vmem:[#allocation12 + $0xf4] ss:$8 sps:$4 sm:$0xff]   ;;  %v4871_v56 = vld [vmem:[#allocation12 + $0xf0] ss:$8 sps:$4 sm:$0xff]  }
 0x2e6   : > { %2213 = vmatprep.subr.bf16.mxu1 %v4843_v11  ;;  %2538 = vmatprep.subr.bf16.mxu0 %v4843_v11  ;;  %v1385_v36 = vpack.c.bf16 %v1375_v31, %v1375_v31  ;;  %v4876_v59 = vld [vmem:[#allocation9 + $0x4] ss:$16 sps:$4 sm:$0xff]   ;;  %v4879_v63 = vld [vmem:[#allocation9 + $0xc] ss:$16 sps:$4 sm:$0xff]   ;;  %v1451_v1 = vld [vmem:[#allocation10] sm:$0xf] }
 0x2e7   : > { %v1386_v33 = vpack.c.bf16 %v1376_v13, %v1376_v13  ;;  %v5692_v2 = vrot.slane %v1451_v1, %v5595_v58  ;;  %v5695_v3 = vrot.slane %v1451_v1, %v5621_v8  ;;  %v5698_v4 = vrot.slane %v1451_v1, %v5598_v60 }
 0x2e8   : > { %v5701_v5 = vrot.slane %v1451_v1, %v5624_v10 }
 0x2e9   : > { %1855 = vmatprep.mubr.bf16.mxu1 %v1386_v33  ;;  %1926 = vmatprep.mubr.bf16.mxu0 %v1386_v33 }
 0x2ea   : > { %2214 = vmatpush1.bf16.msra.mxu1 %v4841_v32  ;;  %2539 = vmatpush1.bf16.msra.mxu0 %v4841_v32 }
 0x2eb   : > { %2215 = vmatprep.subr.bf16.mxu1 %v4846_v34  ;;  %2540 = vmatprep.subr.bf16.mxu0 %v4846_v34 }
 0x2ec   : > { %1856 = vmatmul.mubr.bf16.gmra.mrb[28].mxu1 %v1385_v36  ;;  %1927 = vmatmul.mubr.bf16.gmra.mrb[44].mxu0 %v1385_v36 }
 0x2ee   : > { %2216 = vmatpush1.bf16.msra.mxu1 %v4844_v37  ;;  %2541 = vmatpush1.bf16.msra.mxu0 %v4844_v37 }
 0x2ef   : > { %2217 = vmatprep.subr.bf16.mxu1 %v4849_v38  ;;  %2542 = vmatprep.subr.bf16.mxu0 %v4849_v38 }
 0x2f2   : > { %2218 = vmatpush1.bf16.msra.mxu1 %v4847_v39  ;;  %2543 = vmatpush1.bf16.msra.mxu0 %v4847_v39 }
 0x2f3   : > { %2219 = vmatprep.subr.bf16.mxu1 %v4852_v40  ;;  %2544 = vmatprep.subr.bf16.mxu0 %v4852_v40 }
 0x2f6   : > { %2220 = vmatpush1.bf16.msra.mxu1 %v4850_v41  ;;  %2545 = vmatpush1.bf16.msra.mxu0 %v4850_v41 }
 0x2f7   : > { %2221 = vmatprep.subr.bf16.mxu1 %v4855_v42  ;;  %2546 = vmatprep.subr.bf16.mxu0 %v4855_v42 }
 0x2fa   : > { %2222 = vmatpush1.bf16.msra.mxu1 %v4853_v43  ;;  %2547 = vmatpush1.bf16.msra.mxu0 %v4853_v43 }
 0x2fb   : > { %2223 = vmatprep.subr.bf16.mxu1 %v4858_v44  ;;  %2548 = vmatprep.subr.bf16.mxu0 %v4858_v44 }
 0x2fe   : > { %2224 = vmatpush1.bf16.msra.mxu1 %v4856_v45  ;;  %2549 = vmatpush1.bf16.msra.mxu0 %v4856_v45 }
 0x2ff   : > { %2225 = vmatprep.subr.bf16.mxu1 %v4861_v46  ;;  %2550 = vmatprep.subr.bf16.mxu0 %v4861_v46 }
 0x302   : > { %2226 = vmatpush1.bf16.msra.mxu1 %v4859_v48  ;;  %2551 = vmatpush1.bf16.msra.mxu0 %v4859_v48 }
 0x303   : > { %2227 = vmatprep.subr.bf16.mxu1 %v4864_v49  ;;  %2552 = vmatprep.subr.bf16.mxu0 %v4864_v49 }
 0x306   : > { %2228 = vmatpush1.bf16.msra.mxu1 %v4862_v50  ;;  %2553 = vmatpush1.bf16.msra.mxu0 %v4862_v50 }
 0x307   : > { %2229 = vmatprep.subr.bf16.mxu1 %v4867_v51  ;;  %2554 = vmatprep.subr.bf16.mxu0 %v4867_v51 }
 0x30a   : > { %2230 = vmatpush1.bf16.msra.mxu1 %v4865_v52  ;;  %2555 = vmatpush1.bf16.msra.mxu0 %v4865_v52 }
 0x30b   : > { %2231 = vmatprep.subr.bf16.mxu1 %v4870_v53  ;;  %2556 = vmatprep.subr.bf16.mxu0 %v4870_v53 }
 0x30e   : > { %2232 = vmatpush1.bf16.msra.mxu1 %v4868_v54  ;;  %2557 = vmatpush1.bf16.msra.mxu0 %v4868_v54  ;;  %v4874_v54 = vld [vmem:[#allocation9] ss:$16 sps:$4 sm:$0xff]  }
 0x30f   : > { %2233 = vmatprep.subr.bf16.mxu1 %v4873_v55  ;;  %2558 = vmatprep.subr.bf16.mxu0 %v4873_v55  ;;  %v4877_v55 = vld [vmem:[#allocation9 + $0x8] ss:$16 sps:$4 sm:$0xff]  }
 0x312   : > { %2234 = vmatpush1.bf16.msra.mxu1 %v4871_v56  ;;  %2559 = vmatpush1.bf16.msra.mxu0 %v4871_v56 }
 0x313   : > { %3056 = vmatprep.subr.bf16.mxu1 %v4876_v59  ;;  %3127 = vmatprep.subr.bf16.mxu0 %v4879_v63 }
 0x3a7   : > { %v1827_v6 = vpop.f32.mrb[16].mxu1  ;;  %v1898_v7 = vpop.f32.mrb[32].mxu0 }
 0x3a8   : > { %v1828_v15 = vadd.f32 %v1827_v6, %v5692_v2  ;;  %v1899_v16 = vadd.f32 %v1898_v7, %v5695_v3  ;;  %v1829_v17 = vpop.f32.mrb[17].mxu1  ;;  %v1900_v57 = vpop.f32.mrb[33].mxu0 }
 0x3a9   : > { %v1830_v19 = vadd.f32 %v1829_v17, %v5698_v4  ;;  %v1901_v20 = vadd.f32 %v1900_v57, %v5701_v5  ;;  %v1831_v22 = vpop.f32.mrb[18].mxu1  ;;  %v1902_v62 = vpop.f32.mrb[34].mxu0 }
 0x3aa   : > { %v1935_v23 = vmul.f32 0.01, %v1828_v15  ;;  %v1937_v24 = vmul.f32 0.01, %v1899_v16  ;;  %v1832_v25 = vadd.f32 %v1831_v22, %v5692_v2  ;;  %v1903_v26 = vadd.f32 %v1902_v62, %v5695_v3  ;;  %v1833_v27 = vpop.f32.mrb[19].mxu1  ;;  %v1904_v28 = vpop.f32.mrb[35].mxu0 }
 0x3ab   : > { %v1936_v11 = vmul.f32 0.01, %v1830_v19  ;;  %v1938_v30 = vmul.f32 0.01, %v1901_v20  ;;  %v1834_v31 = vadd.f32 %v1833_v27, %v5698_v4  ;;  %v1905_v13 = vadd.f32 %v1904_v28, %v5701_v5 }
 0x3ac   : > { %v1939_v32 = vmul.f32 0.01, %v1832_v25  ;;  %v1941_v33 = vmul.f32 0.01, %v1903_v26  ;;  %v1963_v37 = vmax.f32 %v1828_v15, %v1935_v23  ;;  %v1965_v38 = vmax.f32 %v1899_v16, %v1937_v24  ;;  %v4882_v15 = vld [vmem:[#allocation9 + $0x24] ss:$16 sps:$4 sm:$0xff]  }
 0x3ad   : > { %v1940_v34 = vmul.f32 0.01, %v1834_v31  ;;  %v1942_v36 = vmul.f32 0.01, %v1905_v13  ;;  %v1964_v41 = vmax.f32 %v1830_v19, %v1936_v11  ;;  %v1966_v42 = vmax.f32 %v1901_v20, %v1938_v30  ;;  %v4885_v16 = vld [vmem:[#allocation9 + $0x2c] ss:$16 sps:$4 sm:$0xff]  }
 0x3ae   : > { %v1967_v39 = vmax.f32 %v1832_v25, %v1939_v32  ;;  %v1969_v40 = vmax.f32 %v1903_v26, %v1941_v33 }
 0x3af   : > { %v1968_v43 = vmax.f32 %v1834_v31, %v1940_v34  ;;  %v1970_v44 = vmax.f32 %v1905_v13, %v1942_v36  ;;  %v1837_v45 = vpop.f32.mrb[20].mxu1  ;;  %v1908_v46 = vpop.f32.mrb[36].mxu0  ;;  %v4880_v31 = vld [vmem:[#allocation9 + $0x20] ss:$16 sps:$4 sm:$0xff]   ;;  %v4883_v34 = vld [vmem:[#allocation9 + $0x28] ss:$16 sps:$4 sm:$0xff]  }
 0x3b0   : > { %v1991_v48 = vpack.c.bf16 %v1967_v39, %v1963_v37  ;;  %v2316_v49 = vpack.c.bf16 %v1969_v40, %v1965_v38  ;;  %v1838_v50 = vadd.f32 %v1837_v45, %v5692_v2  ;;  %v1909_v51 = vadd.f32 %v1908_v46, %v5695_v3  ;;  %v1839_v52 = vpop.f32.mrb[21].mxu1  ;;  %v1910_v53 = vpop.f32.mrb[37].mxu0  ;;  %v4888_v38 = vld [vmem:[#allocation9 + $0x44] ss:$16 sps:$4 sm:$0xff]   ;;  %v4891_v39 = vld [vmem:[#allocation9 + $0x4c] ss:$16 sps:$4 sm:$0xff]  }
 0x3b1   : > { %v1840_v56 = vadd.f32 %v1839_v52, %v5698_v4  ;;  %v5715_v59 = vadd.f32 %v1910_v53, %v5701_v5  ;;  %v1841_v63 = vpop.f32.mrb[22].mxu1  ;;  %v1912_v1 = vpop.f32.mrb[38].mxu0  ;;  %v1992_v6 = vpack.c.bf16 %v1968_v43, %v1964_v41  ;;  %v2317_v7 = vpack.c.bf16 %v1970_v44, %v1966_v42 }
 0x3b2   : > { %v1943_v17 = vmul.f32 0.01, %v1838_v50  ;;  %v1945_v57 = vmul.f32 0.01, %v1909_v51  ;;  %v1842_v19 = vadd.f32 %v1841_v63, %v5692_v2  ;;  %v1913_v20 = vadd.f32 %v1912_v1, %v5695_v3  ;;  %v1843_v22 = vpop.f32.mrb[23].mxu1  ;;  %v1914_v62 = vpop.f32.mrb[39].mxu0 }
 0x3b3   : > { %v1944_v23 = vmul.f32 0.01, %v1840_v56  ;;  %v5720_v24 = vmul.f32 0.01, %v5715_v59  ;;  %v1844_v25 = vadd.f32 %v1843_v22, %v5698_v4  ;;  %v5724_v26 = vadd.f32 %v1914_v62, %v5701_v5  ;;  %2235 = vmatprep.mubr.bf16.mxu1 %v1992_v6  ;;  %2560 = vmatprep.mubr.bf16.mxu0 %v2317_v7  ;;  %v4894_v1 = vld [vmem:[#allocation9 + $0x64] ss:$16 sps:$4 sm:$0xff]  }
 0x3b4   : > { %v1971_v27 = vmax.f32 %v1838_v50, %v1943_v17  ;;  %v1973_v28 = vmax.f32 %v1909_v51, %v1945_v57  ;;  %v1947_v11 = vmul.f32 0.01, %v1842_v19  ;;  %v1949_v30 = vmul.f32 0.01, %v1913_v20  ;;  %2236 = vmatmul.mubr.bf16.vlgmr.msra.gmra.mrb[32].mxu1 %v1991_v48  ;;  %2561 = vmatmul.mubr.bf16.vlgmr.msra.gmra.mrb[48].mxu0 %v2316_v49  ;;  %v4886_v50 = vld [vmem:[#allocation9 + $0x40] ss:$16 sps:$4 sm:$0xff]  }
 0x3b5   : > { %v1972_v13 = vmax.f32 %v1840_v56, %v1944_v23  ;;  %v1948_v32 = vmul.f32 0.01, %v1844_v25  ;;  %v1950_v33 = vmul.f32 0.01, %v5724_v26  ;;  %3057 = vmatpush1.bf16.msra.mxu1 %v4874_v54  ;;  %3128 = vmatpush1.bf16.msra.mxu0 %v4877_v55  ;;  %v1974_v40 = vmax.f32 %v5715_v59, %v5720_v24  ;;  %v4889_v51 = vld [vmem:[#allocation9 + $0x48] ss:$16 sps:$4 sm:$0xff]  }
 0x3b6   : > { %v1975_v36 = vmax.f32 %v1842_v19, %v1947_v11  ;;  %v1977_v37 = vmax.f32 %v1913_v20, %v1949_v30  ;;  %3058 = vmatprep.subr.bf16.mxu1 %v4882_v15  ;;  %3129 = vmatprep.subr.bf16.mxu0 %v4885_v16  ;;  %v4897_v6 = vld [vmem:[#allocation9 + $0x6c] ss:$16 sps:$4 sm:$0xff]  }
 0x3b7   : > { %v1976_v41 = vmax.f32 %v1844_v25, %v1948_v32  ;;  %v1978_v42 = vmax.f32 %v5724_v26, %v1950_v33  ;;  %v1847_v43 = vpop.f32.mrb[24].mxu1  ;;  %v1918_v44 = vpop.f32.mrb[40].mxu0 }
 0x3b8   : > { %v1848_v45 = vadd.f32 %v1847_v43, %v5692_v2  ;;  %v1919_v46 = vadd.f32 %v1918_v44, %v5695_v3  ;;  %v1849_v48 = vpop.f32.mrb[25].mxu1  ;;  %v1920_v49 = vpop.f32.mrb[41].mxu0  ;;  %v1993_v52 = vpack.c.bf16 %v1975_v36, %v1971_v27  ;;  %v2318_v53 = vpack.c.bf16 %v1977_v37, %v1973_v28  ;;  %v4895_v36 = vld [vmem:[#allocation9 + $0x68] ss:$16 sps:$4 sm:$0xff]   ;;  %v4900_v37 = vld [vmem:[#allocation9 + $0x84] ss:$16 sps:$4 sm:$0xff]  }
 0x3b9   : > { %v1850_v54 = vadd.f32 %v1849_v48, %v5698_v4  ;;  %v5734_v55 = vadd.f32 %v1920_v49, %v5701_v5  ;;  %3059 = vmatpush1.bf16.msra.mxu1 %v4880_v31  ;;  %3130 = vmatpush1.bf16.msra.mxu0 %v4883_v34  ;;  %v1851_v56 = vpop.f32.mrb[26].mxu1  ;;  %v1922_v59 = vpop.f32.mrb[42].mxu0  ;;  %v1994_v63 = vpack.c.bf16 %v1976_v41, %v1972_v13  ;;  %v4892_v13 = vld [vmem:[#allocation9 + $0x60] ss:$16 sps:$4 sm:$0xff]   ;;  %v4903_v44 = vld [vmem:[#allocation9 + $0x8c] ss:$16 sps:$4 sm:$0xff]  }
 0x3ba   : > { %v1951_v7 = vmul.f32 0.01, %v1848_v45  ;;  %v1953_v15 = vmul.f32 0.01, %v1919_v46  ;;  %v1852_v16 = vadd.f32 %v1851_v56, %v5692_v2  ;;  %v1923_v17 = vadd.f32 %v1922_v59, %v5695_v3  ;;  %v1853_v57 = vpop.f32.mrb[27].mxu1  ;;  %v1924_v19 = vpop.f32.mrb[43].mxu0  ;;  %3060 = vmatprep.subr.bf16.mxu1 %v4888_v38  ;;  %3131 = vmatprep.subr.bf16.mxu0 %v4891_v39 }
 0x3bb   : > { %v1952_v20 = vmul.f32 0.01, %v1850_v54  ;;  %v1954_v22 = vmul.f32 0.01, %v5734_v55  ;;  %v1854_v62 = vadd.f32 %v1853_v57, %v5698_v4  ;;  %v1925_v23 = vadd.f32 %v1924_v19, %v5701_v5  ;;  %2245 = vmatprep.mubr.bf16.mxu1 %v1994_v63  ;;  %v4904_v57 = vld [vmem:[#allocation9 + $0xa0] ss:$16 sps:$4 sm:$0xff]  }
 0x3bc   : > { %v1979_v24 = vmax.f32 %v1848_v45, %v1951_v7  ;;  %v1981_v25 = vmax.f32 %v1919_v46, %v1953_v15  ;;  %v1955_v26 = vmul.f32 0.01, %v1852_v16  ;;  %v1957_v27 = vmul.f32 0.01, %v1923_v17  ;;  %2246 = vmatmul.mubr.bf16.gmra.mrb[36].mxu1 %v1993_v52  ;;  %v4907_v19 = vld [vmem:[#allocation9 + $0xa8] ss:$16 sps:$4 sm:$0xff]  }
 0x3bd   : > { %v1980_v28 = vmax.f32 %v1850_v54, %v1952_v20  ;;  %v1982_v11 = vmax.f32 %v5734_v55, %v1954_v22  ;;  %v1956_v30 = vmul.f32 0.01, %v1854_v62  ;;  %v1958_v31 = vmul.f32 0.01, %v1925_v23  ;;  %3061 = vmatpush1.bf16.msra.mxu1 %v4886_v50  ;;  %3132 = vmatpush1.bf16.msra.mxu0 %v4889_v51  ;;  %v4898_v54 = vld [vmem:[#allocation9 + $0x80] ss:$16 sps:$4 sm:$0xff]  }
 0x3be   : > { %v1983_v32 = vmax.f32 %v1852_v16, %v1955_v26  ;;  %v1985_v33 = vmax.f32 %v1923_v17, %v1957_v27  ;;  %v2319_v34 = vpack.c.bf16 %v1978_v42, %v1974_v40  ;;  %3062 = vmatprep.subr.bf16.mxu1 %v4894_v1  ;;  %3133 = vmatprep.subr.bf16.mxu0 %v4897_v6  ;;  %v4901_v55 = vld [vmem:[#allocation9 + $0x88] ss:$16 sps:$4 sm:$0xff]   ;;  %v4910_v26 = vld [vmem:[#allocation9 + $0xc0] ss:$16 sps:$4 sm:$0xff]  }
 0x3bf   : > { %v1984_v38 = vmax.f32 %v1854_v62, %v1956_v30  ;;  %v1986_v39 = vmax.f32 %v1925_v23, %v1958_v31  ;;  %v1857_v41 = vpop.f32.mrb[28].mxu1  ;;  %v1928_v43 = vpop.f32.mrb[44].mxu0  ;;  %v4912_v62 = vld [vmem:[#allocation9 + $0xc4] ss:$16 sps:$4 sm:$0xff]   ;;  %v4913_v27 = vld [vmem:[#allocation9 + $0xc8] ss:$16 sps:$4 sm:$0xff]  }
 0x3c0   : > { %2570 = vmatprep.mubr.bf16.mxu0 %v2319_v34  ;;  %v1858_v45 = vadd.f32 %v1857_v41, %v5692_v2  ;;  %v1929_v46 = vadd.f32 %v1928_v43, %v5695_v3  ;;  %v1859_v48 = vpop.f32.mrb[29].mxu1  ;;  %v1930_v49 = vpop.f32.mrb[45].mxu0  ;;  %v1995_v50 = vpack.c.bf16 %v1983_v32, %v1979_v24  ;;  %v2320_v51 = vpack.c.bf16 %v1985_v33, %v1981_v25  ;;  %v4906_v3 = vld [vmem:[#allocation9 + $0xa4] ss:$16 sps:$4 sm:$0xff]   ;;  %v4915_v24 = vld [vmem:[#allocation9 + $0xcc] ss:$16 sps:$4 sm:$0xff]  }
 0x3c1   : > { %2571 = vmatmul.mubr.bf16.gmra.mrb[52].mxu0 %v2318_v53  ;;  %3063 = vmatpush1.bf16.msra.mxu1 %v4892_v13  ;;  %v1860_v40 = vadd.f32 %v1859_v48, %v5698_v4  ;;  %v1931_v42 = vadd.f32 %v1930_v49, %v5701_v5  ;;  %v1996_v52 = vpack.c.bf16 %v1984_v38, %v1980_v28  ;;  %v1861_v56 = vpop.f32.mrb[30].mxu1  ;;  %v1932_v59 = vpop.f32.mrb[46].mxu0  ;;  %v4909_v53 = vld [vmem:[#allocation9 + $0xac] ss:$16 sps:$4 sm:$0xff]   ;;  %v4918_v28 = vld [vmem:[#allocation9 + $0xe4] ss:$16 sps:$4 sm:$0xff]  }
 0x3c2   : > { %3134 = vmatpush1.bf16.msra.mxu0 %v4895_v36  ;;  %v1959_v63 = vmul.f32 0.01, %v1858_v45  ;;  %v2321_v2 = vpack.c.bf16 %v1986_v39, %v1982_v11  ;;  %3064 = vmatprep.subr.bf16.mxu1 %v4900_v37  ;;  %v1862_v1 = vpop.f32.mrb[31].mxu1  ;;  %v1933_v6 = vpop.f32.mrb[47].mxu0  ;;  %v1961_v5 = vmul.f32 0.01, %v1929_v46 }
 0x3c3   : > { %v1960_v7 = vmul.f32 0.01, %v1860_v40  ;;  %v1962_v15 = vmul.f32 0.01, %v1931_v42  ;;  %2255 = vmatprep.mubr.bf16.mxu1 %v1996_v52  ;;  %3135 = vmatprep.subr.bf16.mxu0 %v4903_v44  ;;  %v4921_v11 = vld [vmem:[#allocation9 + $0xec] ss:$16 sps:$4 sm:$0xff]  }
 0x3c4   : > { %v1987_v4 = vmax.f32 %v1858_v45, %v1959_v63  ;;  %2580 = vmatprep.mubr.bf16.mxu0 %v2321_v2  ;;  %2256 = vmatmul.mubr.bf16.gmra.mrb[40].mxu1 %v1995_v50  ;;  %v1989_v25 = vmax.f32 %v1929_v46, %v1961_v5  ;;  %v4916_v31 = vld [vmem:[#allocation9 + $0xe0] ss:$16 sps:$4 sm:$0xff]   ;;  %v4919_v13 = vld [vmem:[#allocation9 + $0xe8] ss:$16 sps:$4 sm:$0xff]   ;;  %v4924_v32 = vld [vmem:[#allocation9 + $0x104] ss:$16 sps:$4 sm:$0xff]  }
 0x3c5   : > { %v1988_v16 = vmax.f32 %v1860_v40, %v1960_v7  ;;  %v1990_v17 = vmax.f32 %v1931_v42, %v1962_v15  ;;  %3065 = vmatpush1.bf16.msra.mxu1 %v4898_v54  ;;  %v4927_v33 = vld [vmem:[#allocation9 + $0x10c] ss:$16 sps:$4 sm:$0xff]   ;;  %v4922_v34 = vld [vmem:[#allocation9 + $0x100] ss:$16 sps:$4 sm:$0xff]   ;;  %v4925_v36 = vld [vmem:[#allocation9 + $0x108] ss:$16 sps:$4 sm:$0xff]  }
 0x3c6   : > { %3136 = vmatpush1.bf16.msra.mxu0 %v4901_v55  ;;  %3066 = vmatprep.subr.bf16.mxu1 %v4906_v3  ;;  %v1997_v23 = vpack.c.bf16 %v1987_v4, %v1987_v4  ;;  %v2322_v30 = vpack.c.bf16 %v1989_v25, %v1989_v25  ;;  %v4930_v37 = vld [vmem:[#allocation9 + $0x124] ss:$16 sps:$4 sm:$0xff]   ;;  %v4933_v38 = vld [vmem:[#allocation9 + $0x12c] ss:$16 sps:$4 sm:$0xff]   ;;  %v4928_v39 = vld [vmem:[#allocation9 + $0x120] ss:$16 sps:$4 sm:$0xff]   ;;  %v1319_v4 = vadd.f32 %v5684_v21, %v5636_v14 }
 0x3c7   : > { %v1998_v20 = vpack.c.bf16 %v1988_v16, %v1988_v16  ;;  %v2323_v22 = vpack.c.bf16 %v1990_v17, %v1990_v17  ;;  %3137 = vmatprep.subr.bf16.mxu0 %v4909_v53  ;;  %v4931_v41 = vld [vmem:[#allocation9 + $0x128] ss:$16 sps:$4 sm:$0xff]   ;;  %v4936_v43 = vld [vmem:[#allocation9 + $0x144] ss:$16 sps:$4 sm:$0xff]   ;;  %v4939_v44 = vld [vmem:[#allocation9 + $0x14c] ss:$16 sps:$4 sm:$0xff]   ;;  %v1317_v16 = vadd.f32 %v5681_v18, %v5630_v12 }
 0x3c8   : > { %v4934_v45 = vld [vmem:[#allocation9 + $0x140] ss:$16 sps:$4 sm:$0xff]   ;;  %v4937_v46 = vld [vmem:[#allocation9 + $0x148] ss:$16 sps:$4 sm:$0xff]   ;;  %v4945_v48 = vld [vmem:[#allocation9 + $0x16c] ss:$16 sps:$4 sm:$0xff]  }
 0x3c9   : > { %2581 = vmatmul.mubr.bf16.gmra.mrb[56].mxu0 %v2320_v51  ;;  %3067 = vmatpush1.bf16.msra.mxu1 %v4904_v57  ;;  %v4940_v49 = vld [vmem:[#allocation9 + $0x160] ss:$16 sps:$4 sm:$0xff]   ;;  %v4943_v50 = vld [vmem:[#allocation9 + $0x168] ss:$16 sps:$4 sm:$0xff]   ;;  %v4948_v51 = vld [vmem:[#allocation9 + $0x184] ss:$16 sps:$4 sm:$0xff]  }
 0x3ca   : > { %3138 = vmatpush1.bf16.msra.mxu0 %v4907_v19  ;;  %2265 = vmatprep.mubr.bf16.mxu1 %v1998_v20  ;;  %v4951_v40 = vld [vmem:[#allocation9 + $0x18c] ss:$16 sps:$4 sm:$0xff]   ;;  %v4946_v42 = vld [vmem:[#allocation9 + $0x180] ss:$16 sps:$4 sm:$0xff]   ;;  %v4949_v52 = vld [vmem:[#allocation9 + $0x188] ss:$16 sps:$4 sm:$0xff]  }
 0x3cb   : > { %2590 = vmatprep.mubr.bf16.mxu0 %v2323_v22  ;;  %3068 = vmatprep.subr.bf16.mxu1 %v4912_v62  ;;  %v4954_v54 = vld [vmem:[#allocation9 + $0x1a4] ss:$16 sps:$4 sm:$0xff]   ;;  %v4957_v55 = vld [vmem:[#allocation9 + $0x1ac] ss:$16 sps:$4 sm:$0xff]   ;;  %v4952_v56 = vld [vmem:[#allocation9 + $0x1a0] ss:$16 sps:$4 sm:$0xff]  }
 0x3cc   : > { %3139 = vmatprep.subr.bf16.mxu0 %v4915_v24  ;;  %2266 = vmatmul.mubr.bf16.gmra.mrb[44].mxu1 %v1997_v23  ;;  %v4955_v59 = vld [vmem:[#allocation9 + $0x1a8] ss:$16 sps:$4 sm:$0xff]   ;;  %v4960_v63 = vld [vmem:[#allocation9 + $0x1c4] ss:$16 sps:$4 sm:$0xff]   ;;  %v4963_v2 = vld [vmem:[#allocation9 + $0x1cc] ss:$16 sps:$4 sm:$0xff]  }
 0x3cd   : > { %3069 = vmatpush1.bf16.msra.mxu1 %v4910_v26  ;;  %3088 = vmatprep.mubr.bf16.mxu1 %v5654_v0  ;;  %v4958_v3 = vld [vmem:[#allocation9 + $0x1c0] ss:$16 sps:$4 sm:$0xff]   ;;  %v4961_v1 = vld [vmem:[#allocation9 + $0x1c8] ss:$16 sps:$4 sm:$0xff]   ;;  %v4966_v6 = vld [vmem:[#allocation9 + $0x1e4] ss:$16 sps:$4 sm:$0xff]  }
 0x3ce   : > { %3140 = vmatpush1.bf16.msra.mxu0 %v4913_v27  ;;  %3070 = vmatprep.subr.bf16.mxu1 %v4918_v28  ;;  %v4969_v7 = vld [vmem:[#allocation9 + $0x1ec] ss:$16 sps:$4 sm:$0xff]   ;;  %v4964_v15 = vld [vmem:[#allocation9 + $0x1e0] ss:$16 sps:$4 sm:$0xff]   ;;  %v4967_v53 = vld [vmem:[#allocation9 + $0x1e8] ss:$16 sps:$4 sm:$0xff]  }
 0x3cf   : > { %3141 = vmatprep.subr.bf16.mxu0 %v4921_v11  ;;  %v1350_v5 = vmul.f32 0.01, %v1319_v4  ;;  %v1349_v17 = vmul.f32 0.01, %v1317_v16  ;;  %v5764_v21 = vld [vmem:[#allocation12 + $0x4] ss:$8 sps:$4 sm:$0xff]  }
 0x3d0   : > { %v5766_v12 = vld [vmem:[#allocation12 + $0x14] ss:$8 sps:$4 sm:$0xff]   ;;  %v5772_v18 = vld [vmem:[#allocation12 + $0x10] ss:$8 sps:$4 sm:$0xff]   ;;  %v5794_v22 = vld [vmem:[#allocation12 + $0x44] ss:$8 sps:$4 sm:$0xff]  }
 0x3d1   : > { %2591 = vmatmul.mubr.bf16.gmra.mrb[60].mxu0 %v2322_v30  ;;  %3071 = vmatpush1.bf16.msra.mxu1 %v4916_v31  ;;  %v1377_v14 = vmax.f32 %v1317_v16, %v1349_v17  ;;  %v5782_v19 = vld [vmem:[#allocation12 + $0x34] ss:$8 sps:$4 sm:$0xff]   ;;  %v5788_v20 = vld [vmem:[#allocation12 + $0x30] ss:$8 sps:$4 sm:$0xff]   ;;  %v5796_v62 = vld [vmem:[#allocation12 + $0x40] ss:$8 sps:$4 sm:$0xff]  }
 0x3d2   : > { %3159 = vmatprep.mubr.bf16.mxu0 %v5654_v0  ;;  %3142 = vmatpush1.bf16.msra.mxu0 %v4919_v13  ;;  %v4942_v0 = vld [vmem:[#allocation9 + $0x164] ss:$16 sps:$4 sm:$0xff]   ;;  %v5798_v23 = vld [vmem:[#allocation12 + $0x54] ss:$8 sps:$4 sm:$0xff]   ;;  %v5808_v25 = vld [vmem:[#allocation12 + $0x64] ss:$8 sps:$4 sm:$0xff]  }
 0x3d3   : > { %3072 = vmatprep.subr.bf16.mxu1 %v4924_v32  ;;  %3143 = vmatprep.subr.bf16.mxu0 %v4927_v33  ;;  %v5804_v24 = vld [vmem:[#allocation12 + $0x50] ss:$8 sps:$4 sm:$0xff]   ;;  %v5812_v26 = vld [vmem:[#allocation12 + $0x60] ss:$8 sps:$4 sm:$0xff]   ;;  %v5816_v27 = vld [vmem:[#allocation12 + $0x74] ss:$8 sps:$4 sm:$0xff]  }
 0x3d4   : > { %v5820_v28 = vld [vmem:[#allocation12 + $0x70] ss:$8 sps:$4 sm:$0xff]   ;;  %v5824_v11 = vld [vmem:[#allocation12 + $0x84] ss:$8 sps:$4 sm:$0xff]   ;;  %v5828_v30 = vld [vmem:[#allocation12 + $0x80] ss:$8 sps:$4 sm:$0xff]  }
 0x3d5   : > { %3073 = vmatpush1.bf16.msra.mxu1 %v4922_v34  ;;  %v5832_v31 = vld [vmem:[#allocation12 + $0x94] ss:$8 sps:$4 sm:$0xff]   ;;  %v5836_v13 = vld [vmem:[#allocation12 + $0x90] ss:$8 sps:$4 sm:$0xff]   ;;  %v5840_v32 = vld [vmem:[#allocation12 + $0xa4] ss:$8 sps:$4 sm:$0xff]  }
 0x3d6   : > { %3144 = vmatpush1.bf16.msra.mxu0 %v4925_v36  ;;  %3074 = vmatprep.subr.bf16.mxu1 %v4930_v37  ;;  %v5844_v33 = vld [vmem:[#allocation12 + $0xa0] ss:$8 sps:$4 sm:$0xff]   ;;  %v5848_v34 = vld [vmem:[#allocation12 + $0xb4] ss:$8 sps:$4 sm:$0xff]   ;;  %v5852_v36 = vld [vmem:[#allocation12 + $0xb0] ss:$8 sps:$4 sm:$0xff]  }
 0x3d7   : > { %3145 = vmatprep.subr.bf16.mxu0 %v4933_v38  ;;  %v5856_v37 = vld [vmem:[#allocation12 + $0xc4] ss:$8 sps:$4 sm:$0xff]   ;;  %v5860_v38 = vld [vmem:[#allocation12 + $0xc0] ss:$8 sps:$4 sm:$0xff]  }
 0x3d9   : > { %3075 = vmatpush1.bf16.msra.mxu1 %v4928_v39  ;;  %v5866_v39 = vld [vmem:[#allocation12 + $0xd4] ss:$8 sps:$4 sm:$0xff]  }
 0x3da   : > { %3146 = vmatpush1.bf16.msra.mxu0 %v4931_v41  ;;  %3076 = vmatprep.subr.bf16.mxu1 %v4936_v43  ;;  %v5868_v41 = vld [vmem:[#allocation12 + $0xd0] ss:$8 sps:$4 sm:$0xff]   ;;  %v5874_v43 = vld [vmem:[#allocation12 + $0xe4] ss:$8 sps:$4 sm:$0xff]  }
 0x3db   : > { %3147 = vmatprep.subr.bf16.mxu0 %v4939_v44  ;;  %v5876_v44 = vld [vmem:[#allocation12 + $0xe0] ss:$8 sps:$4 sm:$0xff]  }
 0x3dc   : > { %6142 = vst [vmem:[#allocation22_spill] sm:$0xff] %v5876_v44 }
 0x3dd   : > { %3077 = vmatpush1.bf16.msra.mxu1 %v4934_v45  ;;  %v5882_v45 = vld [vmem:[#allocation12 + $0xf4] ss:$8 sps:$4 sm:$0xff]  }
 0x3de   : > { %3148 = vmatpush1.bf16.msra.mxu0 %v4937_v46  ;;  %3078 = vmatprep.subr.bf16.mxu1 %v4942_v0  ;;  %6143 = vst [vmem:[#allocation23_spill] sm:$0xff] %v5882_v45  ;;  %v5884_v46 = vld [vmem:[#allocation12 + $0xf0] ss:$8 sps:$4 sm:$0xff]   ;;  %v2031_v0 = vld [vmem:[#allocation13] sm:$0x3] }
 0x3df   : > { %3149 = vmatprep.subr.bf16.mxu0 %v4945_v48  ;;  %6144 = vst [vmem:[#allocation24_spill] sm:$0xff] %v5884_v46  ;;  %v2356_v48 = vld [vmem:[#allocation13] sm:$0x3] }
 0x3e1   : > { %3079 = vmatpush1.bf16.msra.mxu1 %v4940_v49  ;;  %v5892_v49 = vrot.slane %v2031_v0, %v5595_v58 }
 0x3e2   : > { %3150 = vmatpush1.bf16.msra.mxu0 %v4943_v50  ;;  %3080 = vmatprep.subr.bf16.mxu1 %v4948_v51  ;;  %v5895_v50 = vrot.slane %v2356_v48, %v5595_v58  ;;  %v5898_v51 = vrot.slane %v2031_v0, %v5598_v60 }
 0x3e3   : > { %3151 = vmatprep.subr.bf16.mxu0 %v4951_v40  ;;  %v5901_v40 = vrot.slane %v2356_v48, %v5598_v60 }
 0x3e5   : > { %3081 = vmatpush1.bf16.msra.mxu1 %v4946_v42 }
 0x3e6   : > { %3152 = vmatpush1.bf16.msra.mxu0 %v4949_v52  ;;  %3082 = vmatprep.subr.bf16.mxu1 %v4954_v54 }
 0x3e7   : > { %3153 = vmatprep.subr.bf16.mxu0 %v4957_v55 }
 0x3e9   : > { %3083 = vmatpush1.bf16.msra.mxu1 %v4952_v56 }
 0x3ea   : > { %3154 = vmatpush1.bf16.msra.mxu0 %v4955_v59  ;;  %3084 = vmatprep.subr.bf16.mxu1 %v4960_v63 }
 0x3eb   : > { %3155 = vmatprep.subr.bf16.mxu0 %v4963_v2 }
 0x3ed   : > { %3085 = vmatpush1.bf16.msra.mxu1 %v4958_v3 }
 0x3ee   : > { %3156 = vmatpush1.bf16.msra.mxu0 %v4961_v1  ;;  %3086 = vmatprep.subr.bf16.mxu1 %v4966_v6 }
 0x3ef   : > { %3157 = vmatprep.subr.bf16.mxu0 %v4969_v7 }
 0x3f1   : > { %3087 = vmatpush1.bf16.msra.mxu1 %v4964_v15 }
 0x3f2   : > { %3158 = vmatpush1.bf16.msra.mxu0 %v4967_v53  ;;  %3466 = vmatprep.subr.bf16.mxu1 %v5764_v21 }
 0x3f3   : > { %3792 = vmatprep.subr.bf16.mxu0 %v5764_v21 }
 0x3f4   : > { %3089 = vmatmul.mubr.bf16.vlgmr.msra.gmra.mrb[48].mxu1 %v5646_v47 }
 0x3f5   : > { %3160 = vmatmul.mubr.bf16.vlgmr.msra.gmra.mrb[64].mxu0 %v5646_v47  ;;  %3098 = vmatprep.mubr.bf16.mxu1 %v5679_v9  ;;  %v1378_v47 = vmax.f32 %v1319_v4, %v1350_v5 }
 0x3f6   : > { %3169 = vmatprep.mubr.bf16.mxu0 %v5679_v9  ;;  %v2648_v9 = vpack.c.bf16 %v1377_v14, %v1377_v14 }
 0x3f7   : > { %v2649_v57 = vpack.c.bf16 %v1378_v47, %v1378_v47 }
 0x3fc   : > { %3099 = vmatmul.mubr.bf16.gmra.mrb[52].mxu1 %v5671_v35 }
 0x3fd   : > { %3170 = vmatmul.mubr.bf16.gmra.mrb[68].mxu0 %v5671_v35  ;;  %3108 = vmatprep.mubr.bf16.mxu1 %v5689_v29  ;;  %v5762_v35 = vld [vmem:[#allocation12] ss:$8 sps:$4 sm:$0xff]  }
 0x3fe   : > { %3179 = vmatprep.mubr.bf16.mxu0 %v5689_v29  ;;  %3467 = vmatpush1.bf16.msra.mxu1 %v5762_v35  ;;  %v5780_v29 = vld [vmem:[#allocation12 + $0x20] ss:$8 sps:$4 sm:$0xff]  }
 0x3ff   : > { %3793 = vmatpush1.bf16.msra.mxu0 %v5762_v35  ;;  %3468 = vmatprep.subr.bf16.mxu1 %v5766_v12 }
 0x400   : > { %3794 = vmatprep.subr.bf16.mxu0 %v5766_v12 }
 0x402   : > { %3469 = vmatpush1.bf16.msra.mxu1 %v5772_v18 }
 0x403   : > { %3795 = vmatpush1.bf16.msra.mxu0 %v5772_v18 }
 0x404   : > { %3109 = vmatmul.mubr.bf16.gmra.mrb[56].mxu1 %v5686_v61 }
 0x405   : > { %3180 = vmatmul.mubr.bf16.gmra.mrb[72].mxu0 %v5686_v61  ;;  %3118 = vmatprep.mubr.bf16.mxu1 %v2649_v57  ;;  %v5778_v61 = vld [vmem:[#allocation12 + $0x24] ss:$8 sps:$4 sm:$0xff]  }
 0x406   : > { %3189 = vmatprep.mubr.bf16.mxu0 %v2649_v57  ;;  %3470 = vmatprep.subr.bf16.mxu1 %v5778_v61 }
 0x407   : > { %3796 = vmatprep.subr.bf16.mxu0 %v5778_v61  ;;  %3471 = vmatpush1.bf16.msra.mxu1 %v5780_v29 }
 0x408   : > { %3797 = vmatpush1.bf16.msra.mxu0 %v5780_v29  ;;  %3472 = vmatprep.subr.bf16.mxu1 %v5782_v19 }
 0x409   : > { %3798 = vmatprep.subr.bf16.mxu0 %v5782_v19 }
 0x40b   : > { %3473 = vmatpush1.bf16.msra.mxu1 %v5788_v20 }
 0x40c   : > { %3119 = vmatmul.mubr.bf16.gmra.mrb[60].mxu1 %v2648_v9  ;;  %3799 = vmatpush1.bf16.msra.mxu0 %v5788_v20 }
 0x40d   : > { %3190 = vmatmul.mubr.bf16.gmra.mrb[76].mxu0 %v2648_v9  ;;  %3474 = vmatprep.subr.bf16.mxu1 %v5794_v22 }
 0x40e   : > { %3800 = vmatprep.subr.bf16.mxu0 %v5794_v22 }
 0x40f   : > { %3475 = vmatpush1.bf16.msra.mxu1 %v5796_v62 }
 0x410   : > { %3801 = vmatpush1.bf16.msra.mxu0 %v5796_v62  ;;  %3476 = vmatprep.subr.bf16.mxu1 %v5798_v23 }
 0x411   : > { %3802 = vmatprep.subr.bf16.mxu0 %v5798_v23 }
 0x413   : > { %3477 = vmatpush1.bf16.msra.mxu1 %v5804_v24 }
 0x414   : > { %3803 = vmatpush1.bf16.msra.mxu0 %v5804_v24  ;;  %3478 = vmatprep.subr.bf16.mxu1 %v5808_v25 }
 0x415   : > { %3804 = vmatprep.subr.bf16.mxu0 %v5808_v25 }
 0x417   : > { %3479 = vmatpush1.bf16.msra.mxu1 %v5812_v26 }
 0x418   : > { %3805 = vmatpush1.bf16.msra.mxu0 %v5812_v26  ;;  %3480 = vmatprep.subr.bf16.mxu1 %v5816_v27 }
 0x419   : > { %3806 = vmatprep.subr.bf16.mxu0 %v5816_v27 }
 0x41b   : > { %3481 = vmatpush1.bf16.msra.mxu1 %v5820_v28 }
 0x41c   : > { %3807 = vmatpush1.bf16.msra.mxu0 %v5820_v28  ;;  %3482 = vmatprep.subr.bf16.mxu1 %v5824_v11 }
 0x41d   : > { %3808 = vmatprep.subr.bf16.mxu0 %v5824_v11 }
 0x41f   : > { %3483 = vmatpush1.bf16.msra.mxu1 %v5828_v30 }
 0x420   : > { %3809 = vmatpush1.bf16.msra.mxu0 %v5828_v30  ;;  %3484 = vmatprep.subr.bf16.mxu1 %v5832_v31 }
 0x421   : > { %3810 = vmatprep.subr.bf16.mxu0 %v5832_v31 }
 0x423   : > { %3485 = vmatpush1.bf16.msra.mxu1 %v5836_v13 }
 0x424   : > { %3811 = vmatpush1.bf16.msra.mxu0 %v5836_v13  ;;  %3486 = vmatprep.subr.bf16.mxu1 %v5840_v32 }
 0x425   : > { %3812 = vmatprep.subr.bf16.mxu0 %v5840_v32 }
 0x427   : > { %3487 = vmatpush1.bf16.msra.mxu1 %v5844_v33 }
 0x428   : > { %3813 = vmatpush1.bf16.msra.mxu0 %v5844_v33  ;;  %3488 = vmatprep.subr.bf16.mxu1 %v5848_v34 }
 0x429   : > { %3814 = vmatprep.subr.bf16.mxu0 %v5848_v34 }
 0x42b   : > { %3489 = vmatpush1.bf16.msra.mxu1 %v5852_v36 }
 0x42c   : > { %3815 = vmatpush1.bf16.msra.mxu0 %v5852_v36  ;;  %3490 = vmatprep.subr.bf16.mxu1 %v5856_v37 }
 0x42d   : > { %3816 = vmatprep.subr.bf16.mxu0 %v5856_v37 }
 0x42f   : > { %3491 = vmatpush1.bf16.msra.mxu1 %v5860_v38 }
 0x430   : > { %3817 = vmatpush1.bf16.msra.mxu0 %v5860_v38  ;;  %3492 = vmatprep.subr.bf16.mxu1 %v5866_v39 }
 0x431   : > { %3818 = vmatprep.subr.bf16.mxu0 %v5866_v39 }
 0x433   : > { %3493 = vmatpush1.bf16.msra.mxu1 %v5868_v41 }
 0x434   : > { %3819 = vmatpush1.bf16.msra.mxu0 %v5868_v41  ;;  %3494 = vmatprep.subr.bf16.mxu1 %v5874_v43 }
 0x435   : > { %3820 = vmatprep.subr.bf16.mxu0 %v5874_v43 }
 0x437   : > { %3495 = vmatpush1.bf16.msra.mxu1 %v5876_v44 }
 0x438   : > { %3821 = vmatpush1.bf16.msra.mxu0 %v5876_v44  ;;  %3496 = vmatprep.subr.bf16.mxu1 %v5882_v45 }
 0x439   : > { %3822 = vmatprep.subr.bf16.mxu0 %v5882_v45 }
 0x43b   : > { %3497 = vmatpush1.bf16.msra.mxu1 %v5884_v46 }
 0x43c   : > { %3823 = vmatpush1.bf16.msra.mxu0 %v5884_v46  ;;  %4459 = vmatprep.subr.bf16.mxu1 %v5764_v21 }
 0x487   : > { %v2237_v42 = vpop.f32.mrb[32].mxu1  ;;  %v2562_v52 = vpop.f32.mrb[48].mxu0 }
 0x488   : > { %v2238_v54 = vadd.f32 %v2237_v42, %v5892_v49  ;;  %v2563_v55 = vadd.f32 %v2562_v52, %v5895_v50  ;;  %v2239_v56 = vpop.f32.mrb[33].mxu1  ;;  %v2564_v59 = vpop.f32.mrb[49].mxu0 }
 0x489   : > { %v2240_v63 = vadd.f32 %v2239_v56, %v5898_v51  ;;  %v2565_v2 = vadd.f32 %v2564_v59, %v5901_v40  ;;  %v2241_v3 = vpop.f32.mrb[34].mxu1  ;;  %v2566_v1 = vpop.f32.mrb[50].mxu0 }
 0x48a   : > { %v2274_v6 = vmul.f32 0.01, %v2238_v54  ;;  %v2599_v7 = vmul.f32 0.01, %v2563_v55  ;;  %v2242_v15 = vadd.f32 %v2241_v3, %v5892_v49  ;;  %v2567_v53 = vadd.f32 %v2566_v1, %v5895_v50  ;;  %v2243_v4 = vpop.f32.mrb[35].mxu1  ;;  %v2568_v5 = vpop.f32.mrb[51].mxu0 }
 0x48b   : > { %v2275_v16 = vmul.f32 0.01, %v2240_v63  ;;  %v2600_v47 = vmul.f32 0.01, %v2565_v2  ;;  %v2244_v17 = vadd.f32 %v2243_v4, %v5898_v51  ;;  %v2569_v57 = vadd.f32 %v2568_v5, %v5901_v40 }
 0x48c   : > { %v2288_v14 = vmax.f32 %v2238_v54, %v2274_v6  ;;  %v2613_v9 = vmax.f32 %v2563_v55, %v2599_v7  ;;  %v2276_v21 = vmul.f32 0.01, %v2242_v15  ;;  %v2601_v0 = vmul.f32 0.01, %v2567_v53 }
 0x48d   : > { %v2289_v48 = vmax.f32 %v2240_v63, %v2275_v16  ;;  %v2614_v42 = vmax.f32 %v2565_v2, %v2600_v47  ;;  %v2277_v52 = vmul.f32 0.01, %v2244_v17  ;;  %v2602_v56 = vmul.f32 0.01, %v2569_v57 }
 0x48e   : > { %2302 = vst [vmem:[%s5913_s24] sm:$0xff] %v2288_v14  ;;  %4287 = vst [vmem:[%s5913_s24 + $0x70] sm:$0xff] %v2613_v9  ;;  %v2290_v59 = vmax.f32 %v2242_v15, %v2276_v21  ;;  %v2615_v3 = vmax.f32 %v2567_v53, %v2601_v0 }
 0x48f   : > { %2303 = vst [vmem:[%s5913_s24 + $0x8] sm:$0xff] %v2289_v48  ;;  %4288 = vst [vmem:[%s5913_s24 + $0x78] sm:$0xff] %v2614_v42  ;;  %v2291_v1 = vmax.f32 %v2244_v17, %v2277_v52  ;;  %v2616_v4 = vmax.f32 %v2569_v57, %v2602_v56  ;;  %v2247_v54 = vpop.f32.mrb[36].mxu1 }
 0x490   : > { %2304 = vst [vmem:[%s5913_s24 + $0x10] sm:$0xff] %v2290_v59  ;;  %4289 = vst [vmem:[%s5913_s24 + $0x80] sm:$0xff] %v2615_v3  ;;  %v2248_v55 = vadd.f32 %v2247_v54, %v5892_v49  ;;  %v2249_v6 = vpop.f32.mrb[37].mxu1 }
 0x491   : > { %2305 = vst [vmem:[%s5913_s24 + $0x18] sm:$0xff] %v2291_v1  ;;  %4290 = vst [vmem:[%s5913_s24 + $0x88] sm:$0xff] %v2616_v4  ;;  %v2250_v63 = vadd.f32 %v2249_v6, %v5898_v51  ;;  %v2251_v2 = vpop.f32.mrb[38].mxu1 }
 0x492   : > { %v2278_v7 = vmul.f32 0.01, %v2248_v55  ;;  %v2252_v15 = vadd.f32 %v2251_v2, %v5892_v49  ;;  %v2253_v53 = vpop.f32.mrb[39].mxu1 }
 0x493   : > { %v2279_v5 = vmul.f32 0.01, %v2250_v63  ;;  %v2254_v16 = vadd.f32 %v2253_v53, %v5898_v51 }
 0x494   : > { %v2292_v47 = vmax.f32 %v2248_v55, %v2278_v7  ;;  %v2572_v17 = vpop.f32.mrb[52].mxu0  ;;  %v2280_v57 = vmul.f32 0.01, %v2252_v15 }
 0x495   : > { %v2573_v14 = vadd.f32 %v2572_v17, %v5895_v50  ;;  %v2293_v9 = vmax.f32 %v2250_v63, %v2279_v5  ;;  %v2574_v21 = vpop.f32.mrb[53].mxu0  ;;  %v2281_v0 = vmul.f32 0.01, %v2254_v16 }
 0x496   : > { %2306 = vst [vmem:[%s5913_s24 + $0x20] sm:$0xff] %v2292_v47  ;;  %v2575_v48 = vadd.f32 %v2574_v21, %v5901_v40  ;;  %v2294_v42 = vmax.f32 %v2252_v15, %v2280_v57  ;;  %v2576_v52 = vpop.f32.mrb[54].mxu0 }
 0x497   : > { %v2603_v56 = vmul.f32 0.01, %v2573_v14  ;;  %2307 = vst [vmem:[%s5913_s24 + $0x28] sm:$0xff] %v2293_v9  ;;  %v2577_v59 = vadd.f32 %v2576_v52, %v5895_v50  ;;  %v2295_v3 = vmax.f32 %v2254_v16, %v2281_v0  ;;  %v2578_v1 = vpop.f32.mrb[55].mxu0  ;;  %v2257_v4 = vpop.f32.mrb[40].mxu1 }
 0x498   : > { %v2604_v54 = vmul.f32 0.01, %v2575_v48  ;;  %2308 = vst [vmem:[%s5913_s24 + $0x30] sm:$0xff] %v2294_v42  ;;  %v2579_v55 = vadd.f32 %v2578_v1, %v5901_v40  ;;  %v2258_v6 = vadd.f32 %v2257_v4, %v5892_v49  ;;  %v2259_v63 = vpop.f32.mrb[41].mxu1 }
 0x499   : > { %v2617_v2 = vmax.f32 %v2573_v14, %v2603_v56  ;;  %v2605_v7 = vmul.f32 0.01, %v2577_v59  ;;  %2309 = vst [vmem:[%s5913_s24 + $0x38] sm:$0xff] %v2295_v3  ;;  %v2260_v15 = vadd.f32 %v2259_v63, %v5898_v51  ;;  %v2261_v53 = vpop.f32.mrb[42].mxu1 }
 0x49a   : > { %v2618_v5 = vmax.f32 %v2575_v48, %v2604_v54  ;;  %v2606_v16 = vmul.f32 0.01, %v2579_v55  ;;  %v2282_v47 = vmul.f32 0.01, %v2258_v6  ;;  %v2262_v17 = vadd.f32 %v2261_v53, %v5892_v49  ;;  %v2263_v57 = vpop.f32.mrb[43].mxu1 }
 0x49b   : > { %4291 = vst [vmem:[%s5913_s24 + $0x90] sm:$0xff] %v2617_v2  ;;  %v2619_v9 = vmax.f32 %v2577_v59, %v2605_v7  ;;  %v2283_v21 = vmul.f32 0.01, %v2260_v15  ;;  %v2264_v0 = vadd.f32 %v2263_v57, %v5898_v51 }
 0x49c   : > { %4292 = vst [vmem:[%s5913_s24 + $0x98] sm:$0xff] %v2618_v5  ;;  %v2620_v14 = vmax.f32 %v2579_v55, %v2606_v16  ;;  %v2296_v42 = vmax.f32 %v2258_v6, %v2282_v47  ;;  %v2582_v52 = vpop.f32.mrb[56].mxu0  ;;  %v2284_v56 = vmul.f32 0.01, %v2262_v17 }
 0x49d   : > { %4293 = vst [vmem:[%s5913_s24 + $0xa0] sm:$0xff] %v2619_v9  ;;  %v2583_v48 = vadd.f32 %v2582_v52, %v5895_v50  ;;  %v2297_v3 = vmax.f32 %v2260_v15, %v2283_v21  ;;  %v2584_v1 = vpop.f32.mrb[57].mxu0  ;;  %v2285_v4 = vmul.f32 0.01, %v2264_v0 }
 0x49e   : > { %4294 = vst [vmem:[%s5913_s24 + $0xa8] sm:$0xff] %v2620_v14  ;;  %2310 = vst [vmem:[%s5913_s24 + $0x40] sm:$0xff] %v2296_v42  ;;  %v2585_v59 = vadd.f32 %v2584_v1, %v5901_v40  ;;  %v2298_v54 = vmax.f32 %v2262_v17, %v2284_v56  ;;  %v2586_v63 = vpop.f32.mrb[58].mxu0 }
 0x49f   : > { %v2607_v2 = vmul.f32 0.01, %v2583_v48  ;;  %2311 = vst [vmem:[%s5913_s24 + $0x48] sm:$0xff] %v2297_v3  ;;  %v2587_v55 = vadd.f32 %v2586_v63, %v5895_v50  ;;  %v2299_v6 = vmax.f32 %v2264_v0, %v2285_v4  ;;  %v2588_v7 = vpop.f32.mrb[59].mxu0  ;;  %v2267_v53 = vpop.f32.mrb[44].mxu1 }
 0x4a0   : > { %v2608_v5 = vmul.f32 0.01, %v2585_v59  ;;  %2312 = vst [vmem:[%s5913_s24 + $0x50] sm:$0xff] %v2298_v54  ;;  %v2589_v15 = vadd.f32 %v2588_v7, %v5901_v40  ;;  %v2268_v16 = vadd.f32 %v2267_v53, %v5892_v49  ;;  %v2269_v47 = vpop.f32.mrb[45].mxu1 }
 0x4a1   : > { %v2621_v57 = vmax.f32 %v2583_v48, %v2607_v2  ;;  %v2609_v17 = vmul.f32 0.01, %v2587_v55  ;;  %2313 = vst [vmem:[%s5913_s24 + $0x58] sm:$0xff] %v2299_v6  ;;  %v2270_v9 = vadd.f32 %v2269_v47, %v5898_v51  ;;  %v2271_v21 = vpop.f32.mrb[46].mxu1 }
 0x4a2   : > { %v2622_v0 = vmax.f32 %v2585_v59, %v2608_v5  ;;  %v2610_v14 = vmul.f32 0.01, %v2589_v15  ;;  %v2286_v42 = vmul.f32 0.01, %v2268_v16  ;;  %v2272_v52 = vpop.f32.mrb[47].mxu1 }
 0x4a3   : > { %4295 = vst [vmem:[%s5913_s24 + $0xb0] sm:$0xff] %v2621_v57  ;;  %v2623_v56 = vmax.f32 %v2587_v55, %v2609_v17  ;;  %v2287_v3 = vmul.f32 0.01, %v2270_v9  ;;  %v2714_v5 = vld [vmem:[#allocation10] sm:$0xf] }
 0x4a4   : > { %4296 = vst [vmem:[%s5913_s24 + $0xb8] sm:$0xff] %v2622_v0  ;;  %v2624_v49 = vmax.f32 %v2589_v15, %v2610_v14  ;;  %v2300_v1 = vmax.f32 %v2268_v16, %v2286_v42  ;;  %v2592_v48 = vpop.f32.mrb[60].mxu0  ;;  %v5966_v15 = vrot.slane %v2714_v5, %v5595_v58  ;;  %v5972_v16 = vrot.slane %v2714_v5, %v5598_v60 }
 0x4a5   : > { %4297 = vst [vmem:[%s5913_s24 + $0xc0] sm:$0xff] %v2623_v56  ;;  %v2593_v51 = vadd.f32 %v2592_v48, %v5895_v50  ;;  %v2301_v4 = vmax.f32 %v2270_v9, %v2287_v3  ;;  %v2594_v54 = vpop.f32.mrb[61].mxu0  ;;  %v5969_v50 = vrot.slane %v2714_v5, %v5621_v8 }
 0x4a6   : > { %4298 = vst [vmem:[%s5913_s24 + $0xc8] sm:$0xff] %v2624_v49  ;;  %2314 = vst [vmem:[%s5913_s24 + $0x60] sm:$0xff] %v2300_v1  ;;  %v2595_v59 = vadd.f32 %v2594_v54, %v5901_v40  ;;  %v2596_v63 = vpop.f32.mrb[62].mxu0  ;;  %v5975_v40 = vrot.slane %v2714_v5, %v5624_v10 }
 0x4a7   : > { %v2611_v2 = vmul.f32 0.01, %v2593_v51  ;;  %2315 = vst [vmem:[%s5913_s24 + $0x68] sm:$0xff] %v2301_v4  ;;  %v2597_v55 = vpop.f32.mrb[63].mxu0 }
 0x4a8   : > { %v2612_v6 = vmul.f32 0.01, %v2595_v59 }
 0x4a9   : > { %v2625_v7 = vmax.f32 %v2593_v51, %v2611_v2 }
 0x4aa   : > { %v2626_v53 = vmax.f32 %v2595_v59, %v2612_v6 }
 0x4ab   : > { %4299 = vst [vmem:[%s5913_s24 + $0xd0] sm:$0xff] %v2625_v7 }
 0x4ac   : > { %4300 = vst [vmem:[%s5913_s24 + $0xd8] sm:$0xff] %v2626_v53 }
 0x4c7   : > { %v3090_v47 = vpop.f32.mrb[48].mxu1 }
 0x4c8   : > { %v3091_v57 = vadd.f32 %v3090_v47, %v5966_v15  ;;  %v3161_v17 = vpop.f32.mrb[64].mxu0  ;;  %v3092_v9 = vpop.f32.mrb[49].mxu1 }
 0x4c9   : > { %v3162_v21 = vadd.f32 %v3161_v17, %v5969_v50  ;;  %v3093_v0 = vadd.f32 %v3092_v9, %v5972_v16  ;;  %v3163_v14 = vpop.f32.mrb[65].mxu0  ;;  %v3094_v42 = vpop.f32.mrb[50].mxu1 }
 0x4ca   : > { %v3198_v52 = vmul.f32 0.01, %v3091_v57  ;;  %v3164_v8 = vadd.f32 %v3163_v14, %v5975_v40  ;;  %v3095_v56 = vadd.f32 %v3094_v42, %v5966_v15  ;;  %v3165_v3 = vpop.f32.mrb[66].mxu0  ;;  %v3096_v49 = vpop.f32.mrb[51].mxu1 }
 0x4cb   : > { %v3200_v10 = vmul.f32 0.01, %v3162_v21  ;;  %v3199_v1 = vmul.f32 0.01, %v3093_v0  ;;  %v3166_v48 = vadd.f32 %v3165_v3, %v5969_v50  ;;  %v3097_v51 = vadd.f32 %v3096_v49, %v5972_v16  ;;  %v3167_v4 = vpop.f32.mrb[67].mxu0 }
 0x4cc   : > { %v3201_v54 = vmul.f32 0.01, %v3164_v8  ;;  %v3202_v59 = vmul.f32 0.01, %v3095_v56  ;;  %v3168_v63 = vadd.f32 %v3167_v4, %v5975_v40  ;;  %v3226_v6 = vmax.f32 %v3091_v57, %v3198_v52 }
 0x4cd   : > { %v3204_v2 = vmul.f32 0.01, %v3166_v48  ;;  %v3203_v55 = vmul.f32 0.01, %v3097_v51  ;;  %v3228_v5 = vmax.f32 %v3162_v21, %v3200_v10  ;;  %v3227_v47 = vmax.f32 %v3093_v0, %v3199_v1 }
 0x4ce   : > { %v3230_v7 = vmax.f32 %v3095_v56, %v3202_v59  ;;  %v3205_v53 = vmul.f32 0.01, %v3168_v63  ;;  %v3229_v42 = vmax.f32 %v3164_v8, %v3201_v54 }
 0x4cf   : > { %v3232_v17 = vmax.f32 %v3166_v48, %v3204_v2  ;;  %v3231_v9 = vmax.f32 %v3097_v51, %v3203_v55  ;;  %v3100_v14 = vpop.f32.mrb[52].mxu1 }
 0x4d0   : > { %v3254_v60 = vpack.c.bf16 %v3230_v7, %v3226_v6  ;;  %v3233_v3 = vmax.f32 %v3168_v63, %v3205_v53  ;;  %v3101_v49 = vadd.f32 %v3100_v14, %v5966_v15  ;;  %v3171_v58 = vpop.f32.mrb[68].mxu0  ;;  %v3102_v46 = vpop.f32.mrb[53].mxu1 }
 0x4d1   : > { %v3580_v45 = vpack.c.bf16 %v3232_v17, %v3228_v5  ;;  %v3172_v4 = vadd.f32 %v3171_v58, %v5969_v50  ;;  %v3103_v44 = vadd.f32 %v3102_v46, %v5972_v16  ;;  %v3173_v57 = vpop.f32.mrb[69].mxu0  ;;  %v3104_v52 = vpop.f32.mrb[54].mxu1  ;;  %v3255_v56 = vpack.c.bf16 %v3231_v9, %v3227_v47 }
 0x4d2   : > { %v3206_v21 = vmul.f32 0.01, %v3101_v49  ;;  %v3174_v0 = vadd.f32 %v3173_v57, %v5975_v40  ;;  %v3105_v10 = vadd.f32 %v3104_v52, %v5966_v15  ;;  %v3175_v8 = vpop.f32.mrb[70].mxu0  ;;  %v3106_v1 = vpop.f32.mrb[55].mxu1  ;;  %v3581_v48 = vpack.c.bf16 %v3233_v3, %v3229_v42 }
 0x4d3   : > { %v3208_v51 = vmul.f32 0.01, %v3172_v4  ;;  %v3207_v54 = vmul.f32 0.01, %v3103_v44  ;;  %v3176_v59 = vadd.f32 %v3175_v8, %v5969_v50  ;;  %v3107_v63 = vadd.f32 %v3106_v1, %v5972_v16  ;;  %v3177_v58 = vpop.f32.mrb[71].mxu0  ;;  %3498 = vmatprep.mubr.bf16.mxu1 %v3255_v56 }
 0x4d4   : > { %v3209_v46 = vmul.f32 0.01, %v3174_v0  ;;  %v3210_v2 = vmul.f32 0.01, %v3105_v10  ;;  %v3178_v55 = vadd.f32 %v3177_v58, %v5975_v40  ;;  %3824 = vmatprep.mubr.bf16.mxu0 %v3581_v48  ;;  %3499 = vmatmul.mubr.bf16.vlgmr.msra.gmra.mrb[64].mxu1 %v3254_v60  ;;  %v3234_v53 = vmax.f32 %v3101_v49, %v3206_v21 }
 0x4d5   : > { %v3212_v6 = vmul.f32 0.01, %v3176_v59  ;;  %v3211_v7 = vmul.f32 0.01, %v3107_v63  ;;  %4475 = vmatpush1.bf16.msra.mxu1 %v5762_v35  ;;  %3825 = vmatmul.mubr.bf16.vlgmr.msra.gmra.mrb[80].mxu0 %v3580_v45  ;;  %v3236_v17 = vmax.f32 %v3172_v4, %v3208_v51  ;;  %v3235_v9 = vmax.f32 %v3103_v44, %v3207_v54 }
 0x4d6   : > { %v3238_v5 = vmax.f32 %v3105_v10, %v3210_v2  ;;  %v3213_v47 = vmul.f32 0.01, %v3178_v55  ;;  %4460 = vmatprep.subr.bf16.mxu1 %v5766_v12  ;;  %v3237_v57 = vmax.f32 %v3174_v0, %v3209_v46 }
 0x4d7   : > { %v3240_v14 = vmax.f32 %v3176_v59, %v3212_v6  ;;  %v3239_v42 = vmax.f32 %v3107_v63, %v3211_v7  ;;  %v3110_v3 = vpop.f32.mrb[56].mxu1 }
 0x4d8   : > { %v3241_v52 = vmax.f32 %v3178_v55, %v3213_v47  ;;  %v3111_v56 = vadd.f32 %v3110_v3, %v5966_v15  ;;  %v3181_v60 = vpop.f32.mrb[72].mxu0  ;;  %v3112_v8 = vpop.f32.mrb[57].mxu1  ;;  %v3256_v1 = vpack.c.bf16 %v3238_v5, %v3234_v53 }
 0x4d9   : > { %v3182_v35 = vadd.f32 %v3181_v60, %v5969_v50  ;;  %v3113_v45 = vadd.f32 %v3112_v8, %v5972_v16  ;;  %v3183_v49 = vpop.f32.mrb[73].mxu0  ;;  %4476 = vmatpush1.bf16.msra.mxu1 %v5772_v18  ;;  %v3114_v12 = vpop.f32.mrb[58].mxu1  ;;  %v3257_v4 = vpack.c.bf16 %v3239_v42, %v3235_v9  ;;  %v3582_v44 = vpack.c.bf16 %v3240_v14, %v3236_v17 }
 0x4da   : > { %v3214_v21 = vmul.f32 0.01, %v3111_v56  ;;  %v3184_v10 = vadd.f32 %v3183_v49, %v5975_v40  ;;  %v3115_v0 = vadd.f32 %v3114_v12, %v5966_v15  ;;  %v3185_v48 = vpop.f32.mrb[74].mxu0  ;;  %v3116_v51 = vpop.f32.mrb[59].mxu1  ;;  %4461 = vmatprep.subr.bf16.mxu1 %v5778_v61  ;;  %v3583_v54 = vpack.c.bf16 %v3241_v52, %v3237_v57 }
 0x4db   : > { %v3216_v59 = vmul.f32 0.01, %v3182_v35  ;;  %v3215_v63 = vmul.f32 0.01, %v3113_v45  ;;  %v3186_v58 = vadd.f32 %v3185_v48, %v5969_v50  ;;  %v3117_v46 = vadd.f32 %v3116_v51, %v5972_v16  ;;  %v3187_v18 = vpop.f32.mrb[75].mxu0  ;;  %3508 = vmatprep.mubr.bf16.mxu1 %v3257_v4 }
 0x4dc   : > { %v3217_v2 = vmul.f32 0.01, %v3184_v10  ;;  %v3218_v55 = vmul.f32 0.01, %v3115_v0  ;;  %v3188_v6 = vadd.f32 %v3187_v18, %v5975_v40  ;;  %3834 = vmatprep.mubr.bf16.mxu0 %v3583_v54  ;;  %3509 = vmatmul.mubr.bf16.gmra.mrb[68].mxu1 %v3256_v1  ;;  %v3242_v61 = vmax.f32 %v3111_v56, %v3214_v21 }
 0x4dd   : > { %v3220_v7 = vmul.f32 0.01, %v3186_v58  ;;  %v3219_v53 = vmul.f32 0.01, %v3117_v46  ;;  %4477 = vmatpush1.bf16.msra.mxu1 %v5780_v29  ;;  %3835 = vmatmul.mubr.bf16.gmra.mrb[84].mxu0 %v3582_v44  ;;  %v3244_v17 = vmax.f32 %v3182_v35, %v3216_v59  ;;  %v3243_v9 = vmax.f32 %v3113_v45, %v3215_v63 }
 0x4de   : > { %v3246_v5 = vmax.f32 %v3115_v0, %v3218_v55  ;;  %v3221_v47 = vmul.f32 0.01, %v3188_v6  ;;  %4462 = vmatprep.subr.bf16.mxu1 %v5782_v19  ;;  %v3245_v57 = vmax.f32 %v3184_v10, %v3217_v2 }
 0x4df   : > { %v3248_v14 = vmax.f32 %v3186_v58, %v3220_v7  ;;  %v3247_v42 = vmax.f32 %v3117_v46, %v3219_v53  ;;  %v3120_v3 = vpop.f32.mrb[60].mxu1 }
 0x4e0   : > { %v3249_v52 = vmax.f32 %v3188_v6, %v3221_v47  ;;  %v3121_v60 = vadd.f32 %v3120_v3, %v5966_v15  ;;  %v3191_v8 = vpop.f32.mrb[76].mxu0  ;;  %v3122_v1 = vpop.f32.mrb[61].mxu1  ;;  %v3258_v49 = vpack.c.bf16 %v3246_v5, %v3242_v61 }
 0x4e1   : > { %v3584_v12 = vpack.c.bf16 %v3248_v14, %v3244_v17  ;;  %v3192_v29 = vadd.f32 %v3191_v8, %v5969_v50  ;;  %v3123_v56 = vadd.f32 %v3122_v1, %v5972_v16  ;;  %v3193_v4 = vpop.f32.mrb[77].mxu0  ;;  %4478 = vmatpush1.bf16.msra.mxu1 %v5788_v20  ;;  %v3124_v19 = vpop.f32.mrb[62].mxu1  ;;  %v3259_v35 = vpack.c.bf16 %v3247_v42, %v3243_v9 }
 0x4e2   : > { %v3222_v45 = vmul.f32 0.01, %v3121_v60  ;;  %v3194_v44 = vadd.f32 %v3193_v4, %v5975_v40  ;;  %v3195_v21 = vpop.f32.mrb[78].mxu0  ;;  %v3125_v10 = vpop.f32.mrb[63].mxu1  ;;  %4463 = vmatprep.subr.bf16.mxu1 %v5794_v22  ;;  %v3585_v15 = vpack.c.bf16 %v3249_v52, %v3245_v57 }
 0x4e3   : > { %v3223_v0 = vmul.f32 0.01, %v3123_v56  ;;  %v3196_v48 = vpop.f32.mrb[79].mxu0  ;;  %3518 = vmatprep.mubr.bf16.mxu1 %v3259_v35 }
 0x4e4   : > { %3519 = vmatmul.mubr.bf16.gmra.mrb[72].mxu1 %v3258_v49  ;;  %v3250_v16 = vmax.f32 %v3121_v60, %v3222_v45  ;;  %v3225_v22 = vmul.f32 0.01, %v3194_v44 }
 0x4e5   : > { %v3251_v50 = vmax.f32 %v3123_v56, %v3223_v0  ;;  %4479 = vmatpush1.bf16.msra.mxu1 %v5796_v62  ;;  %v6145_v62 = vld [vmem:[#allocation22_spill] sm:$0xff] }
 0x4e6   : > { %4464 = vmatprep.subr.bf16.mxu1 %v5798_v23  ;;  %v3260_v40 = vpack.c.bf16 %v3250_v16, %v3250_v16  ;;  %v6146_v23 = vld [vmem:[#allocation23_spill] sm:$0xff] }
 0x4e7   : > { %v3261_v20 = vpack.c.bf16 %v3251_v50, %v3251_v50 }
 0x4e9   : > { %4480 = vmatpush1.bf16.msra.mxu1 %v5804_v24  ;;  %3528 = vmatprep.mubr.bf16.mxu1 %v3261_v20  ;;  %v3253_v24 = vmax.f32 %v3194_v44, %v3225_v22 }
 0x4ea   : > { %4465 = vmatprep.subr.bf16.mxu1 %v5808_v25  ;;  %v6147_v25 = vld [vmem:[#allocation24_spill] sm:$0xff] }
 0x4ec   : > { %3529 = vmatmul.mubr.bf16.gmra.mrb[76].mxu1 %v3260_v40 }
 0x4ed   : > { %4481 = vmatpush1.bf16.msra.mxu1 %v5812_v26  ;;  %3844 = vmatprep.mubr.bf16.mxu1 %v3585_v15  ;;  %v3224_v26 = vmul.f32 0.01, %v3192_v29 }
 0x4ee   : > { %4466 = vmatprep.subr.bf16.mxu1 %v5816_v27  ;;  %v3587_v27 = vpack.c.bf16 %v3253_v24, %v3253_v24 }
 0x4f1   : > { %4482 = vmatpush1.bf16.msra.mxu1 %v5820_v28  ;;  %v3252_v28 = vmax.f32 %v3192_v29, %v3224_v26 }
 0x4f2   : > { %4467 = vmatprep.subr.bf16.mxu1 %v5824_v11 }
 0x4f3   : > { %v3586_v11 = vpack.c.bf16 %v3252_v28, %v3252_v28 }
 0x4f5   : > { %4483 = vmatpush1.bf16.msra.mxu1 %v5828_v30  ;;  %v3294_v30 = vld [vmem:[#allocation13] sm:$0x3] }
 0x4f6   : > { %4468 = vmatprep.subr.bf16.mxu1 %v5832_v31  ;;  %v3620_v31 = vld [vmem:[#allocation13] sm:$0x3] }
 0x4f9   : > { %4484 = vmatpush1.bf16.msra.mxu1 %v5836_v13  ;;  %v6148_v13 = vld [vmem:[#allocation20_spill] sm:$0xff] }
 0x4fa   : > { %4469 = vmatprep.subr.bf16.mxu1 %v5840_v32  ;;  %v6037_v32 = vrot.slane %v3294_v30, %v6148_v13 }
 0x4fd   : > { %4485 = vmatpush1.bf16.msra.mxu1 %v5844_v33  ;;  %v6040_v33 = vrot.slane %v3620_v31, %v6148_v13 }
 0x4fe   : > { %4470 = vmatprep.subr.bf16.mxu1 %v5848_v34  ;;  %v6149_v34 = vld [vmem:[#allocation21_spill] sm:$0xff] }
 0x501   : > { %4486 = vmatpush1.bf16.msra.mxu1 %v5852_v36  ;;  %v6043_v36 = vrot.slane %v3294_v30, %v6149_v34 }
 0x502   : > { %4471 = vmatprep.subr.bf16.mxu1 %v5856_v37  ;;  %v6046_v37 = vrot.slane %v3620_v31, %v6149_v34 }
 0x505   : > { %4487 = vmatpush1.bf16.msra.mxu1 %v5860_v38 }
 0x506   : > { %4472 = vmatprep.subr.bf16.mxu1 %v5866_v39 }
 0x509   : > { %4488 = vmatpush1.bf16.msra.mxu1 %v5868_v41 }
 0x50a   : > { %4473 = vmatprep.subr.bf16.mxu1 %v5874_v43 }
 0x50d   : > { %4489 = vmatpush1.bf16.msra.mxu1 %v6145_v62 }
 0x50e   : > { %4474 = vmatprep.subr.bf16.mxu1 %v6146_v23 }
 0x511   : > { %4490 = vmatpush1.bf16.msra.mxu1 %v6147_v25 }
 0x514   : > { %3845 = vmatmul.mubr.bf16.vlgmr.msra.gmra.mrb[80].mxu1 %v3584_v12 }
 0x515   : > { %3854 = vmatprep.mubr.bf16.mxu1 %v3587_v27 }
 0x51c   : > { %3855 = vmatmul.mubr.bf16.gmra.mrb[84].mxu1 %v3586_v11 }
 0x5a7   : > { %v3500_v38 = vpop.f32.mrb[64].mxu1 }
 0x5a8   : > { %v3501_v39 = vadd.f32 %v3500_v38, %v6037_v32  ;;  %v3826_v41 = vpop.f32.mrb[80].mxu0  ;;  %v3502_v43 = vpop.f32.mrb[65].mxu1 }
 0x5a9   : > { %v3827_v51 = vadd.f32 %v3826_v41, %v6040_v33  ;;  %v3503_v54 = vadd.f32 %v3502_v43, %v6043_v36  ;;  %v3828_v59 = vpop.f32.mrb[81].mxu0  ;;  %v3504_v63 = vpop.f32.mrb[66].mxu1 }
 0x5aa   : > { %v3537_v58 = vmul.f32 0.01, %v3501_v39  ;;  %v3829_v46 = vadd.f32 %v3828_v59, %v6046_v37  ;;  %v3505_v18 = vadd.f32 %v3504_v63, %v6037_v32  ;;  %v3830_v2 = vpop.f32.mrb[82].mxu0  ;;  %v3506_v55 = vpop.f32.mrb[67].mxu1 }
 0x5ab   : > { %v3863_v6 = vmul.f32 0.01, %v3827_v51  ;;  %v3538_v7 = vmul.f32 0.01, %v3503_v54  ;;  %v3831_v53 = vadd.f32 %v3830_v2, %v6040_v33  ;;  %v3507_v61 = vadd.f32 %v3506_v55, %v6043_v36  ;;  %v3832_v5 = vpop.f32.mrb[83].mxu0 }
 0x5ac   : > { %v3551_v47 = vmax.f32 %v3501_v39, %v3537_v58  ;;  %v3864_v17 = vmul.f32 0.01, %v3829_v46  ;;  %v3539_v9 = vmul.f32 0.01, %v3505_v18  ;;  %v3833_v14 = vadd.f32 %v3832_v5, %v6046_v37 }
 0x5ad   : > { %v3877_v42 = vmax.f32 %v3827_v51, %v3863_v6  ;;  %v3552_v3 = vmax.f32 %v3503_v54, %v3538_v7  ;;  %v3865_v57 = vmul.f32 0.01, %v3831_v53  ;;  %v3540_v52 = vmul.f32 0.01, %v3507_v61 }
 0x5ae   : > { %4397 = vst [vmem:[%s5913_s24 + $0xe0] sm:$0xff] %v3551_v47  ;;  %v3878_v60 = vmax.f32 %v3829_v46, %v3864_v17  ;;  %v3553_v8 = vmax.f32 %v3505_v18, %v3539_v9  ;;  %v3866_v1 = vmul.f32 0.01, %v3833_v14 }
 0x5af   : > { %4443 = vst [vmem:[%s5913_s24 + $0x150] sm:$0xff] %v3877_v42  ;;  %4398 = vst [vmem:[%s5913_s24 + $0xe8] sm:$0xff] %v3552_v3  ;;  %v3879_v49 = vmax.f32 %v3831_v53, %v3865_v57  ;;  %v3554_v12 = vmax.f32 %v3507_v61, %v3540_v52  ;;  %v3510_v29 = vpop.f32.mrb[68].mxu1 }
 0x5b0   : > { %4444 = vst [vmem:[%s5913_s24 + $0x158] sm:$0xff] %v3878_v60  ;;  %4399 = vst [vmem:[%s5913_s24 + $0xf0] sm:$0xff] %v3553_v8  ;;  %v3880_v56 = vmax.f32 %v3833_v14, %v3866_v1  ;;  %v3511_v4 = vadd.f32 %v3510_v29, %v6037_v32  ;;  %v3836_v19 = vpop.f32.mrb[84].mxu0  ;;  %v3512_v35 = vpop.f32.mrb[69].mxu1 }
 0x5b1   : > { %4445 = vst [vmem:[%s5913_s24 + $0x160] sm:$0xff] %v3879_v49  ;;  %4400 = vst [vmem:[%s5913_s24 + $0xf8] sm:$0xff] %v3554_v12  ;;  %v3837_v45 = vadd.f32 %v3836_v19, %v6040_v33  ;;  %v3513_v44 = vadd.f32 %v3512_v35, %v6043_v36  ;;  %v3838_v21 = vpop.f32.mrb[85].mxu0  ;;  %v3514_v10 = vpop.f32.mrb[70].mxu1 }
 0x5b2   : > { %4446 = vst [vmem:[%s5913_s24 + $0x168] sm:$0xff] %v3880_v56  ;;  %v3541_v15 = vmul.f32 0.01, %v3511_v4  ;;  %v3839_v0 = vadd.f32 %v3838_v21, %v6046_v37  ;;  %v3515_v48 = vadd.f32 %v3514_v10, %v6037_v32  ;;  %v3840_v50 = vpop.f32.mrb[86].mxu0  ;;  %v3516_v16 = vpop.f32.mrb[71].mxu1 }
 0x5b3   : > { %v3867_v20 = vmul.f32 0.01, %v3837_v45  ;;  %v3542_v40 = vmul.f32 0.01, %v3513_v44  ;;  %v3841_v22 = vadd.f32 %v3840_v50, %v6040_v33  ;;  %v3517_v62 = vadd.f32 %v3516_v16, %v6043_v36  ;;  %v3842_v23 = vpop.f32.mrb[87].mxu0 }
 0x5b4   : > { %v3555_v24 = vmax.f32 %v3511_v4, %v3541_v15  ;;  %v3868_v25 = vmul.f32 0.01, %v3839_v0  ;;  %v3543_v26 = vmul.f32 0.01, %v3515_v48  ;;  %v3843_v27 = vadd.f32 %v3842_v23, %v6046_v37 }
 0x5b5   : > { %v3881_v28 = vmax.f32 %v3837_v45, %v3867_v20  ;;  %v3556_v11 = vmax.f32 %v3513_v44, %v3542_v40  ;;  %v3869_v30 = vmul.f32 0.01, %v3841_v22  ;;  %v3544_v31 = vmul.f32 0.01, %v3517_v62 }
 0x5b6   : > { %4401 = vst [vmem:[%s5913_s24 + $0x100] sm:$0xff] %v3555_v24  ;;  %v3882_v13 = vmax.f32 %v3839_v0, %v3868_v25  ;;  %v3557_v34 = vmax.f32 %v3515_v48, %v3543_v26  ;;  %v3870_v38 = vmul.f32 0.01, %v3843_v27 }
 0x5b7   : > { %4447 = vst [vmem:[%s5913_s24 + $0x170] sm:$0xff] %v3881_v28  ;;  %4402 = vst [vmem:[%s5913_s24 + $0x108] sm:$0xff] %v3556_v11  ;;  %v3883_v39 = vmax.f32 %v3841_v22, %v3869_v30  ;;  %v3558_v41 = vmax.f32 %v3517_v62, %v3544_v31  ;;  %v3520_v43 = vpop.f32.mrb[72].mxu1 }
 0x5b8   : > { %4448 = vst [vmem:[%s5913_s24 + $0x178] sm:$0xff] %v3882_v13  ;;  %4403 = vst [vmem:[%s5913_s24 + $0x110] sm:$0xff] %v3557_v34  ;;  %v3884_v51 = vmax.f32 %v3843_v27, %v3870_v38  ;;  %v3521_v54 = vadd.f32 %v3520_v43, %v6037_v32  ;;  %v3522_v59 = vpop.f32.mrb[73].mxu1 }
 0x5b9   : > { %4449 = vst [vmem:[%s5913_s24 + $0x180] sm:$0xff] %v3883_v39  ;;  %4404 = vst [vmem:[%s5913_s24 + $0x118] sm:$0xff] %v3558_v41  ;;  %v3523_v63 = vadd.f32 %v3522_v59, %v6043_v36  ;;  %v3524_v58 = vpop.f32.mrb[74].mxu1 }
 0x5ba   : > { %4450 = vst [vmem:[%s5913_s24 + $0x188] sm:$0xff] %v3884_v51  ;;  %v3545_v46 = vmul.f32 0.01, %v3521_v54  ;;  %v3525_v18 = vadd.f32 %v3524_v58, %v6037_v32  ;;  %v3526_v2 = vpop.f32.mrb[75].mxu1 }
 0x5bb   : > { %v3546_v55 = vmul.f32 0.01, %v3523_v63  ;;  %v3527_v6 = vadd.f32 %v3526_v2, %v6043_v36 }
 0x5bc   : > { %v3559_v7 = vmax.f32 %v3521_v54, %v3545_v46  ;;  %v3547_v53 = vmul.f32 0.01, %v3525_v18 }
 0x5bd   : > { %v3560_v61 = vmax.f32 %v3523_v63, %v3546_v55  ;;  %v3548_v5 = vmul.f32 0.01, %v3527_v6 }
 0x5be   : > { %4405 = vst [vmem:[%s5913_s24 + $0x120] sm:$0xff] %v3559_v7  ;;  %v3561_v47 = vmax.f32 %v3525_v18, %v3547_v53 }
 0x5bf   : > { %4406 = vst [vmem:[%s5913_s24 + $0x128] sm:$0xff] %v3560_v61  ;;  %v3562_v17 = vmax.f32 %v3527_v6, %v3548_v5  ;;  %v3530_v9 = vpop.f32.mrb[76].mxu1 }
 0x5c0   : > { %4407 = vst [vmem:[%s5913_s24 + $0x130] sm:$0xff] %v3561_v47  ;;  %v3531_v14 = vadd.f32 %v3530_v9, %v6037_v32  ;;  %v3532_v42 = vpop.f32.mrb[77].mxu1 }
 0x5c1   : > { %4408 = vst [vmem:[%s5913_s24 + $0x138] sm:$0xff] %v3562_v17  ;;  %v3533_v3 = vadd.f32 %v3532_v42, %v6043_v36  ;;  %v3534_v57 = vpop.f32.mrb[78].mxu1 }
 0x5c2   : > { %v3549_v52 = vmul.f32 0.01, %v3531_v14  ;;  %v3535_v60 = vpop.f32.mrb[79].mxu1 }
 0x5c3   : > { %v3550_v8 = vmul.f32 0.01, %v3533_v3 }
 0x5c4   : > { %v3563_v1 = vmax.f32 %v3531_v14, %v3549_v52 }
 0x5c5   : > { %v3564_v49 = vmax.f32 %v3533_v3, %v3550_v8 }
 0x5c6   : > { %4409 = vst [vmem:[%s5913_s24 + $0x140] sm:$0xff] %v3563_v1 }
 0x5c7   : > { %4410 = vst [vmem:[%s5913_s24 + $0x148] sm:$0xff] %v3564_v49 }
 0x5e7   : > { %v3846_v12 = vpop.f32.mrb[80].mxu1 }
 0x5e8   : > { %v3847_v29 = vadd.f32 %v3846_v12, %v6040_v33  ;;  %v3848_v56 = vpop.f32.mrb[81].mxu1 }
 0x5e9   : > { %v3849_v32 = vadd.f32 %v3848_v56, %v6046_v37  ;;  %v3850_v4 = vpop.f32.mrb[82].mxu1 }
 0x5ea   : > { %v3871_v19 = vmul.f32 0.01, %v3847_v29  ;;  %v3851_v36 = vadd.f32 %v3850_v4, %v6040_v33  ;;  %v3852_v35 = vpop.f32.mrb[83].mxu1 }
 0x5eb   : > { %v3872_v45 = vmul.f32 0.01, %v3849_v32  ;;  %v3853_v44 = vadd.f32 %v3852_v35, %v6046_v37 }
 0x5ec   : > { %v3885_v21 = vmax.f32 %v3847_v29, %v3871_v19  ;;  %v3873_v10 = vmul.f32 0.01, %v3851_v36 }
 0x5ed   : > { %v3886_v15 = vmax.f32 %v3849_v32, %v3872_v45  ;;  %v3874_v0 = vmul.f32 0.01, %v3853_v44 }
 0x5ee   : > { %4451 = vst [vmem:[%s5913_s24 + $0x190] sm:$0xff] %v3885_v21  ;;  %v3887_v48 = vmax.f32 %v3851_v36, %v3873_v10 }
 0x5ef   : > { %4452 = vst [vmem:[%s5913_s24 + $0x198] sm:$0xff] %v3886_v15  ;;  %v3888_v50 = vmax.f32 %v3853_v44, %v3874_v0  ;;  %v3856_v16 = vpop.f32.mrb[84].mxu1 }
 0x5f0   : > { %4453 = vst [vmem:[%s5913_s24 + $0x1a0] sm:$0xff] %v3887_v48  ;;  %v3857_v20 = vadd.f32 %v3856_v16, %v6040_v33  ;;  %v3858_v40 = vpop.f32.mrb[85].mxu1 }
 0x5f1   : > { %4454 = vst [vmem:[%s5913_s24 + $0x1a8] sm:$0xff] %v3888_v50  ;;  %v3859_v22 = vadd.f32 %v3858_v40, %v6046_v37  ;;  %v3860_v62 = vpop.f32.mrb[86].mxu1 }
 0x5f2   : > { %v3875_v23 = vmul.f32 0.01, %v3857_v20  ;;  %v3861_v24 = vpop.f32.mrb[87].mxu1 }
 0x5f3   : > { %v3876_v25 = vmul.f32 0.01, %v3859_v22 }
 0x5f4   : > { %v3889_v26 = vmax.f32 %v3857_v20, %v3875_v23 }
 0x5f5   : > { %v3890_v27 = vmax.f32 %v3859_v22, %v3876_v25 }
 0x5f6   : > { %4455 = vst [vmem:[%s5913_s24 + $0x1b0] sm:$0xff] %v3889_v26 }
 0x5f7   : > { %4456 = vst [vmem:[%s5913_s24 + $0x1b8] sm:$0xff] %v3890_v27 }
 0x5f8 PF: > { %s24_s30 = sadd.s32 1, %s5268_s30  }
 0x5f9   : > { %p21_p13 = scmp.ge.s32.totalorder %s24_s30, 4  }
 0x5fb   :  { %23 = sbr.rel (!%p21_p13) target bundleno = 5 (0x5), region = 122 }
 0x602   :  { %3927 = vsyncpa [#allocation3], 1 }
 0x603   :  { %3929 = vsyncpa [#allocation3 + $0x1], 1 }
 0x604   :  { %3930 = vsyncpa [#allocation5], 1 }
 0x605   :  { %3931 = vsyncpa [#allocation8], 1 }
 0x606   :  { %3932 = vsyncpa [#allocation11], 1 }
 0x607   :  { %3933 = vsyncpa [#allocation14], 1 }

</bundles_post_ra>
